<compile_context>
chip_gen: v5e
topology: v5e:2x2
jax: 0.10.0
libtpu: 0.0.40
codegen_flags: <defaults>
</compile_context>

<pallas_src>
import functools

import jax
import jax.numpy as jnp
from jax.experimental import pallas as pl
from jax.experimental.pallas import tpu as pltpu

NUM_BBOX = 2
NUM_CLASSES = 20          # len(CLASSES)
GRID = 7                  # YOLO output grid (fixed by the 7*7*30 head)


def _round_up(x, m):
    return (x + m - 1) // m * m


def _conv_tiling(cin, cout):
    """Conv tile sizes shared by init (weight pre-layout) and the wrapper."""
    k = 9 * cin
    tk = min(_round_up(k, 128), 2304)
    k_p = _round_up(k, tk)
    # tn=512: at most 2 Cout tiles (real cout=1024) which shard across v7x's
    # two TensorCores; on single-TC v5e/v6e the small patches block is re-read
    # at most twice (it is ~5x smaller than the weight stream at N=2).
    tn = min(_round_up(cout, 128), 512)
    c_p = _round_up(cout, tn)
    return k, tk, k_p, tn, c_p


# -----------------------------------------------------------------------------
# Pallas kernels
# -----------------------------------------------------------------------------
def _conv_bn_lrelu_kernel(p_ref, w_ref, sc_ref, sh_ref, o_ref, acc_ref):
    """Tiled (im2col) conv matmul with folded-BN + LeakyReLU(0.1) epilogue.

    Grid = (M_tiles, Cout_tiles, K_tiles); K is the reduction ("arbitrary").
    p_ref : (tm, tk)  bf16 im2col patch rows (rows = batch*spatial, flattened)
    w_ref : (tk, tn)  bf16 conv weight block (pre-laid-out at init)
    sc_ref: (1, tn)   f32 folded BN scale = gamma / sqrt(var + eps)
    sh_ref: (1, tn)   f32 folded BN shift = (conv_bias - mean) * scale + beta
    o_ref : (tm, tn)  bf16 activation output
    acc_ref: (tm, tn) f32 VMEM accumulator scratch
    """
    @pl.when(pl.program_id(2) == 0)
    def _():
        acc_ref[...] = jnp.zeros_like(acc_ref)

    acc_ref[...] += jnp.dot(p_ref[...], w_ref[...],
                            preferred_element_type=jnp.float32)

    @pl.when(pl.program_id(2) == pl.num_programs(2) - 1)
    def _():
        y = acc_ref[...] * sc_ref[...] + sh_ref[...]
        o_ref[...] = jnp.where(y >= 0.0, y, 0.1 * y).astype(o_ref.dtype)


def _mlp_partial_kernel(x_ref, w1_ref, b1_ref, w2_ref, o_ref, h_acc):
    """Per hidden-slice hh: h = LeakyReLU(x @ w1[:, hh] + b1[hh]); o = h @ w2[hh].

    Grid = (H_tiles, K_tiles): hh is "parallel" (shards across v7x's 2 TCs and
    halves per-core VMEM), kk is the w1-stream reduction ("arbitrary").
    x_ref : (Np, tk)      bf16 flattened activations block
    w1_ref: (tk, th)      bf16 first-FC weight block (streams through VMEM)
    b1_ref: (1, th)       f32
    w2_ref: (th, Op)      bf16 second-FC weight slice (resident per hh)
    o_ref : (Np, Op)      f32 partial output for this hidden slice
    h_acc : (Np, th)      f32 VMEM accumulator scratch
    """
    kk = pl.program_id(1)

    @pl.when(kk == 0)
    def _():
        h_acc[...] = jnp.zeros_like(h_acc)

    h_acc[...] += jnp.dot(x_ref[...], w1_ref[...],
                          preferred_element_type=jnp.float32)

    @pl.when(kk == pl.num_programs(1) - 1)
    def _():
        h = h_acc[...] + b1_ref[...]
        h = jnp.where(h >= 0.0, h, 0.1 * h)
        # bf16 cast before the 2nd matmul (f32 accumulation); tiny drift vs
        # torch's f32 Linear, documented/accepted.
        o_ref[...] = jnp.dot(h.astype(w2_ref.dtype), w2_ref[...],
                             preferred_element_type=jnp.float32)


def _fc_combine_kernel(p_ref, b2_ref, o_ref):
    """Sum partials over hidden slices + bias + sigmoid (tiny, single block)."""
    s = jnp.sum(p_ref[...], axis=0) + b2_ref[...]
    o_ref[...] = 1.0 / (1.0 + jnp.exp(-s))


# -----------------------------------------------------------------------------
# Wrappers (glue: padding / im2col indexing / reshapes only — no FLOPs)
# -----------------------------------------------------------------------------
def conv3x3_bn_lrelu(x_nhwc, layer, *, stride):
    """3x3 conv (padding=1, given stride) + BN(eval) + LeakyReLU(0.1), NHWC."""
    n, h, wdt, cin = x_nhwc.shape
    cout, tk, tn = layer["cout"], layer["tk"], layer["tn"]
    k = 9 * cin
    k_p, c_p = layer["wmat"].shape
    hout = (h + 2 - 3) // stride + 1
    wout = (wdt + 2 - 3) // stride + 1

    x_bf = x_nhwc.astype(jnp.bfloat16)
    xp = jnp.pad(x_bf, ((0, 0), (1, 1), (1, 1), (0, 0)))

    # im2col: pure indexing (bf16), zero FLOPs — the matmul happens in-kernel.
    # TODO(synk): fold the im2col into the kernel (9 shifted accumulating dots
    # over a padded NHWC VMEM tile) to remove the HBM patches round-trip; it is
    # a ~10-20% tax at N=2 and grows with batch (>= 8).
    cols = []
    for di in range(3):
        for dj in range(3):
            cols.append(xp[:, di:di + stride * hout:stride,
                           dj:dj + stride * wout:stride, :])
    patches = jnp.concatenate(cols, axis=-1).reshape(n * hout * wout, k)

    m = n * hout * wout
    # Single full-M tile whenever m <= 512 (at N=2 m is 392 or 98): the big
    # weight stream is read exactly once and no padded-row MXU work is done.
    tm = min(_round_up(m, 8), 512)
    m_p = _round_up(m, tm)
    patches = jnp.pad(patches, ((0, m_p - m), (0, k_p - k)))

    # Scoped-VMEM budget: every BlockSpec operand is double-buffered.
    est = (2 * (tm * tk * 2 + tk * tn * 2 + 2 * tn * 4 + tm * tn * 2)
           + tm * tn * 4)
    vmem_limit = int(min(64 << 20, max(32 << 20, est + (16 << 20))))

    out = pl.pallas_call(
        _conv_bn_lrelu_kernel,
        out_shape=jax.ShapeDtypeStruct((m_p, c_p), jnp.bfloat16),
        grid=(m_p // tm, c_p // tn, k_p // tk),
        in_specs=[
            pl.BlockSpec((tm, tk), lambda i, j, kk: (i, kk)),
            pl.BlockSpec((tk, tn), lambda i, j, kk: (kk, j)),
            pl.BlockSpec((1, tn), lambda i, j, kk: (0, j)),
            pl.BlockSpec((1, tn), lambda i, j, kk: (0, j)),
        ],
        out_specs=pl.BlockSpec((tm, tn), lambda i, j, kk: (i, j)),
        scratch_shapes=[pltpu.VMEM((tm, tn), jnp.float32)],
        compiler_params=pltpu.CompilerParams(
            dimension_semantics=("parallel", "parallel", "arbitrary"),
            vmem_limit_bytes=vmem_limit),
    )(patches, layer["wmat"], layer["scale"], layer["shift"])

    return out[:m, :cout].reshape(n, hout, wout, cout)


def mlp_head(x_flat, params):
    """Linear -> LeakyReLU -> Linear -> Sigmoid, w1 K-streamed, hidden split."""
    n, f = x_flat.shape
    w1, b1, w2, b2 = params["w1t"], params["b1"], params["w2t"], params["b2"]
    tk, th = params["fc_tk"], params["fc_th"]
    out_dim = params["out_dim"]
    f_p, h_p = w1.shape
    o_p = w2.shape[1]
    n_p = _round_up(n, 8)
    n_h = h_p // th
    n_k = f_p // tk

    x_p = jnp.pad(x_flat.astype(jnp.bfloat16), ((0, n_p - n), (0, f_p - f)))

    # VMEM budget counting double-buffering on ALL BlockSpec operands
    # (w1 stream, per-hh w2/b1 blocks, x block, partial output).
    est = (2 * (n_p * tk * 2 + tk * th * 2 + th * 4 + th * o_p * 2
                + n_p * o_p * 4)
           + n_p * th * 4)
    vmem_limit = int(min(64 << 20, max(32 << 20, est + (16 << 20))))

    # TODO(synk): generation-dependent weight compression (int8 on v5e/v6e,
    # fp8 on v7x) would ~halve the dominant w1 HBM stream; kept bf16 here to
    # preserve the PyTorch module's numerics.  If the w1 stream shows DMA gaps,
    # raise its BlockSpec to pipeline_mode=pl.Buffered(3).
    partials = pl.pallas_call(
        _mlp_partial_kernel,
        out_shape=jax.ShapeDtypeStruct((n_h, n_p, o_p), jnp.float32),
        grid=(n_h, n_k),
        in_specs=[
            pl.BlockSpec((n_p, tk), lambda hh, kk: (0, kk)),
            pl.BlockSpec((tk, th), lambda hh, kk: (kk, hh)),
            pl.BlockSpec((1, th), lambda hh, kk: (0, hh)),
            pl.BlockSpec((th, o_p), lambda hh, kk: (hh, 0)),
        ],
        out_specs=pl.BlockSpec((None, n_p, o_p), lambda hh, kk: (hh, 0, 0)),
        scratch_shapes=[pltpu.VMEM((n_p, th), jnp.float32)],
        compiler_params=pltpu.CompilerParams(
            dimension_semantics=("parallel", "arbitrary"),
            vmem_limit_bytes=vmem_limit),
    )(x_p, w1, b1, w2)

    # Trivial combine: sum over hidden slices + b2 + sigmoid (few KB of data).
    out = pl.pallas_call(
        _fc_combine_kernel,
        out_shape=jax.ShapeDtypeStruct((n_p, o_p), jnp.float32),
    )(partials, b2)

    return out[:n, :out_dim]


def yolo_head_forward(params, feat_nchw):
    """Conv_layers + Conn_layers + final reshape (YOLOv1_resnet.forward, post-backbone)."""
    x = jnp.transpose(feat_nchw, (0, 2, 3, 1))          # NCHW -> NHWC (boundary only)
    strides = (1, 2, 1, 1)                              # matches the 4 conv blocks
    for layer, s in zip(params["conv"], strides):
        x = conv3x3_bn_lrelu(x, layer, stride=s)
    n = x.shape[0]
    # x is NHWC; w1's input dim was permuted to (h, w, c) order at init, so a
    # plain reshape reproduces torch's NCHW `input.view(N, -1)` exactly with no
    # runtime transpose / extra HBM round trip.
    flat = x.reshape(n, -1)
    out = mlp_head(flat, params)
    return out.reshape(-1, 5 * NUM_BBOX + NUM_CLASSES, GRID, GRID)


# -----------------------------------------------------------------------------
# Deterministic synthetic parameters (BN folded, weights pre-laid-out / padded)
# -----------------------------------------------------------------------------
def init_params(key, c_res, c_conv, hidden, eps=1e-5):
    ks = list(jax.random.split(key, 32))
    nxt = ks.pop

    conv_layers = []
    cins = [c_res, c_conv, c_conv, c_conv]
    for cin in cins:
        w = 0.05 * jax.random.normal(nxt(), (c_conv, cin, 3, 3), jnp.float32)
        b = 0.05 * jax.random.normal(nxt(), (c_conv,), jnp.float32)
        gamma = 1.0 + 0.1 * jax.random.normal(nxt(), (c_conv,), jnp.float32)
        beta = 0.1 * jax.random.normal(nxt(), (c_conv,), jnp.float32)
        mean = 0.1 * jax.random.normal(nxt(), (c_conv,), jnp.float32)
        var = jax.random.uniform(nxt(), (c_conv,), jnp.float32, 0.5, 1.5)
        scale = gamma / jnp.sqrt(var + eps)
        shift = (b - mean) * scale + beta

        # Pre-layout + pad ONCE at init: Wm[(di*3+dj)*Cin + ci, co] = W[co,ci,di,dj].
        k, tk, k_p, tn, c_p = _conv_tiling(cin, c_conv)
        wmat = jnp.transpose(w, (2, 3, 1, 0)).reshape(k, c_conv).astype(jnp.bfloat16)
        conv_layers.append({
            "wmat": jnp.pad(wmat, ((0, k_p - k), (0, c_p - c_conv))),
            "scale": jnp.pad(scale.astype(jnp.float32),
                             (0, c_p - c_conv)).reshape(1, c_p),
            "shift": jnp.pad(shift.astype(jnp.float32),
                             (0, c_p - c_conv)).reshape(1, c_p),
            "cout": c_conv, "tk": tk, "tn": tn,
        })

    f = GRID * GRID * c_conv
    out_dim = GRID * GRID * (5 * NUM_BBOX + NUM_CLASSES)       # 7*7*30 = 1470
    # torch-style (out, in) weights; w1's input index is NCHW-flattened (c,h,w).
    w1 = 0.02 * jax.random.normal(nxt(), (hidden, f), jnp.float32)
    b1 = 0.02 * jax.random.normal(nxt(), (hidden,), jnp.float32)
    w2 = 0.02 * jax.random.normal(nxt(), (out_dim, hidden), jnp.float32)
    b2 = 0.02 * jax.random.normal(nxt(), (out_dim,), jnp.float32)

    # Permute w1's input dim (c,h,w) -> (h,w,c) once here so the hot path can
    # feed the NHWC conv output straight into the FC kernel.
    w1_hwc = jnp.transpose(w1.reshape(hidden, c_conv, GRID, GRID),
                           (0, 2, 3, 1)).reshape(hidden, f)

    # FC tiling / padding decided at init (weights padded once, not per step).
    fc_tk = min(_round_up(f, 128), 1024)
    f_p = _round_up(f, fc_tk)
    fc_th = _round_up(max(128, min(2048, _round_up(hidden, 128) // 2)), 128)
    h_p = _round_up(hidden, fc_th)
    o_p = _round_up(out_dim, 128)                              # 1470 -> 1536

    w1t = jnp.pad(jnp.asarray(w1_hwc.T, jnp.bfloat16),
                  ((0, f_p - f), (0, h_p - hidden)))
    b1p = jnp.pad(b1.astype(jnp.float32), (0, h_p - hidden)).reshape(1, h_p)
    w2t = jnp.pad(jnp.asarray(w2.T, jnp.bfloat16),
                  ((0, h_p - hidden), (0, o_p - out_dim)))
    b2p = jnp.pad(b2.astype(jnp.float32), (0, o_p - out_dim)).reshape(1, o_p)

    return {"conv": conv_layers,
            "w1t": w1t, "b1": b1p, "w2t": w2t, "b2": b2p,
            "fc_tk": fc_tk, "fc_th": fc_th, "out_dim": out_dim}


if __name__ == "__main__":
    # Scaled-down sizes (real module: C_RES=512, C_CONV=1024, HIDDEN=4096).
    N, C_RES, FEAT_HW = 2, 64, 14
    C_CONV, HIDDEN = 64, 256

    key = jax.random.PRNGKey(0)
    k_in, k_par = jax.random.split(key)
    # Kernel input = resnet34 backbone feature map (see TODO at top of file).
    feat = jax.random.normal(k_in, (N, C_RES, FEAT_HW, FEAT_HW), jnp.float32)
    params = init_params(k_par, C_RES, C_CONV, HIDDEN)

    fwd = jax.jit(functools.partial(yolo_head_forward, params))
    out = jax.block_until_ready(fwd(feat))
    assert out.shape == (N, 5 * NUM_BBOX + NUM_CLASSES, GRID, GRID)
    assert out.dtype == jnp.float32
    print("KERNEL_OK")
</pallas_src>

<mosaic_0001>
module attributes {stable_mosaic.version = 11 : i64} {
  func.func @_conv_bn_lrelu_kernel(%arg0: i32, %arg1: i32, %arg2: i32, %arg3: memref<392x640xbf16, #tpu.memory_space<vmem>>, %arg4: memref<640x128xbf16, #tpu.memory_space<vmem>>, %arg5: memref<1x128xf32, #tpu.memory_space<vmem>>, %arg6: memref<1x128xf32, #tpu.memory_space<vmem>>, %arg7: memref<392x128xbf16, #tpu.memory_space<vmem>>, %arg8: memref<392x128xf32, #tpu.memory_space<vmem>>) attributes {dimension_semantics = [#tpu.dimension_semantics<parallel>, #tpu.dimension_semantics<parallel>, #tpu.dimension_semantics<arbitrary>], iteration_bounds = array<i64: 1, 1, 1>, scalar_prefetch = 0 : i64, scratch_operands = 1 : i64, tpu.core_type = #tpu.core_type<tc>, window_params = [{transform_indices = @transform_0, window_bounds = array<i64: 392, 640>}, {transform_indices = @transform_1, window_bounds = array<i64: 640, 128>}, {transform_indices = @transform_2, window_bounds = array<i64: 1, 128>}, {transform_indices = @transform_3, window_bounds = array<i64: 1, 128>}, {transform_indices = @transform_4, window_bounds = array<i64: 392, 128>}]} {
    %c0_i32 = arith.constant 0 : i32
    %0 = arith.cmpi eq, %arg2, %c0_i32 : i32
    %1 = arith.extui %0 : i1 to i32
    %c0_i32_0 = arith.constant 0 : i32
    %2 = arith.cmpi ne, %1, %c0_i32_0 : i32
    scf.if %2 {
      %cst_10 = arith.constant 0.000000e+00 : f32
      %12 = vector.broadcast %cst_10 : f32 to vector<392x128xf32>
      %c0_11 = arith.constant 0 : index
      %c0_12 = arith.constant 0 : index
      %13 = vector.load %arg8[%c0_11, %c0_12] : memref<392x128xf32, #tpu.memory_space<vmem>>, vector<392x128xf32>
      tpu.vector_store %arg8[%c0_11, %c0_12], %12 {strides = array<i32>} : memref<392x128xf32, #tpu.memory_space<vmem>>, vector<392x128xf32>,
    } else {
    }
    %c0 = arith.constant 0 : index
    %c0_1 = arith.constant 0 : index
    %3 = vector.load %arg8[%c0, %c0_1] : memref<392x128xf32, #tpu.memory_space<vmem>>, vector<392x128xf32>
    %c0_2 = arith.constant 0 : index
    %c0_3 = arith.constant 0 : index
    %4 = vector.load %arg3[%c0_2, %c0_3] : memref<392x640xbf16, #tpu.memory_space<vmem>>, vector<392x640xbf16>
    %c0_4 = arith.constant 0 : index
    %c0_5 = arith.constant 0 : index
    %5 = vector.load %arg4[%c0_4, %c0_5] : memref<640x128xbf16, #tpu.memory_space<vmem>>, vector<640x128xbf16>
    %cst = arith.constant dense<0.000000e+00> : vector<392x128xf32>
    %6 = tpu.matmul %4, %5, %cst {dimension_numbers = #tpu.dot_dimension_numbers<[1], [0], [0], [1], [0, 0, 1, 1], [], []>} : vector<392x640xbf16>, vector<640x128xbf16>, vector<392x128xf32> -> vector<392x128xf32>
    %7 = arith.addf %3, %6 : vector<392x128xf32>
    %c0_6 = arith.constant 0 : index
    %c0_7 = arith.constant 0 : index
    %8 = vector.load %arg8[%c0_6, %c0_7] : memref<392x128xf32, #tpu.memory_space<vmem>>, vector<392x128xf32>
    tpu.vector_store %arg8[%c0_6, %c0_7], %7 {strides = array<i32>} : memref<392x128xf32, #tpu.memory_space<vmem>>, vector<392x128xf32>,
    %c0_i32_8 = arith.constant 0 : i32
    %9 = arith.cmpi eq, %arg2, %c0_i32_8 : i32
    %10 = arith.extui %9 : i1 to i32
    %c0_i32_9 = arith.constant 0 : i32
    %11 = arith.cmpi ne, %10, %c0_i32_9 : i32
    scf.if %11 {
      %c0_10 = arith.constant 0 : index
      %c0_11 = arith.constant 0 : index
      %12 = vector.load %arg8[%c0_10, %c0_11] : memref<392x128xf32, #tpu.memory_space<vmem>>, vector<392x128xf32>
      %c0_12 = arith.constant 0 : index
      %c0_13 = arith.constant 0 : index
      %13 = vector.load %arg5[%c0_12, %c0_13] : memref<1x128xf32, #tpu.memory_space<vmem>>, vector<1x128xf32>
      %14 = vector.broadcast %13 : vector<1x128xf32> to vector<392x128xf32>
      %15 = arith.mulf %12, %14 : vector<392x128xf32>
      %c0_14 = arith.constant 0 : index
      %c0_15 = arith.constant 0 : index
      %16 = vector.load %arg6[%c0_14, %c0_15] : memref<1x128xf32, #tpu.memory_space<vmem>>, vector<1x128xf32>
      %17 = vector.broadcast %16 : vector<1x128xf32> to vector<392x128xf32>
      %18 = arith.addf %15, %17 : vector<392x128xf32>
      %cst_16 = arith.constant 0.000000e+00 : f32
      %19 = vector.broadcast %cst_16 : f32 to vector<392x128xf32>
      %20 = arith.cmpf oge, %18, %19 : vector<392x128xf32>
      %cst_17 = arith.constant 1.000000e-01 : f32
      %21 = vector.broadcast %cst_17 : f32 to vector<392x128xf32>
      %22 = arith.mulf %21, %18 : vector<392x128xf32>
      %23 = arith.select %20, %18, %22 : vector<392x128xi1>, vector<392x128xf32>
      %24 = arith.truncf %23 : vector<392x128xf32> to vector<392x128xbf16>
      %c0_18 = arith.constant 0 : index
      %c0_19 = arith.constant 0 : index
      %25 = vector.load %arg7[%c0_18, %c0_19] : memref<392x128xbf16, #tpu.memory_space<vmem>>, vector<392x128xbf16>
      tpu.vector_store %arg7[%c0_18, %c0_19], %24 {strides = array<i32>} : memref<392x128xbf16, #tpu.memory_space<vmem>>, vector<392x128xbf16>,
    } else {
    }
    return
  }
  func.func @transform_0(%arg0: i32, %arg1: i32, %arg2: i32) -> (i32, i32) {
    %c0_i32 = arith.constant 0 : i32
    return %arg0, %arg2 : i32, i32
  }
  func.func @transform_1(%arg0: i32, %arg1: i32, %arg2: i32) -> (i32, i32) {
    %c0_i32 = arith.constant 0 : i32
    return %arg2, %arg1 : i32, i32
  }
  func.func @transform_2(%arg0: i32, %arg1: i32, %arg2: i32) -> (i32, i32) {
    %c0_i32 = arith.constant 0 : i32
    %c0_i32_0 = arith.constant 0 : i32
    return %c0_i32, %arg1 : i32, i32
  }
  func.func @transform_3(%arg0: i32, %arg1: i32, %arg2: i32) -> (i32, i32) {
    %c0_i32 = arith.constant 0 : i32
    %c0_i32_0 = arith.constant 0 : i32
    return %c0_i32, %arg1 : i32, i32
  }
  func.func @transform_4(%arg0: i32, %arg1: i32, %arg2: i32) -> (i32, i32) {
    %c0_i32 = arith.constant 0 : i32
    return %arg0, %arg1 : i32, i32
  }
}

module attributes {stable_mosaic.version = 11 : i64} {
  func.func @_conv_bn_lrelu_kernel(%arg0: i32, %arg1: i32, %arg2: i32, %arg3: memref<104x640xbf16, #tpu.memory_space<vmem>>, %arg4: memref<640x128xbf16, #tpu.memory_space<vmem>>, %arg5: memref<1x128xf32, #tpu.memory_space<vmem>>, %arg6: memref<1x128xf32, #tpu.memory_space<vmem>>, %arg7: memref<104x128xbf16, #tpu.memory_space<vmem>>, %arg8: memref<104x128xf32, #tpu.memory_space<vmem>>) attributes {dimension_semantics = [#tpu.dimension_semantics<parallel>, #tpu.dimension_semantics<parallel>, #tpu.dimension_semantics<arbitrary>], iteration_bounds = array<i64: 1, 1, 1>, scalar_prefetch = 0 : i64, scratch_operands = 1 : i64, tpu.core_type = #tpu.core_type<tc>, window_params = [{transform_indices = @transform_0, window_bounds = array<i64: 104, 640>}, {transform_indices = @transform_1, window_bounds = array<i64: 640, 128>}, {transform_indices = @transform_2, window_bounds = array<i64: 1, 128>}, {transform_indices = @transform_3, window_bounds = array<i64: 1, 128>}, {transform_indices = @transform_4, window_bounds = array<i64: 104, 128>}]} {
    %c0_i32 = arith.constant 0 : i32
    %0 = arith.cmpi eq, %arg2, %c0_i32 : i32
    %1 = arith.extui %0 : i1 to i32
    %c0_i32_0 = arith.constant 0 : i32
    %2 = arith.cmpi ne, %1, %c0_i32_0 : i32
    scf.if %2 {
      %cst_10 = arith.constant 0.000000e+00 : f32
      %12 = vector.broadcast %cst_10 : f32 to vector<104x128xf32>
      %c0_11 = arith.constant 0 : index
      %c0_12 = arith.constant 0 : index
      %13 = vector.load %arg8[%c0_11, %c0_12] : memref<104x128xf32, #tpu.memory_space<vmem>>, vector<104x128xf32>
      tpu.vector_store %arg8[%c0_11, %c0_12], %12 {strides = array<i32>} : memref<104x128xf32, #tpu.memory_space<vmem>>, vector<104x128xf32>,
    } else {
    }
    %c0 = arith.constant 0 : index
    %c0_1 = arith.constant 0 : index
    %3 = vector.load %arg8[%c0, %c0_1] : memref<104x128xf32, #tpu.memory_space<vmem>>, vector<104x128xf32>
    %c0_2 = arith.constant 0 : index
    %c0_3 = arith.constant 0 : index
    %4 = vector.load %arg3[%c0_2, %c0_3] : memref<104x640xbf16, #tpu.memory_space<vmem>>, vector<104x640xbf16>
    %c0_4 = arith.constant 0 : index
    %c0_5 = arith.constant 0 : index
    %5 = vector.load %arg4[%c0_4, %c0_5] : memref<640x128xbf16, #tpu.memory_space<vmem>>, vector<640x128xbf16>
    %cst = arith.constant dense<0.000000e+00> : vector<104x128xf32>
    %6 = tpu.matmul %4, %5, %cst {dimension_numbers = #tpu.dot_dimension_numbers<[1], [0], [0], [1], [0, 0, 1, 1], [], []>} : vector<104x640xbf16>, vector<640x128xbf16>, vector<104x128xf32> -> vector<104x128xf32>
    %7 = arith.addf %3, %6 : vector<104x128xf32>
    %c0_6 = arith.constant 0 : index
    %c0_7 = arith.constant 0 : index
    %8 = vector.load %arg8[%c0_6, %c0_7] : memref<104x128xf32, #tpu.memory_space<vmem>>, vector<104x128xf32>
    tpu.vector_store %arg8[%c0_6, %c0_7], %7 {strides = array<i32>} : memref<104x128xf32, #tpu.memory_space<vmem>>, vector<104x128xf32>,
    %c0_i32_8 = arith.constant 0 : i32
    %9 = arith.cmpi eq, %arg2, %c0_i32_8 : i32
    %10 = arith.extui %9 : i1 to i32
    %c0_i32_9 = arith.constant 0 : i32
    %11 = arith.cmpi ne, %10, %c0_i32_9 : i32
    scf.if %11 {
      %c0_10 = arith.constant 0 : index
      %c0_11 = arith.constant 0 : index
      %12 = vector.load %arg8[%c0_10, %c0_11] : memref<104x128xf32, #tpu.memory_space<vmem>>, vector<104x128xf32>
      %c0_12 = arith.constant 0 : index
      %c0_13 = arith.constant 0 : index
      %13 = vector.load %arg5[%c0_12, %c0_13] : memref<1x128xf32, #tpu.memory_space<vmem>>, vector<1x128xf32>
      %14 = vector.broadcast %13 : vector<1x128xf32> to vector<104x128xf32>
      %15 = arith.mulf %12, %14 : vector<104x128xf32>
      %c0_14 = arith.constant 0 : index
      %c0_15 = arith.constant 0 : index
      %16 = vector.load %arg6[%c0_14, %c0_15] : memref<1x128xf32, #tpu.memory_space<vmem>>, vector<1x128xf32>
      %17 = vector.broadcast %16 : vector<1x128xf32> to vector<104x128xf32>
      %18 = arith.addf %15, %17 : vector<104x128xf32>
      %cst_16 = arith.constant 0.000000e+00 : f32
      %19 = vector.broadcast %cst_16 : f32 to vector<104x128xf32>
      %20 = arith.cmpf oge, %18, %19 : vector<104x128xf32>
      %cst_17 = arith.constant 1.000000e-01 : f32
      %21 = vector.broadcast %cst_17 : f32 to vector<104x128xf32>
      %22 = arith.mulf %21, %18 : vector<104x128xf32>
      %23 = arith.select %20, %18, %22 : vector<104x128xi1>, vector<104x128xf32>
      %24 = arith.truncf %23 : vector<104x128xf32> to vector<104x128xbf16>
      %c0_18 = arith.constant 0 : index
      %c0_19 = arith.constant 0 : index
      %25 = vector.load %arg7[%c0_18, %c0_19] : memref<104x128xbf16, #tpu.memory_space<vmem>>, vector<104x128xbf16>
      tpu.vector_store %arg7[%c0_18, %c0_19], %24 {strides = array<i32>} : memref<104x128xbf16, #tpu.memory_space<vmem>>, vector<104x128xbf16>,
    } else {
    }
    return
  }
  func.func @transform_0(%arg0: i32, %arg1: i32, %arg2: i32) -> (i32, i32) {
    %c0_i32 = arith.constant 0 : i32
    return %arg0, %arg2 : i32, i32
  }
  func.func @transform_1(%arg0: i32, %arg1: i32, %arg2: i32) -> (i32, i32) {
    %c0_i32 = arith.constant 0 : i32
    return %arg2, %arg1 : i32, i32
  }
  func.func @transform_2(%arg0: i32, %arg1: i32, %arg2: i32) -> (i32, i32) {
    %c0_i32 = arith.constant 0 : i32
    %c0_i32_0 = arith.constant 0 : i32
    return %c0_i32, %arg1 : i32, i32
  }
  func.func @transform_3(%arg0: i32, %arg1: i32, %arg2: i32) -> (i32, i32) {
    %c0_i32 = arith.constant 0 : i32
    %c0_i32_0 = arith.constant 0 : i32
    return %c0_i32, %arg1 : i32, i32
  }
  func.func @transform_4(%arg0: i32, %arg1: i32, %arg2: i32) -> (i32, i32) {
    %c0_i32 = arith.constant 0 : i32
    return %arg0, %arg1 : i32, i32
  }
}

module attributes {stable_mosaic.version = 11 : i64} {
  func.func @_fc_combine_kernel(%arg0: memref<2x8x1536xf32, #tpu.memory_space<vmem>>, %arg1: memref<1x1536xf32, #tpu.memory_space<vmem>>, %arg2: memref<8x1536xf32, #tpu.memory_space<vmem>>) attributes {dimension_semantics = [], scalar_prefetch = 0 : i64, scratch_operands = 0 : i64, tpu.core_type = #tpu.core_type<tc>} {
    %c0 = arith.constant 0 : index
    %c0_0 = arith.constant 0 : index
    %c0_1 = arith.constant 0 : index
    %0 = vector.load %arg0[%c0, %c0_0, %c0_1] : memref<2x8x1536xf32, #tpu.memory_space<vmem>>, vector<2x8x1536xf32>
    %cst = arith.constant dense<0.000000e+00> : vector<8x1536xf32>
    %1 = vector.multi_reduction <add>, %0, %cst [0] : vector<2x8x1536xf32> to vector<8x1536xf32>
    %c0_2 = arith.constant 0 : index
    %c0_3 = arith.constant 0 : index
    %2 = vector.load %arg1[%c0_2, %c0_3] : memref<1x1536xf32, #tpu.memory_space<vmem>>, vector<1x1536xf32>
    %3 = vector.broadcast %2 : vector<1x1536xf32> to vector<8x1536xf32>
    %4 = arith.addf %1, %3 : vector<8x1536xf32>
    %cst_4 = arith.constant 0.000000e+00 : f32
    %5 = vector.broadcast %cst_4 : f32 to vector<8x1536xf32>
    %6 = arith.subf %5, %4 : vector<8x1536xf32>
    %7 = math.exp %6 : vector<8x1536xf32>
    %cst_5 = arith.constant 1.000000e+00 : f32
    %8 = vector.broadcast %cst_5 : f32 to vector<8x1536xf32>
    %9 = arith.addf %8, %7 : vector<8x1536xf32>
    %cst_6 = arith.constant 1.000000e+00 : f32
    %10 = vector.broadcast %cst_6 : f32 to vector<8x1536xf32>
    %11 = arith.divf %10, %9 : vector<8x1536xf32>
    %c0_7 = arith.constant 0 : index
    %c0_8 = arith.constant 0 : index
    %12 = vector.load %arg2[%c0_7, %c0_8] : memref<8x1536xf32, #tpu.memory_space<vmem>>, vector<8x1536xf32>
    tpu.vector_store %arg2[%c0_7, %c0_8], %11 {strides = array<i32>} : memref<8x1536xf32, #tpu.memory_space<vmem>>, vector<8x1536xf32>,
    return
  }
}

module attributes {stable_mosaic.version = 11 : i64} {
  func.func @_mlp_partial_kernel(%arg0: i32, %arg1: i32, %arg2: memref<8x1024xbf16, #tpu.memory_space<vmem>>, %arg3: memref<1024x128xbf16, #tpu.memory_space<vmem>>, %arg4: memref<1x128xf32, #tpu.memory_space<vmem>>, %arg5: memref<128x1536xbf16, #tpu.memory_space<vmem>>, %arg6: memref<1x8x1536xf32, #tpu.memory_space<vmem>>, %arg7: memref<8x128xf32, #tpu.memory_space<vmem>>) attributes {dimension_semantics = [#tpu.dimension_semantics<parallel>, #tpu.dimension_semantics<arbitrary>], iteration_bounds = array<i64: 2, 4>, scalar_prefetch = 0 : i64, scratch_operands = 1 : i64, tpu.core_type = #tpu.core_type<tc>, window_params = [{transform_indices = @transform_0, window_bounds = array<i64: 8, 1024>}, {transform_indices = @transform_1, window_bounds = array<i64: 1024, 128>}, {transform_indices = @transform_2, window_bounds = array<i64: 1, 128>}, {transform_indices = @transform_3, window_bounds = array<i64: 128, 1536>}, {transform_indices = @transform_4, window_bounds = array<i64: 1, 8, 1536>}]} {
    %c0_i32 = arith.constant 0 : i32
    %0 = arith.cmpi eq, %arg1, %c0_i32 : i32
    %1 = arith.extui %0 : i1 to i32
    %c0_i32_0 = arith.constant 0 : i32
    %2 = arith.cmpi ne, %1, %c0_i32_0 : i32
    scf.if %2 {
      %cst_9 = arith.constant 0.000000e+00 : f32
      %12 = vector.broadcast %cst_9 : f32 to vector<8x128xf32>
      %c0_10 = arith.constant 0 : index
      %c0_11 = arith.constant 0 : index
      %13 = vector.load %arg7[%c0_10, %c0_11] : memref<8x128xf32, #tpu.memory_space<vmem>>, vector<8x128xf32>
      tpu.vector_store %arg7[%c0_10, %c0_11], %12 {strides = array<i32>} : memref<8x128xf32, #tpu.memory_space<vmem>>, vector<8x128xf32>,
    } else {
    }
    %c0 = arith.constant 0 : index
    %c0_1 = arith.constant 0 : index
    %3 = vector.load %arg7[%c0, %c0_1] : memref<8x128xf32, #tpu.memory_space<vmem>>, vector<8x128xf32>
    %c0_2 = arith.constant 0 : index
    %c0_3 = arith.constant 0 : index
    %4 = vector.load %arg2[%c0_2, %c0_3] : memref<8x1024xbf16, #tpu.memory_space<vmem>>, vector<8x1024xbf16>
    %c0_4 = arith.constant 0 : index
    %c0_5 = arith.constant 0 : index
    %5 = vector.load %arg3[%c0_4, %c0_5] : memref<1024x128xbf16, #tpu.memory_space<vmem>>, vector<1024x128xbf16>
    %cst = arith.constant dense<0.000000e+00> : vector<8x128xf32>
    %6 = tpu.matmul %4, %5, %cst {dimension_numbers = #tpu.dot_dimension_numbers<[1], [0], [0], [1], [0, 0, 1, 1], [], []>} : vector<8x1024xbf16>, vector<1024x128xbf16>, vector<8x128xf32> -> vector<8x128xf32>
    %7 = arith.addf %3, %6 : vector<8x128xf32>
    %c0_6 = arith.constant 0 : index
    %c0_7 = arith.constant 0 : index
    %8 = vector.load %arg7[%c0_6, %c0_7] : memref<8x128xf32, #tpu.memory_space<vmem>>, vector<8x128xf32>
    tpu.vector_store %arg7[%c0_6, %c0_7], %7 {strides = array<i32>} : memref<8x128xf32, #tpu.memory_space<vmem>>, vector<8x128xf32>,
    %c3_i32 = arith.constant 3 : i32
    %9 = arith.cmpi eq, %arg1, %c3_i32 : i32
    %10 = arith.extui %9 : i1 to i32
    %c0_i32_8 = arith.constant 0 : i32
    %11 = arith.cmpi ne, %10, %c0_i32_8 : i32
    scf.if %11 {
      %c0_9 = arith.constant 0 : index
      %c0_10 = arith.constant 0 : index
      %12 = vector.load %arg7[%c0_9, %c0_10] : memref<8x128xf32, #tpu.memory_space<vmem>>, vector<8x128xf32>
      %c0_11 = arith.constant 0 : index
      %c0_12 = arith.constant 0 : index
      %13 = vector.load %arg4[%c0_11, %c0_12] : memref<1x128xf32, #tpu.memory_space<vmem>>, vector<1x128xf32>
      %14 = vector.broadcast %13 : vector<1x128xf32> to vector<8x128xf32>
      %15 = arith.addf %12, %14 : vector<8x128xf32>
      %cst_13 = arith.constant 0.000000e+00 : f32
      %16 = vector.broadcast %cst_13 : f32 to vector<8x128xf32>
      %17 = arith.cmpf oge, %15, %16 : vector<8x128xf32>
      %cst_14 = arith.constant 1.000000e-01 : f32
      %18 = vector.broadcast %cst_14 : f32 to vector<8x128xf32>
      %19 = arith.mulf %18, %15 : vector<8x128xf32>
      %20 = arith.select %17, %15, %19 : vector<8x128xi1>, vector<8x128xf32>
      %21 = arith.truncf %20 : vector<8x128xf32> to vector<8x128xbf16>
      %c0_15 = arith.constant 0 : index
      %c0_16 = arith.constant 0 : index
      %22 = vector.load %arg5[%c0_15, %c0_16] : memref<128x1536xbf16, #tpu.memory_space<vmem>>, vector<128x1536xbf16>
      %cst_17 = arith.constant dense<0.000000e+00> : vector<8x1536xf32>
      %23 = tpu.matmul %21, %22, %cst_17 {dimension_numbers = #tpu.dot_dimension_numbers<[1], [0], [0], [1], [0, 0, 1, 1], [], []>} : vector<8x128xbf16>, vector<128x1536xbf16>, vector<8x1536xf32> -> vector<8x1536xf32>
      %c0_18 = arith.constant 0 : index
      %c0_19 = arith.constant 0 : index
      %c0_20 = arith.constant 0 : index
      %24 = vector.load %arg6[%c0_18, %c0_19, %c0_20] : memref<1x8x1536xf32, #tpu.memory_space<vmem>>, vector<1x8x1536xf32>
      %25 = vector.shape_cast %24 : vector<1x8x1536xf32> to vector<8x1536xf32>
      %26 = vector.shape_cast %23 : vector<8x1536xf32> to vector<1x8x1536xf32>
      tpu.vector_store %arg6[%c0_18, %c0_19, %c0_20], %26 {strides = array<i32>} : memref<1x8x1536xf32, #tpu.memory_space<vmem>>, vector<1x8x1536xf32>,
    } else {
    }
    return
  }
  func.func @transform_0(%arg0: i32, %arg1: i32) -> (i32, i32) {
    %c0_i32 = arith.constant 0 : i32
    %c0_i32_0 = arith.constant 0 : i32
    return %c0_i32, %arg1 : i32, i32
  }
  func.func @transform_1(%arg0: i32, %arg1: i32) -> (i32, i32) {
    %c0_i32 = arith.constant 0 : i32
    return %arg1, %arg0 : i32, i32
  }
  func.func @transform_2(%arg0: i32, %arg1: i32) -> (i32, i32) {
    %c0_i32 = arith.constant 0 : i32
    %c0_i32_0 = arith.constant 0 : i32
    return %c0_i32, %arg0 : i32, i32
  }
  func.func @transform_3(%arg0: i32, %arg1: i32) -> (i32, i32) {
    %c0_i32 = arith.constant 0 : i32
    %c0_i32_0 = arith.constant 0 : i32
    return %arg0, %c0_i32 : i32, i32
  }
  func.func @transform_4(%arg0: i32, %arg1: i32) -> (i32, i32, i32) {
    %c0_i32 = arith.constant 0 : i32
    %c0_i32_0 = arith.constant 0 : i32
    %c0_i32_1 = arith.constant 0 : i32
    return %arg0, %c0_i32, %c0_i32_0 : i32, i32, i32
  }
}

</mosaic_0001>

<bundles_post_ra>
// kernel: yolo_head_forward.6
= control target key start
LH: loop header
LB: loop body
LE: loop exit
PB: predicated region body
PF: predicated region fallthrough
CT: control target
= control target key end

     0   :  { %s4735_s1 = inlined_call_operand.vmem [shape: bf16[640,128], index: 1, kind: input, shape index: {}]   ;;  %s4736_s0 = inlined_call_operand.vmem [shape: bf16[392,640], index: 0, kind: input, shape index: {}]   ;;  %s4737_s2 = inlined_call_operand.vmem [shape: f32[1,128], index: 2, kind: input, shape index: {}]   ;;  %s4738_s3 = inlined_call_operand.vmem [shape: f32[1,128], index: 3, kind: input, shape index: {}]   ;;  %s4739_s4 = inlined_call_operand.vmem [shape: bf16[392,128], index: 4, kind: output, shape index: {}]  }
   0x1   :  { %v3165_v0 = vld [vmem:[%s4735_s1 + $0x38] sm:$0xff]  ;;  %v3164_v1 = vld [vmem:[%s4735_s1 + $0x30] sm:$0xff]  ;;  %v3163_v2 = vld [vmem:[%s4735_s1 + $0x28] sm:$0xff] }
   0x2   :  { %3341 = vmatpush.bf16.msra.mxu1 %v3165_v0  ;;  %3342 = vmatpush.bf16.msra.mxu2 %v3165_v0  ;;  %v3162_v3 = vld [vmem:[%s4735_s1 + $0x20] sm:$0xff]  ;;  %v3161_v4 = vld [vmem:[%s4735_s1 + $0x18] sm:$0xff]  ;;  %v3160_v5 = vld [vmem:[%s4735_s1 + $0x10] sm:$0xff] }
   0x3   :  { %1228 = vmatpush.bf16.msra.mxu0 %v3165_v0  ;;  %3343 = vmatpush.bf16.msra.mxu3 %v3165_v0  ;;  %v3159_v6 = vld [vmem:[%s4735_s1 + $0x8] sm:$0xff]  ;;  %v3158_v7 = vld [vmem:[%s4735_s1] sm:$0xff]  ;;  %v2540_v8 = vld [vmem:[%s4736_s0 + $0x118] sm:$0xf] }
   0x4   :  { %v3075_v9 = vld [vmem:[%s4736_s0 + $0x128] sm:$0xf0]  ;;  %v2680_v10 = vld [vmem:[%s4736_s0 + $0x230] sm:$0xf]  ;;  %v3110_v11 = vld [vmem:[%s4736_s0 + $0x240] sm:$0xf0] }
   0x5   :  { %v3181_v12 = vld [vmem:[%s4735_s1 + $0xb8] sm:$0xff]  ;;  %v2400_v13 = vld [vmem:[%s4736_s0] sm:$0xf]  ;;  %v3040_v14 = vld [vmem:[%s4736_s0 + $0x10] sm:$0xf0]  ;;  %v2541_v17 = vor.u32 %v3075_v9, %v2540_v8  ;;  %v2681_v18 = vor.u32 %v3110_v11, %v2680_v10 }
   0x6   :  { %3344 = vmatpush.bf16.msra.mxu1 %v3164_v1  ;;  %3345 = vmatpush.bf16.msra.mxu2 %v3164_v1  ;;  %v3173_v15 = vld [vmem:[%s4735_s1 + $0x78] sm:$0xff]  ;;  %v2401_v19 = vor.u32 %v3040_v14, %v2400_v13  ;;  %v3180_v20 = vld [vmem:[%s4735_s1 + $0xb0] sm:$0xff]  ;;  %v2820_v23 = vld [vmem:[%s4736_s0 + $0x348] sm:$0xf] }
   0x7   :  { %1229 = vmatpush.bf16.msra.mxu0 %v3164_v1  ;;  %3346 = vmatpush.bf16.msra.mxu3 %v3164_v1  ;;  %v3197_v16 = vld [vmem:[%s4735_s1 + $0x138] sm:$0xff]  ;;  %v3172_v21 = vld [vmem:[%s4735_s1 + $0x70] sm:$0xff]  ;;  %v3179_v25 = vld [vmem:[%s4735_s1 + $0xa8] sm:$0xff] }
   0x8   :  { %v3196_v22 = vld [vmem:[%s4735_s1 + $0x130] sm:$0xff]  ;;  %v3145_v24 = vld [vmem:[%s4736_s0 + $0x358] sm:$0xf0]  ;;  %v3171_v27 = vld [vmem:[%s4735_s1 + $0x68] sm:$0xff] }
   0x9   :  { %v2821_v26 = vor.u32 %v3145_v24, %v2820_v23  ;;  %v3195_v28 = vld [vmem:[%s4735_s1 + $0x128] sm:$0xff]  ;;  %v3178_v29 = vld [vmem:[%s4735_s1 + $0xa0] sm:$0xff]  ;;  %v3080_v32 = vld [vmem:[%s4736_s0 + $0x150] sm:$0xf0] }
   0xa   :  { %3347 = vmatpush.bf16.msra.mxu1 %v3163_v2  ;;  %3348 = vmatpush.bf16.msra.mxu2 %v3163_v2  ;;  %v3170_v30 = vld [vmem:[%s4735_s1 + $0x60] sm:$0xff]  ;;  %v2700_v33 = vld [vmem:[%s4736_s0 + $0x258] sm:$0xf]  ;;  %v3115_v34 = vld [vmem:[%s4736_s0 + $0x268] sm:$0xf0] }
   0xb   :  { %1230 = vmatpush.bf16.msra.mxu0 %v3163_v2  ;;  %3349 = vmatpush.bf16.msra.mxu3 %v3163_v2  ;;  %v2560_v31 = vld [vmem:[%s4736_s0 + $0x140] sm:$0xf]  ;;  %v2420_v35 = vld [vmem:[%s4736_s0 + $0x28] sm:$0xf]  ;;  %v3045_v36 = vld [vmem:[%s4736_s0 + $0x38] sm:$0xf0]  ;;  %v2701_v38 = vor.u32 %v3115_v34, %v2700_v33 }
   0xc   :  { %v2561_v37 = vor.u32 %v3080_v32, %v2560_v31  ;;  %v2421_v39 = vor.u32 %v3045_v36, %v2420_v35  ;;  %v3189_v40 = vld [vmem:[%s4735_s1 + $0xf8] sm:$0xff]  ;;  %v3194_v41 = vld [vmem:[%s4735_s1 + $0x120] sm:$0xff]  ;;  %v2840_v43 = vld [vmem:[%s4736_s0 + $0x370] sm:$0xf] }
   0xd   :  { %v3177_v42 = vld [vmem:[%s4735_s1 + $0x98] sm:$0xff]  ;;  %v3150_v44 = vld [vmem:[%s4736_s0 + $0x380] sm:$0xf0]  ;;  %v3188_v46 = vld [vmem:[%s4735_s1 + $0xf0] sm:$0xff] }
   0xe   :  { %3350 = vmatpush.bf16.msra.mxu1 %v3162_v3  ;;  %3351 = vmatpush.bf16.msra.mxu2 %v3162_v3  ;;  %v2841_v45 = vor.u32 %v3150_v44, %v2840_v43  ;;  %v3169_v47 = vld [vmem:[%s4735_s1 + $0x58] sm:$0xff]  ;;  %v2580_v48 = vld [vmem:[%s4736_s0 + $0x168] sm:$0xf]  ;;  %v2720_v50 = vld [vmem:[%s4736_s0 + $0x280] sm:$0xf] }
   0xf   :  { %1231 = vmatpush.bf16.msra.mxu0 %v3162_v3  ;;  %3352 = vmatpush.bf16.msra.mxu3 %v3162_v3  ;;  %v3085_v49 = vld [vmem:[%s4736_s0 + $0x178] sm:$0xf0]  ;;  %v3120_v51 = vld [vmem:[%s4736_s0 + $0x290] sm:$0xf0]  ;;  %v2440_v52 = vld [vmem:[%s4736_s0 + $0x50] sm:$0xf] }
  0x10   :  { %v3050_v53 = vld [vmem:[%s4736_s0 + $0x60] sm:$0xf0]  ;;  %v2581_v54 = vor.u32 %v3085_v49, %v2580_v48  ;;  %v2721_v55 = vor.u32 %v3120_v51, %v2720_v50  ;;  %v3187_v57 = vld [vmem:[%s4735_s1 + $0xe8] sm:$0xff]  ;;  %v3193_v58 = vld [vmem:[%s4735_s1 + $0x118] sm:$0xff] }
  0x11   :  { %v2441_v56 = vor.u32 %v3050_v53, %v2440_v52  ;;  %v3176_v59 = vld [vmem:[%s4735_s1 + $0x90] sm:$0xff]  ;;  %v2860_v60 = vld [vmem:[%s4736_s0 + $0x398] sm:$0xf]  ;;  %v3155_v61 = vld [vmem:[%s4736_s0 + $0x3a8] sm:$0xf0] }
  0x12   :  { %3353 = vmatpush.bf16.msra.mxu1 %v3161_v4  ;;  %3354 = vmatpush.bf16.msra.mxu2 %v3161_v4  ;;  %v3168_v62 = vld [vmem:[%s4735_s1 + $0x50] sm:$0xff]  ;;  %v2861_v63 = vor.u32 %v3155_v61, %v2860_v60  ;;  %v3186_v0 = vld [vmem:[%s4735_s1 + $0xe0] sm:$0xff]  ;;  %v2740_v3 = vld [vmem:[%s4736_s0 + $0x2a8] sm:$0xf] }
  0x13   :  { %1232 = vmatpush.bf16.msra.mxu0 %v3161_v4  ;;  %3355 = vmatpush.bf16.msra.mxu3 %v3161_v4  ;;  %v2600_v1 = vld [vmem:[%s4736_s0 + $0x190] sm:$0xf]  ;;  %v3090_v2 = vld [vmem:[%s4736_s0 + $0x1a0] sm:$0xf0]  ;;  %v3125_v4 = vld [vmem:[%s4736_s0 + $0x2b8] sm:$0xf0] }
  0x14   :  { %v2741_v8 = vor.u32 %v3125_v4, %v2740_v3  ;;  %v3192_v10 = vld [vmem:[%s4735_s1 + $0x110] sm:$0xff]  ;;  %v3185_v11 = vld [vmem:[%s4735_s1 + $0xd8] sm:$0xff]  ;;  %v3167_v13 = vld [vmem:[%s4735_s1 + $0x48] sm:$0xff] }
  0x15   :  { %v263_v14 = vld [vmem:[%s4736_s0 + $0x3c0] sm:$0xff]  ;;  %v3060_v24 = vld [vmem:[%s4736_s0 + $0xb0] sm:$0xf0]  ;;  %v3039_v32 = vld [vmem:[%s4736_s0 + $0xc] sm:$0xf] }
  0x16   :  { %3356 = vmatpush.bf16.msra.mxu1 %v3160_v5  ;;  %3357 = vmatpush.bf16.msra.mxu2 %v3160_v5  ;;  %v2480_v23 = vld [vmem:[%s4736_s0 + $0xa0] sm:$0xf]  ;;  %v2660_v48 = vld [vmem:[%s4736_s0 + $0x208] sm:$0xf]  ;;  %v3105_v49 = vld [vmem:[%s4736_s0 + $0x218] sm:$0xf0] }
  0x17   :  { %1233 = vmatpush.bf16.msra.mxu0 %v3160_v5  ;;  %3358 = vmatpush.bf16.msra.mxu3 %v3160_v5  ;;  %v2460_v5 = vld [vmem:[%s4736_s0 + $0x78] sm:$0xf]  ;;  %v3182_v31 = vld [vmem:[%s4735_s1 + $0xc0] sm:$0xff]  ;;  %v3140_v51 = vld [vmem:[%s4736_s0 + $0x330] sm:$0xf0] }
  0x18   :  { %v2410_v33 = vld [vmem:[%s4736_s0 + $0x1c] sm:$0xf0]  ;;  %v2520_v52 = vld [vmem:[%s4736_s0 + $0xf0] sm:$0xf]  ;;  %v3070_v53 = vld [vmem:[%s4736_s0 + $0x100] sm:$0xf0] }
  0x19   :  { %v3190_v34 = vld [vmem:[%s4735_s1 + $0x100] sm:$0xff]  ;;  %v2413_v35 = vor.u32 %v3039_v32, %v2410_v33  ;;  %v2402_v61 = vld [vmem:[%s4736_s0 + $0x14] sm:$0xf0] }
  0x1a   :  { %3359 = vmatpush.bf16.msra.mxu1 %v3159_v6  ;;  %3360 = vmatpush.bf16.msra.mxu2 %v3159_v6  ;;  %v2640_v36 = vld [vmem:[%s4736_s0 + $0x1e0] sm:$0xf]  ;;  %v3038_v60 = vld [vmem:[%s4736_s0 + $0x4] sm:$0xf] }
  0x1b   :  { %1234 = vmatpush.bf16.msra.mxu0 %v3159_v6  ;;  %3361 = vmatpush.bf16.msra.mxu3 %v3159_v6  ;;  %v3055_v6 = vld [vmem:[%s4736_s0 + $0x88] sm:$0xf0]  ;;  %v2800_v50 = vld [vmem:[%s4736_s0 + $0x320] sm:$0xf] }
  0x1c   :  { %v2461_v9 = vor.u32 %v3055_v6, %v2460_v5  ;;  %v3054_v5 = vld [vmem:[%s4736_s0 + $0x84] sm:$0xf]  ;;  %v2470_v6 = vld [vmem:[%s4736_s0 + $0x94] sm:$0xf0] }
  0x1e   :  { %3362 = vmatpush.bf16.msra.mxu1 %v3158_v7  ;;  %3363 = vmatpush.bf16.msra.mxu2 %v3158_v7 }
  0x1f   :  { %1235 = vmatpush.bf16.msra.mxu0 %v3158_v7  ;;  %3364 = vmatpush.bf16.msra.mxu3 %v3158_v7  ;;  %v2601_v7 = vor.u32 %v3090_v2, %v2600_v1  ;;  %v3042_v1 = vld [vmem:[%s4736_s0 + $0x20] sm:$0xf0]  ;;  %v2405_v2 = vor.u32 %v3038_v60, %v2402_v61 }
  0x21   :  { %1271 = vmatmul.bf16.vlgmr.msra.gmra.mxu1 %v2541_v17  ;;  %1306 = vmatmul.bf16.vlgmr.msra.gmra.mxu2 %v2681_v18  ;;  %v3184_v17 = vld [vmem:[%s4735_s1 + $0xd0] sm:$0xff] }
  0x22   :  { %1494 = vmatpush.bf16.msrb.mxu2 %v3181_v12  ;;  %1361 = vmatpush.bf16.msrb.mxu1 %v3173_v15  ;;  %v3175_v12 = vld [vmem:[%s4735_s1 + $0x88] sm:$0xff] }
  0x23   :  { %1760 = vmatpush.bf16.msrb.mxu0 %v3197_v16  ;;  %1341 = vmatmul.bf16.vlgmr.msra.gmra.mxu3 %v2821_v26  ;;  %v3191_v15 = vld [vmem:[%s4735_s1 + $0x108] sm:$0xff]  ;;  %v733_v16 = vunpack.c.l.b16 %v263_v14 }
  0x24   :  { %1236 = vmatmul.bf16.vlgmr.msra.gmra.mxu0 %v2401_v19  ;;  %1627 = vmatpush.bf16.msrb.mxu3 %v3189_v40  ;;  %v2620_v19 = vld [vmem:[%s4736_s0 + $0x1b8] sm:$0xf]  ;;  %v2500_v40 = vld [vmem:[%s4736_s0 + $0xc8] sm:$0xf] }
  0x25   :  { %v858_v18 = vpack.c.b16 %v733_v16, %v733_v16 }
  0x26   :  { %1495 = vmatpush.bf16.msrb.mxu2 %v3180_v20  ;;  %1362 = vmatpush.bf16.msrb.mxu1 %v3172_v21  ;;  %v3095_v20 = vld [vmem:[%s4736_s0 + $0x1c8] sm:$0xf0]  ;;  %v2760_v21 = vld [vmem:[%s4736_s0 + $0x2d0] sm:$0xf] }
  0x27   :  { %1761 = vmatpush.bf16.msrb.mxu0 %v3196_v22  ;;  %v3130_v22 = vld [vmem:[%s4736_s0 + $0x2e0] sm:$0xf0] }
  0x28   :  { %1628 = vmatpush.bf16.msrb.mxu3 %v3188_v46  ;;  %v2761_v26 = vor.u32 %v3130_v22, %v2760_v21  ;;  %v2430_v46 = vld [vmem:[%s4736_s0 + $0x44] sm:$0xf0]  ;;  %v3059_v22 = vld [vmem:[%s4736_s0 + $0xac] sm:$0xf] }
  0x2a   :  { %1496 = vmatpush.bf16.msrb.mxu2 %v3179_v25  ;;  %1363 = vmatpush.bf16.msrb.mxu1 %v3171_v27  ;;  %v2621_v25 = vor.u32 %v3095_v20, %v2620_v19  ;;  %v2481_v27 = vor.u32 %v3060_v24, %v2480_v23  ;;  %v2490_v23 = vld [vmem:[%s4736_s0 + $0xbc] sm:$0xf0] }
  0x2b   :  { %1762 = vmatpush.bf16.msrb.mxu0 %v3195_v28  ;;  %v3174_v28 = vld [vmem:[%s4735_s1 + $0x80] sm:$0xff]  ;;  %v2493_v24 = vor.u32 %v3059_v22, %v2490_v23 }
  0x2c   :  { %1629 = vmatpush.bf16.msrb.mxu3 %v3187_v57  ;;  %v3049_v57 = vld [vmem:[%s4736_s0 + $0x5c] sm:$0xf]  ;;  %v3074_v23 = vld [vmem:[%s4736_s0 + $0x124] sm:$0xf] }
  0x2e   :  { %1497 = vmatpush.bf16.msrb.mxu2 %v3178_v29  ;;  %1364 = vmatpush.bf16.msrb.mxu1 %v3170_v30  ;;  %v3183_v29 = vld [vmem:[%s4735_s1 + $0xc8] sm:$0xff]  ;;  %v3166_v30 = vld [vmem:[%s4735_s1 + $0x40] sm:$0xff] }
  0x2f   :  { %1763 = vmatpush.bf16.msrb.mxu0 %v3194_v41  ;;  %v3065_v41 = vld [vmem:[%s4736_s0 + $0xd8] sm:$0xf0] }
  0x30   :  { %1630 = vmatpush.bf16.msrb.mxu3 %v3186_v0  ;;  %v2501_v44 = vor.u32 %v3065_v41, %v2500_v40  ;;  %v2416_v0 = vld [vmem:[%s4736_s0 + $0x10] sm:$0xf] }
  0x31   :  { %1276 = vmatmul.bf16.gmra.mxu1 %v2561_v37  ;;  %1311 = vmatmul.bf16.gmra.mxu2 %v2701_v38  ;;  %v3100_v37 = vld [vmem:[%s4736_s0 + $0x1f0] sm:$0xf0]  ;;  %v2780_v38 = vld [vmem:[%s4736_s0 + $0x2f8] sm:$0xf]  ;;  %v2417_v4 = vor.u32 %v3042_v1, %v2416_v0  ;;  %v3058_v1 = vld [vmem:[%s4736_s0 + $0xa4] sm:$0xf] }
  0x32   :  { %1498 = vmatpush.bf16.msrb.mxu2 %v3177_v42  ;;  %1365 = vmatpush.bf16.msrb.mxu1 %v3169_v47  ;;  %v2641_v42 = vor.u32 %v3100_v37, %v2640_v36 }
  0x33   :  { %1346 = vmatmul.bf16.gmra.mxu3 %v2841_v45  ;;  %1764 = vmatpush.bf16.msrb.mxu0 %v3193_v58  ;;  %v3044_v45 = vld [vmem:[%s4736_s0 + $0x34] sm:$0xf]  ;;  %v2450_v58 = vld [vmem:[%s4736_s0 + $0x6c] sm:$0xf0] }
  0x34   :  { %1241 = vmatmul.bf16.gmra.mxu0 %v2421_v39  ;;  %1631 = vmatpush.bf16.msrb.mxu3 %v3185_v11  ;;  %v3135_v39 = vld [vmem:[%s4736_s0 + $0x308] sm:$0xf0]  ;;  %v2433_v47 = vor.u32 %v3044_v45, %v2430_v46  ;;  %v3046_v11 = vld [vmem:[%s4736_s0 + $0x40] sm:$0xf0]  ;;  %v3053_v45 = vld [vmem:[%s4736_s0 + $0x7c] sm:$0xf] }
  0x35   :  { %v2781_v43 = vor.u32 %v3135_v39, %v2780_v38  ;;  %v2462_v46 = vld [vmem:[%s4736_s0 + $0x8c] sm:$0xf0] }
  0x36   :  { %1499 = vmatpush.bf16.msrb.mxu2 %v3176_v59  ;;  %1366 = vmatpush.bf16.msrb.mxu1 %v3168_v62  ;;  %v2453_v59 = vor.u32 %v3049_v57, %v2450_v58  ;;  %v2408_v62 = vld [vmem:[%s4736_s0 + $0x8] sm:$0xf] }
  0x37   :  { %1765 = vmatpush.bf16.msrb.mxu0 %v3192_v10  ;;  %v2428_v10 = vld [vmem:[%s4736_s0 + $0x30] sm:$0xf] }
  0x38   :  { %1632 = vmatpush.bf16.msrb.mxu3 %v3184_v17 }
  0x3a   :  { %1500 = vmatpush.bf16.msrb.mxu2 %v3175_v12  ;;  %1367 = vmatpush.bf16.msrb.mxu1 %v3167_v13  ;;  %v2436_v12 = vld [vmem:[%s4736_s0 + $0x38] sm:$0xf]  ;;  %v3047_v13 = vld [vmem:[%s4736_s0 + $0x48] sm:$0xf0] }
  0x3b   :  { %1766 = vmatpush.bf16.msrb.mxu0 %v3191_v15  ;;  %v2429_v15 = vor.u32 %v3046_v11, %v2428_v10  ;;  %v2437_v17 = vor.u32 %v3047_v13, %v2436_v12 }
  0x3c   :  { %1633 = vmatpush.bf16.msrb.mxu3 %v3183_v29  ;;  %v2456_v29 = vld [vmem:[%s4736_s0 + $0x60] sm:$0xf] }
  0x3e   :  { %1501 = vmatpush.bf16.msrb.mxu2 %v3174_v28  ;;  %1368 = vmatpush.bf16.msrb.mxu1 %v3166_v30  ;;  %v3051_v28 = vld [vmem:[%s4736_s0 + $0x68] sm:$0xf0]  ;;  %v3052_v30 = vld [vmem:[%s4736_s0 + $0x70] sm:$0xf0] }
  0x3f   :  { %1767 = vmatpush.bf16.msrb.mxu0 %v3190_v34 }
  0x40   :  { %1634 = vmatpush.bf16.msrb.mxu3 %v3182_v31 }
  0x41   :  { %1281 = vmatmul.bf16.gmra.mxu1 %v2581_v54  ;;  %1316 = vmatmul.bf16.gmra.mxu2 %v2721_v55  ;;  %v2661_v54 = vor.u32 %v3105_v49, %v2660_v48  ;;  %v2801_v55 = vor.u32 %v3140_v51, %v2800_v50  ;;  %v3056_v48 = vld [vmem:[%s4736_s0 + $0x90] sm:$0xf0]  ;;  %v2476_v49 = vld [vmem:[%s4736_s0 + $0x88] sm:$0xf]  ;;  %v3057_v50 = vld [vmem:[%s4736_s0 + $0x98] sm:$0xf0] }
  0x43   :  { %1351 = vmatmul.bf16.gmra.mxu3 %v2861_v63  ;;  %v3041_v63 = vld [vmem:[%s4736_s0 + $0x18] sm:$0xf0] }
  0x44   :  { %1246 = vmatmul.bf16.gmra.mxu0 %v2441_v56  ;;  %v2521_v56 = vor.u32 %v3070_v53, %v2520_v52  ;;  %v2409_v3 = vor.u32 %v3041_v63, %v2408_v62  ;;  %v2465_v52 = vor.u32 %v3053_v45, %v2462_v46  ;;  %v3069_v62 = vld [vmem:[%s4736_s0 + $0xfc] sm:$0xf]  ;;  %v2530_v63 = vld [vmem:[%s4736_s0 + $0x10c] sm:$0xf0] }
  0x45   :  { %v2533_v0 = vor.u32 %v3069_v62, %v2530_v63  ;;  %v3068_v62 = vld [vmem:[%s4736_s0 + $0xf4] sm:$0xf]  ;;  %v2522_v63 = vld [vmem:[%s4736_s0 + $0x104] sm:$0xf0] }
  0x51   :  { %1286 = vmatmul.bf16.gmra.mxu1 %v2601_v7  ;;  %1321 = vmatmul.bf16.gmra.mxu2 %v2741_v8  ;;  %v2473_v7 = vor.u32 %v3054_v5, %v2470_v6  ;;  %v3043_v8 = vld [vmem:[%s4736_s0 + $0x2c] sm:$0xf]  ;;  %v2496_v5 = vld [vmem:[%s4736_s0 + $0xb0] sm:$0xf]  ;;  %v3062_v6 = vld [vmem:[%s4736_s0 + $0xc0] sm:$0xf0] }
  0x52   :  { %v2497_v11 = vor.u32 %v3062_v6, %v2496_v5  ;;  %v2525_v5 = vor.u32 %v3068_v62, %v2522_v63 }
  0x53   :  { %1356 = vmatmul.bf16.gmra.mxu3 %v858_v18 }
  0x54   :  { %1251 = vmatmul.bf16.gmra.mxu0 %v2461_v9  ;;  %v2422_v9 = vld [vmem:[%s4736_s0 + $0x3c] sm:$0xf0] }
  0x55   :  { %v2425_v14 = vor.u32 %v3043_v8, %v2422_v9 }
  0x61   :  { %1291 = vmatmul.bf16.gmra.mxu1 %v2621_v25  ;;  %1326 = vmatmul.bf16.gmra.mxu2 %v2761_v26  ;;  %v3048_v25 = vld [vmem:[%s4736_s0 + $0x54] sm:$0xf]  ;;  %v2442_v26 = vld [vmem:[%s4736_s0 + $0x64] sm:$0xf0] }
  0x62   :  { %v2445_v32 = vor.u32 %v3048_v25, %v2442_v26  ;;  %v3063_v26 = vld [vmem:[%s4736_s0 + $0xcc] sm:$0xf] }
  0x63   :  { %1635 = vmatmul.bf16.vlgmr.msrb.gmra.mxu3 %v2413_v35  ;;  %v2457_v35 = vor.u32 %v3052_v30, %v2456_v29  ;;  %v3066_v29 = vld [vmem:[%s4736_s0 + $0xe0] sm:$0xf0]  ;;  %v2516_v30 = vld [vmem:[%s4736_s0 + $0xd8] sm:$0xf] }
  0x64   :  { %1256 = vmatmul.bf16.gmra.mxu0 %v2481_v27  ;;  %v2448_v27 = vld [vmem:[%s4736_s0 + $0x58] sm:$0xf] }
  0x65   :  { %v2449_v33 = vor.u32 %v3051_v28, %v2448_v27  ;;  %v2502_v27 = vld [vmem:[%s4736_s0 + $0xdc] sm:$0xf0]  ;;  %v2508_v28 = vld [vmem:[%s4736_s0 + $0xd0] sm:$0xf] }
  0x71   :  { %1296 = vmatmul.bf16.gmra.mxu1 %v2641_v42  ;;  %1331 = vmatmul.bf16.gmra.mxu2 %v2781_v43  ;;  %v3064_v42 = vld [vmem:[%s4736_s0 + $0xd4] sm:$0xf]  ;;  %v2510_v43 = vld [vmem:[%s4736_s0 + $0xe4] sm:$0xf0] }
  0x73   :  { %1640 = vmatmul.bf16.gmra.mxu3 %v2433_v47  ;;  %v2468_v47 = vld [vmem:[%s4736_s0 + $0x80] sm:$0xf] }
  0x74   :  { %1261 = vmatmul.bf16.gmra.mxu0 %v2501_v44  ;;  %v2513_v44 = vor.u32 %v3064_v42, %v2510_v43  ;;  %v2469_v53 = vor.u32 %v3056_v48, %v2468_v47  ;;  %v2509_v42 = vor.u32 %v3066_v29, %v2508_v28  ;;  %v3084_v28 = vld [vmem:[%s4736_s0 + $0x174] sm:$0xf]  ;;  %v2590_v29 = vld [vmem:[%s4736_s0 + $0x184] sm:$0xf0] }
  0x81   :  { %1301 = vmatmul.bf16.gmra.mxu1 %v2661_v54  ;;  %1336 = vmatmul.bf16.gmra.mxu2 %v2801_v55  ;;  %v2477_v55 = vor.u32 %v3057_v50, %v2476_v49 }
  0x83   :  { %1645 = vmatmul.bf16.gmra.mxu3 %v2453_v59 }
  0x84   :  { %1266 = vmatmul.bf16.gmra.mxu0 %v2521_v56 }
  0x91   :  { %1369 = vmatmul.bf16.vlgmr.msrb.gmra.mxu1 %v2405_v2  ;;  %1502 = vmatmul.bf16.vlgmr.msrb.gmra.mxu2 %v2409_v3  ;;  %v2482_v2 = vld [vmem:[%s4736_s0 + $0xb4] sm:$0xf0]  ;;  %v2488_v3 = vld [vmem:[%s4736_s0 + $0xa8] sm:$0xf] }
  0x92   :  { %v2485_v8 = vor.u32 %v3058_v1, %v2482_v2  ;;  %v3071_v1 = vld [vmem:[%s4736_s0 + $0x108] sm:$0xf0]  ;;  %v2536_v2 = vld [vmem:[%s4736_s0 + $0x100] sm:$0xf] }
  0x93   :  { %1650 = vmatmul.bf16.gmra.mxu3 %v2473_v7 }
  0x94   :  { %1768 = vmatmul.bf16.vlgmr.msrb.gmra.mxu0 %v2417_v4  ;;  %v3061_v4 = vld [vmem:[%s4736_s0 + $0xb8] sm:$0xf0] }
  0x95   :  { %v2489_v9 = vor.u32 %v3061_v4, %v2488_v3  ;;  %v3072_v3 = vld [vmem:[%s4736_s0 + $0x110] sm:$0xf0] }
  0x9e   :  { %v3722_v16 = vpop.f32.mrf.mxu1 }
  0xa1   :  { %v3724_v18 = vpop.f32.mrf.mxu0  ;;  %1374 = vmatmul.bf16.gmra.mxu1 %v2425_v14  ;;  %1507 = vmatmul.bf16.gmra.mxu2 %v2429_v15 }
  0xa3   :  { %1655 = vmatmul.bf16.gmra.mxu3 %v2493_v24  ;;  %v2550_v24 = vld [vmem:[%s4736_s0 + $0x134] sm:$0xf0] }
  0xa4   :  { %1773 = vmatmul.bf16.gmra.mxu0 %v2437_v17  ;;  %v3726_v19 = vpop.f32.mrf.mxu2  ;;  %v2553_v25 = vor.u32 %v3074_v23, %v2550_v24 }
  0xa6   :  { %v3728_v20 = vpop.f32.mrf.mxu1  ;;  %v3760_v36 = vpop.f32.mrf.mxu3 }
  0xa7   :  { %4740 = vst [vmem:[#allocation3_spill] sm:$0xff] %v3760_v36 }
  0xa9   :  { %v3730_v21 = vpop.f32.mrf.mxu0 }
  0xac   :  { %v3756_v31 = vpop.f32.mrf.mxu2 }
  0xae   :  { %v3758_v34 = vpop.f32.mrf.mxu1  ;;  %v3768_v40 = vpop.f32.mrf.mxu3 }
  0xaf   :  { %4741 = vst [vmem:[#allocation4_spill] sm:$0xff] %v3768_v40 }
  0xb1   :  { %v3762_v37 = vpop.f32.mrf.mxu0  ;;  %1379 = vmatmul.bf16.gmra.mxu1 %v2445_v32  ;;  %1512 = vmatmul.bf16.gmra.mxu2 %v2449_v33  ;;  %v3067_v32 = vld [vmem:[%s4736_s0 + $0xe8] sm:$0xf0] }
  0xb3   :  { %1660 = vmatmul.bf16.gmra.mxu3 %v2513_v44  ;;  %v2517_v44 = vor.u32 %v3067_v32, %v2516_v30  ;;  %v3073_v30 = vld [vmem:[%s4736_s0 + $0x11c] sm:$0xf]  ;;  %v2593_v32 = vor.u32 %v3084_v28, %v2590_v29  ;;  %v2610_v29 = vld [vmem:[%s4736_s0 + $0x1ac] sm:$0xf0] }
  0xb4   :  { %1778 = vmatmul.bf16.gmra.mxu0 %v2457_v35  ;;  %v3764_v38 = vpop.f32.mrf.mxu2  ;;  %v2505_v35 = vor.u32 %v3063_v26, %v2502_v27  ;;  %v3089_v28 = vld [vmem:[%s4736_s0 + $0x19c] sm:$0xf] }
  0xb6   :  { %v3766_v39 = vpop.f32.mrf.mxu1  ;;  %v3800_v56 = vpop.f32.mrf.mxu3 }
  0xb7   :  { %4742 = vst [vmem:[#allocation5_spill] sm:$0xff] %v3800_v56 }
  0xb9   :  { %v3770_v41 = vpop.f32.mrf.mxu0 }
  0xbc   :  { %v3796_v51 = vpop.f32.mrf.mxu2 }
  0xbe   :  { %v3798_v54 = vpop.f32.mrf.mxu1  ;;  %v3808_v60 = vpop.f32.mrf.mxu3 }
  0xbf   :  { %4743 = vst [vmem:[#allocation6_spill] sm:$0xff] %v3808_v60 }
  0xc1   :  { %v3802_v57 = vpop.f32.mrf.mxu0  ;;  %1384 = vmatmul.bf16.gmra.mxu1 %v2465_v52  ;;  %1517 = vmatmul.bf16.gmra.mxu2 %v2469_v53  ;;  %v3079_v52 = vld [vmem:[%s4736_s0 + $0x14c] sm:$0xf]  ;;  %v2570_v53 = vld [vmem:[%s4736_s0 + $0x15c] sm:$0xf0] }
  0xc3   :  { %1665 = vmatmul.bf16.gmra.mxu3 %v2533_v0  ;;  %v2528_v0 = vld [vmem:[%s4736_s0 + $0xf8] sm:$0xf] }
  0xc4   :  { %1783 = vmatmul.bf16.gmra.mxu0 %v2477_v55  ;;  %v3804_v58 = vpop.f32.mrf.mxu2  ;;  %v2573_v55 = vor.u32 %v3079_v52, %v2570_v53  ;;  %v2529_v6 = vor.u32 %v3071_v1, %v2528_v0  ;;  %v3077_v52 = vld [vmem:[%s4736_s0 + $0x138] sm:$0xf0] }
  0xc6   :  { %v3806_v59 = vpop.f32.mrf.mxu1  ;;  %v3840_v12 = vpop.f32.mrf.mxu3 }
  0xc7   :  { %4744 = vst [vmem:[#allocation7_spill] sm:$0xff] %v3840_v12 }
  0xc9   :  { %v3810_v61 = vpop.f32.mrf.mxu0 }
  0xcc   :  { %v3836_v7 = vpop.f32.mrf.mxu2 }
  0xce   :  { %v3838_v10 = vpop.f32.mrf.mxu1  ;;  %v3848_v17 = vpop.f32.mrf.mxu3 }
  0xcf   :  { %4745 = vst [vmem:[#allocation8_spill] sm:$0xff] %v3848_v17 }
  0xd1   :  { %v3842_v13 = vpop.f32.mrf.mxu0  ;;  %1389 = vmatmul.bf16.gmra.mxu1 %v2485_v8  ;;  %1522 = vmatmul.bf16.gmra.mxu2 %v2489_v9  ;;  %v2537_v9 = vor.u32 %v3072_v3, %v2536_v2 }
  0xd3   :  { %1670 = vmatmul.bf16.gmra.mxu3 %v2553_v25 }
  0xd4   :  { %1788 = vmatmul.bf16.gmra.mxu0 %v2497_v11  ;;  %v3844_v14 = vpop.f32.mrf.mxu2 }
  0xd6   :  { %v3846_v15 = vpop.f32.mrf.mxu1  ;;  %v3880_v45 = vpop.f32.mrf.mxu3 }
  0xd7   :  { %4746 = vst [vmem:[#allocation9_spill] sm:$0xff] %v3880_v45 }
  0xd9   :  { %v3850_v22 = vpop.f32.mrf.mxu0 }
  0xdc   :  { %v3876_v33 = vpop.f32.mrf.mxu2 }
  0xde   :  { %v3878_v43 = vpop.f32.mrf.mxu1  ;;  %v1359_v49 = vpop.f32.mrf.mxu3 }
  0xdf   :  { %v2556_v49 = vld [vmem:[%s4736_s0 + $0x128] sm:$0xf] }
  0xe0   :  { %v2557_v0 = vor.u32 %v3077_v52, %v2556_v49  ;;  %v2576_v49 = vld [vmem:[%s4736_s0 + $0x150] sm:$0xf]  ;;  %v3082_v52 = vld [vmem:[%s4736_s0 + $0x160] sm:$0xf0] }
  0xe1   :  { %v3882_v46 = vpop.f32.mrf.mxu0  ;;  %1394 = vmatmul.bf16.gmra.mxu1 %v2505_v35  ;;  %1527 = vmatmul.bf16.gmra.mxu2 %v2509_v42  ;;  %v2542_v35 = vld [vmem:[%s4736_s0 + $0x12c] sm:$0xf0]  ;;  %v2548_v42 = vld [vmem:[%s4736_s0 + $0x120] sm:$0xf] }
  0xe3   :  { %1675 = vmatmul.bf16.gmra.mxu3 %v2573_v55  ;;  %v2545_v55 = vor.u32 %v3073_v30, %v2542_v35  ;;  %v3078_v30 = vld [vmem:[%s4736_s0 + $0x144] sm:$0xf]  ;;  %v2562_v35 = vld [vmem:[%s4736_s0 + $0x154] sm:$0xf0] }
  0xe4   :  { %1793 = vmatmul.bf16.gmra.mxu0 %v2517_v44  ;;  %v3884_v47 = vpop.f32.mrf.mxu2  ;;  %v3076_v44 = vld [vmem:[%s4736_s0 + $0x130] sm:$0xf0] }
  0xe5   :  { %v2549_v62 = vor.u32 %v3076_v44, %v2548_v42  ;;  %v2568_v42 = vld [vmem:[%s4736_s0 + $0x148] sm:$0xf]  ;;  %v3081_v44 = vld [vmem:[%s4736_s0 + $0x158] sm:$0xf0] }
  0xe6   :  { %v3886_v48 = vpop.f32.mrf.mxu1  ;;  %v1636_v11 = vpop.f32.mrf.mxu3 }
  0xe9   :  { %v3888_v50 = vpop.f32.mrf.mxu0 }
  0xec   :  { %v3914_v4 = vpop.f32.mrf.mxu2 }
  0xed   :  { %4747 = vst [vmem:[#allocation10_spill] sm:$0xff] %v3914_v4 }
  0xee   :  { %v3916_v8 = vpop.f32.mrf.mxu1  ;;  %v3924_v26 = vpop.f32.mrf.mxu3 }
  0xf1   :  { %v3918_v23 = vpop.f32.mrf.mxu0  ;;  %1399 = vmatmul.bf16.gmra.mxu1 %v2525_v5  ;;  %1532 = vmatmul.bf16.gmra.mxu2 %v2529_v6 }
  0xf3   :  { %1680 = vmatmul.bf16.gmra.mxu3 %v2593_v32  ;;  %v2613_v32 = vor.u32 %v3089_v28, %v2610_v29  ;;  %v2577_v29 = vor.u32 %v3082_v52, %v2576_v49  ;;  %v2596_v49 = vld [vmem:[%s4736_s0 + $0x178] sm:$0xf]  ;;  %v3087_v52 = vld [vmem:[%s4736_s0 + $0x188] sm:$0xf0] }
  0xf4   :  { %1798 = vmatmul.bf16.gmra.mxu0 %v2537_v9  ;;  %v3920_v24 = vpop.f32.mrf.mxu2 }
  0xf5   :  { %4748 = vst [vmem:[#allocation11_spill] sm:$0xff] %v3920_v24 }
  0xf6   :  { %v3922_v25 = vpop.f32.mrf.mxu1  ;;  %v3956_v1 = vpop.f32.mrf.mxu3 }
  0xf9   :  { %v3926_v27 = vpop.f32.mrf.mxu0 }
  0xfc   :  { %v3952_v53 = vpop.f32.mrf.mxu2 }
  0xfd   :  { %4749 = vst [vmem:[#allocation12_spill] sm:$0xff] %v3952_v53 }
  0xfe   :  { %v3954_v63 = vpop.f32.mrf.mxu1  ;;  %v3964_v6 = vpop.f32.mrf.mxu3 }
 0x101   :  { %v3958_v2 = vpop.f32.mrf.mxu0  ;;  %1404 = vmatmul.bf16.gmra.mxu1 %v2545_v55  ;;  %1537 = vmatmul.bf16.gmra.mxu2 %v2549_v62  ;;  %v2565_v62 = vor.u32 %v3078_v30, %v2562_v35  ;;  %v3094_v30 = vld [vmem:[%s4736_s0 + $0x1c4] sm:$0xf]  ;;  %v2630_v35 = vld [vmem:[%s4736_s0 + $0x1d4] sm:$0xf0] }
 0x103   :  { %1685 = vmatmul.bf16.gmra.mxu3 %v2613_v32 }
 0x104   :  { %1803 = vmatmul.bf16.gmra.mxu0 %v2557_v0  ;;  %v3960_v3 = vpop.f32.mrf.mxu2  ;;  %v2569_v0 = vor.u32 %v3081_v44, %v2568_v42 }
 0x105   :  { %4750 = vst [vmem:[#allocation13_spill] sm:$0xff] %v3960_v3 }
 0x106   :  { %v3962_v5 = vpop.f32.mrf.mxu1  ;;  %v3994_v45 = vpop.f32.mrf.mxu3 }
 0x109   :  { %v3966_v9 = vpop.f32.mrf.mxu0 }
 0x10c   :  { %v3992_v55 = vpop.f32.mrf.mxu2 }
 0x10d   :  { %4751 = vst [vmem:[#allocation14_spill] sm:$0xff] %v3992_v55 }
 0x10e   :  { %v1370_v28 = vpop.f32.mrf.mxu1  ;;  %v3997_v36 = vpop.f32.mrf.mxu3 }
 0x10f   :  { %v1371_v12 = vadd.f32 %v1370_v28, %v3724_v18  ;;  %v4008_v18 = vld [vmem:[%s4737_s2] ss:$0 sm:$0xff] }
 0x110   :  { %v4033_v28 = vld [vmem:[%s4738_s3] ss:$0 sm:$0xff] }
 0x111   :  { %v1769_v17 = vpop.f32.mrf.mxu0  ;;  %1409 = vmatmul.bf16.gmra.mxu1 %v2565_v62  ;;  %1542 = vmatmul.bf16.gmra.mxu2 %v2569_v0 }
 0x114   :  { %1808 = vmatmul.bf16.gmra.mxu0 %v2577_v29  ;;  %v1503_v60 = vpop.f32.mrf.mxu2 }
 0x115   :  { %v1504_v56 = vadd.f32 %v1503_v60, %v1371_v12  ;;  %v3083_v60 = vld [vmem:[%s4736_s0 + $0x16c] sm:$0xf]  ;;  %v2582_v12 = vld [vmem:[%s4736_s0 + $0x17c] sm:$0xf0] }
 0x116   :  { %v1372_v40 = vpop.f32.mrf.mxu1 }
 0x117   :  { %v1637_v32 = vadd.f32 %v1636_v11, %v1504_v56  ;;  %v2633_v56 = vor.u32 %v3094_v30, %v2630_v35  ;;  %v2588_v11 = vld [vmem:[%s4736_s0 + $0x170] sm:$0xf]  ;;  %v1373_v44 = vadd.f32 %v1372_v40, %v3730_v21  ;;  %v2597_v30 = vor.u32 %v3087_v52, %v2596_v49  ;;  %v4035_v35 = vpop.f32.mrf.mxu3 }
 0x119   :  { %v1771_v3 = vpop.f32.mrf.mxu0  ;;  %v1770_v42 = vadd.f32 %v1769_v17, %v1637_v32  ;;  %v3086_v17 = vld [vmem:[%s4736_s0 + $0x180] sm:$0xf0]  ;;  %1690 = vmatmul.bf16.gmra.mxu3 %v2633_v56  ;;  %v2585_v32 = vor.u32 %v3083_v60, %v2582_v12 }
 0x11a   :  { %v2589_v21 = vor.u32 %v3086_v17, %v2588_v11 }
 0x11b   :  { %v2047_v0 = vmul.f32 %v4008_v18, %v1770_v42 }
 0x11c   :  { %v1505_v62 = vpop.f32.mrf.mxu2 }
 0x11d   :  { %v1506_v29 = vadd.f32 %v1505_v62, %v1373_v44  ;;  %v2100_v56 = vadd.f32 %v4033_v28, %v2047_v0  ;;  %v3088_v0 = vld [vmem:[%s4736_s0 + $0x194] sm:$0xf] }
 0x11e   :  { %v1375_v40 = vpop.f32.mrf.mxu1 }
 0x11f   :  { %v1639_v55 = vadd.f32 %v3924_v26, %v1506_v29  ;;  %v1376_v4 = vadd.f32 %v1375_v40, %v3762_v37  ;;  %v2198_v60 = vmul.f32 0.1, %v2100_v56  ;;  %vm2149_vm0 = vcmp.ge.f32.partialorder %v2100_v56, 0.0  ;;  %v4042_v49 = vpop.f32.mrf.mxu3  ;;  %v2650_v37 = vld [vmem:[%s4736_s0 + $0x1fc] sm:$0xf0] }
 0x120   :  { %v3091_v40 = vld [vmem:[%s4736_s0 + $0x1a8] sm:$0xf0] }
 0x121   :  { %v1774_v53 = vpop.f32.mrf.mxu0  ;;  %v1772_v24 = vadd.f32 %v1771_v3, %v1639_v55  ;;  %1414 = vmatmul.bf16.gmra.mxu1 %v2585_v32  ;;  %1547 = vmatmul.bf16.gmra.mxu2 %v2589_v21  ;;  %v2247_v52 = vsel %vm2149_vm0, %v2100_v56, %v2198_v60  ;;  %v2608_v21 = vld [vmem:[%s4736_s0 + $0x198] sm:$0xf]  ;;  %v3092_v56 = vld [vmem:[%s4736_s0 + $0x1b0] sm:$0xf0] }
 0x123   :  { %v2048_v42 = vmul.f32 %v4008_v18, %v1772_v24  ;;  %v3099_v24 = vld [vmem:[%s4736_s0 + $0x1ec] sm:$0xf] }
 0x124   :  { %1813 = vmatmul.bf16.gmra.mxu0 %v2597_v30  ;;  %v1508_v44 = vpop.f32.mrf.mxu2  ;;  %v2653_v29 = vor.u32 %v3099_v24, %v2650_v37  ;;  %v2616_v30 = vld [vmem:[%s4736_s0 + $0x1a0] sm:$0xf] }
 0x125   :  { %v2101_v12 = vadd.f32 %v4033_v28, %v2048_v42  ;;  %v1509_v11 = vadd.f32 %v1508_v44, %v1376_v4 }
 0x126   :  { %v1377_v17 = vpop.f32.mrf.mxu1 }
 0x127   :  { %vm2150_vm1 = vcmp.ge.f32.partialorder %v2101_v12, 0.0  ;;  %v2199_v26 = vmul.f32 0.1, %v2101_v12  ;;  %v1642_v3 = vadd.f32 %v3956_v1, %v1509_v11  ;;  %v2602_v1 = vld [vmem:[%s4736_s0 + $0x1a4] sm:$0xf0]  ;;  %v2609_v11 = vor.u32 %v3091_v40, %v2608_v21 }
 0x129   :  { %v1776_v55 = vpop.f32.mrf.mxu0  ;;  %v2248_v62 = vsel %vm2150_vm1, %v2101_v12, %v2199_v26  ;;  %v1775_v4 = vadd.f32 %v1774_v53, %v1642_v3  ;;  %v1378_v53 = vadd.f32 %v1377_v17, %v3770_v41  ;;  %1695 = vmatmul.bf16.gmra.mxu3 %v2653_v29  ;;  %v2605_v12 = vor.u32 %v3088_v0, %v2602_v1  ;;  %v4074_v26 = vpop.f32.mrf.mxu3 }
 0x12a   :  { %v3201_v32 = vpack.c.bf16 %v2248_v62, %v2247_v52  ;;  %v2617_v17 = vor.u32 %v3092_v56, %v2616_v30  ;;  %v3104_v30 = vld [vmem:[%s4736_s0 + $0x214] sm:$0xf] }
 0x12b   :  { %v2049_v44 = vmul.f32 %v4008_v18, %v1775_v4 }
 0x12c   :  { %3202 = vst [vmem:[%s4739_s4] sm:$0xff] %v3201_v32   ;;  %v1510_v42 = vpop.f32.mrf.mxu2 }
 0x12d   :  { %v1511_v60 = vadd.f32 %v1510_v42, %v1378_v53  ;;  %v2102_v37 = vadd.f32 %v4033_v28, %v2049_v44 }
 0x12e   :  { %v1380_v41 = vpop.f32.mrf.mxu1 }
 0x12f   :  { %v1644_v3 = vadd.f32 %v3964_v6, %v1511_v60  ;;  %v1381_v4 = vadd.f32 %v1380_v41, %v3802_v57  ;;  %v2200_v0 = vmul.f32 0.1, %v2102_v37  ;;  %vm2151_vm2 = vcmp.ge.f32.partialorder %v2102_v37, 0.0  ;;  %v2670_v57 = vld [vmem:[%s4736_s0 + $0x224] sm:$0xf0] }
 0x130   :  { %v3093_v60 = vld [vmem:[%s4736_s0 + $0x1bc] sm:$0xf]  ;;  %v2628_v41 = vld [vmem:[%s4736_s0 + $0x1c0] sm:$0xf] }
 0x131   :  { %v1779_v24 = vpop.f32.mrf.mxu0  ;;  %v1777_v52 = vadd.f32 %v1776_v55, %v1644_v3  ;;  %1419 = vmatmul.bf16.gmra.mxu1 %v2605_v12  ;;  %1552 = vmatmul.bf16.gmra.mxu2 %v2609_v11  ;;  %v4081_v40 = vpop.f32.mrf.mxu3  ;;  %v2249_v56 = vsel %vm2151_vm2, %v2102_v37, %v2200_v0  ;;  %v2673_v12 = vor.u32 %v3104_v30, %v2670_v57  ;;  %v3097_v37 = vld [vmem:[%s4736_s0 + $0x1d8] sm:$0xf0] }
 0x133   :  { %v2050_v62 = vmul.f32 %v4008_v18, %v1777_v52 }
 0x134   :  { %1818 = vmatmul.bf16.gmra.mxu0 %v2617_v17  ;;  %v1513_v29 = vpop.f32.mrf.mxu2  ;;  %v3096_v17 = vld [vmem:[%s4736_s0 + $0x1d0] sm:$0xf0] }
 0x135   :  { %v2103_v32 = vadd.f32 %v4033_v28, %v2050_v62  ;;  %v1514_v1 = vadd.f32 %v1513_v29, %v1381_v4  ;;  %v2629_v0 = vor.u32 %v3096_v17, %v2628_v41  ;;  %v3109_v17 = vld [vmem:[%s4736_s0 + $0x23c] sm:$0xf] }
 0x136   :  { %v1382_v21 = vpop.f32.mrf.mxu1 }
 0x137   :  { %vm2152_vm3 = vcmp.ge.f32.partialorder %v2103_v32, 0.0  ;;  %v2201_v6 = vmul.f32 0.1, %v2103_v32  ;;  %v1647_v55 = vadd.f32 %v3994_v45, %v1514_v1  ;;  %v2622_v45 = vld [vmem:[%s4736_s0 + $0x1cc] sm:$0xf0]  ;;  %v1383_v3 = vadd.f32 %v1382_v21, %v3810_v61 }
 0x138   :  { %v2625_v29 = vor.u32 %v3093_v60, %v2622_v45 }
 0x139   :  { %v1781_v53 = vpop.f32.mrf.mxu0  ;;  %v2250_v42 = vsel %vm2152_vm3, %v2103_v32, %v2201_v6  ;;  %v1780_v44 = vadd.f32 %v1779_v24, %v1647_v55  ;;  %v2636_v24 = vld [vmem:[%s4736_s0 + $0x1c8] sm:$0xf]  ;;  %1700 = vmatmul.bf16.gmra.mxu3 %v2673_v12  ;;  %v4113_v1 = vpop.f32.mrf.mxu3 }
 0x13a   :  { %v3206_v11 = vpack.c.bf16 %v2250_v42, %v2249_v56  ;;  %v2637_v32 = vor.u32 %v3097_v37, %v2636_v24 }
 0x13b   :  { %v2051_v62 = vmul.f32 %v4008_v18, %v1780_v44 }
 0x13c   :  { %3318 = vst [vmem:[%s4739_s4 + $0x8] sm:$0xff] %v3206_v11   ;;  %v1515_v52 = vpop.f32.mrf.mxu2 }
 0x13d   :  { %v1516_v4 = vadd.f32 %v1515_v52, %v1383_v3  ;;  %v2104_v55 = vadd.f32 %v4033_v28, %v2051_v62  ;;  %v3098_v52 = vld [vmem:[%s4736_s0 + $0x1e4] sm:$0xf] }
 0x13e   :  { %v1385_v61 = vpop.f32.mrf.mxu1 }
 0x13f   :  { %v1649_v21 = vadd.f32 %v3997_v36, %v1516_v4  ;;  %v1386_v56 = vadd.f32 %v1385_v61, %v3842_v13  ;;  %v2202_v44 = vmul.f32 0.1, %v2104_v55  ;;  %vm2153_vm4 = vcmp.ge.f32.partialorder %v2104_v55, 0.0  ;;  %v2690_v13 = vld [vmem:[%s4736_s0 + $0x24c] sm:$0xf0] }
 0x140   :  { %v2693_v62 = vor.u32 %v3109_v17, %v2690_v13 }
 0x141   :  { %v1784_v6 = vpop.f32.mrf.mxu0  ;;  %v1782_v30 = vadd.f32 %v1781_v53, %v1649_v21  ;;  %1424 = vmatmul.bf16.gmra.mxu1 %v2625_v29  ;;  %1557 = vmatmul.bf16.gmra.mxu2 %v2629_v0  ;;  %v4120_v45 = vpop.f32.mrf.mxu3  ;;  %v2251_v3 = vsel %vm2153_vm4, %v2104_v55, %v2202_v44  ;;  %v2648_v29 = vld [vmem:[%s4736_s0 + $0x1e8] sm:$0xf]  ;;  %v3101_v0 = vld [vmem:[%s4736_s0 + $0x1f8] sm:$0xf0]  ;;  %v3102_v21 = vld [vmem:[%s4736_s0 + $0x200] sm:$0xf0] }
 0x143   :  { %v2052_v57 = vmul.f32 %v4008_v18, %v1782_v30 }
 0x144   :  { %1823 = vmatmul.bf16.gmra.mxu0 %v2637_v32  ;;  %v1518_v42 = vpop.f32.mrf.mxu2  ;;  %v2656_v32 = vld [vmem:[%s4736_s0 + $0x1f0] sm:$0xf] }
 0x145   :  { %v2105_v60 = vadd.f32 %v4033_v28, %v2052_v57  ;;  %v1519_v12 = vadd.f32 %v1518_v42, %v1386_v56  ;;  %v2649_v56 = vor.u32 %v3101_v0, %v2648_v29  ;;  %v2657_v42 = vor.u32 %v3102_v21, %v2656_v32  ;;  %v3103_v32 = vld [vmem:[%s4736_s0 + $0x20c] sm:$0xf] }
 0x146   :  { %v1387_v11 = vpop.f32.mrf.mxu1 }
 0x147   :  { %vm2154_vm5 = vcmp.ge.f32.partialorder %v2105_v60, 0.0  ;;  %v2203_v36 = vmul.f32 0.1, %v2105_v60  ;;  %v1652_v53 = vadd.f32 %v4035_v35, %v1519_v12  ;;  %v2642_v35 = vld [vmem:[%s4736_s0 + $0x1f4] sm:$0xf0]  ;;  %v1388_v61 = vadd.f32 %v1387_v11, %v3850_v22 }
 0x148   :  { %v2645_v57 = vor.u32 %v3098_v52, %v2642_v35  ;;  %v3114_v35 = vld [vmem:[%s4736_s0 + $0x264] sm:$0xf] }
 0x149   :  { %v1786_v41 = vpop.f32.mrf.mxu0  ;;  %v2252_v24 = vsel %vm2154_vm5, %v2105_v60, %v2203_v36  ;;  %v1785_v37 = vadd.f32 %v1784_v6, %v1652_v53  ;;  %1705 = vmatmul.bf16.gmra.mxu3 %v2693_v62  ;;  %v4152_v44 = vpop.f32.mrf.mxu3 }
 0x14a   :  { %v3211_v4 = vpack.c.bf16 %v2252_v24, %v2251_v3 }
 0x14b   :  { %v2053_v55 = vmul.f32 %v4008_v18, %v1785_v37 }
 0x14c   :  { %3319 = vst [vmem:[%s4739_s4 + $0x10] sm:$0xff] %v3211_v4   ;;  %v1520_v6 = vpop.f32.mrf.mxu2 }
 0x14d   :  { %v1521_v30 = vadd.f32 %v1520_v6, %v1388_v61  ;;  %v2106_v11 = vadd.f32 %v4033_v28, %v2053_v55  ;;  %v2668_v55 = vld [vmem:[%s4736_s0 + $0x210] sm:$0xf] }
 0x14e   :  { %v1390_v22 = vpop.f32.mrf.mxu1 }
 0x14f   :  { %v1654_v60 = vadd.f32 %v4042_v49, %v1521_v30  ;;  %v1391_v17 = vadd.f32 %v1390_v22, %v3882_v46  ;;  %v2204_v3 = vmul.f32 0.1, %v2106_v11  ;;  %vm2155_vm6 = vcmp.ge.f32.partialorder %v2106_v11, 0.0  ;;  %v2710_v46 = vld [vmem:[%s4736_s0 + $0x274] sm:$0xf0] }
 0x150   :  { %v2713_v21 = vor.u32 %v3114_v35, %v2710_v46  ;;  %v3106_v30 = vld [vmem:[%s4736_s0 + $0x220] sm:$0xf0]  ;;  %v3107_v22 = vld [vmem:[%s4736_s0 + $0x228] sm:$0xf0] }
 0x151   :  { %v1789_v12 = vpop.f32.mrf.mxu0  ;;  %v1787_v36 = vadd.f32 %v1786_v41, %v1654_v60  ;;  %1429 = vmatmul.bf16.gmra.mxu1 %v2645_v57  ;;  %1562 = vmatmul.bf16.gmra.mxu2 %v2649_v56  ;;  %v4159_v62 = vpop.f32.mrf.mxu3  ;;  %v2253_v29 = vsel %vm2155_vm6, %v2106_v11, %v2204_v3  ;;  %v2676_v56 = vld [vmem:[%s4736_s0 + $0x218] sm:$0xf] }
 0x153   :  { %v2054_v53 = vmul.f32 %v4008_v18, %v1787_v36  ;;  %v2669_v36 = vor.u32 %v3106_v30, %v2668_v55  ;;  %v3108_v30 = vld [vmem:[%s4736_s0 + $0x234] sm:$0xf] }
 0x154   :  { %1828 = vmatmul.bf16.gmra.mxu0 %v2657_v42  ;;  %v1523_v13 = vpop.f32.mrf.mxu2 }
 0x155   :  { %v2107_v24 = vadd.f32 %v4033_v28, %v2054_v53  ;;  %v1524_v37 = vadd.f32 %v1523_v13, %v1391_v17  ;;  %v2677_v53 = vor.u32 %v3107_v22, %v2676_v56  ;;  %v2688_v22 = vld [vmem:[%s4736_s0 + $0x238] sm:$0xf] }
 0x156   :  { %v1392_v52 = vpop.f32.mrf.mxu1 }
 0x157   :  { %vm2156_vm7 = vcmp.ge.f32.partialorder %v2107_v24, 0.0  ;;  %v2205_v49 = vmul.f32 0.1, %v2107_v24  ;;  %v1657_v41 = vadd.f32 %v4074_v26, %v1524_v37  ;;  %v2662_v26 = vld [vmem:[%s4736_s0 + $0x21c] sm:$0xf0]  ;;  %v1393_v57 = vadd.f32 %v1392_v52, %v3888_v50 }
 0x158   :  { %v2665_v11 = vor.u32 %v3103_v32, %v2662_v26 }
 0x159   :  { %v1791_v4 = vpop.f32.mrf.mxu0  ;;  %v2254_v0 = vsel %vm2156_vm7, %v2107_v24, %v2205_v49  ;;  %v1790_v61 = vadd.f32 %v1789_v12, %v1657_v41  ;;  %1710 = vmatmul.bf16.gmra.mxu3 %v2713_v21  ;;  %v4191_v17 = vpop.f32.mrf.mxu3  ;;  %v3119_v21 = vld [vmem:[%s4736_s0 + $0x28c] sm:$0xf] }
 0x15a   :  { %v3216_v6 = vpack.c.bf16 %v2254_v0, %v2253_v29 }
 0x15b   :  { %v2055_v60 = vmul.f32 %v4008_v18, %v1790_v61 }
 0x15c   :  { %3320 = vst [vmem:[%s4739_s4 + $0x18] sm:$0xff] %v3216_v6   ;;  %v1525_v42 = vpop.f32.mrf.mxu2 }
 0x15d   :  { %v1526_v12 = vadd.f32 %v1525_v42, %v1393_v57  ;;  %v2108_v24 = vadd.f32 %v4033_v28, %v2055_v60  ;;  %v3111_v42 = vld [vmem:[%s4736_s0 + $0x248] sm:$0xf0] }
 0x15e   :  { %v1395_v50 = vpop.f32.mrf.mxu1 }
 0x15f   :  { %v1659_v13 = vadd.f32 %v4081_v40, %v1526_v12  ;;  %v1396_v49 = vadd.f32 %v1395_v50, %v3918_v23  ;;  %v2206_v35 = vmul.f32 0.1, %v2108_v24  ;;  %vm2157_vm8 = vcmp.ge.f32.partialorder %v2108_v24, 0.0  ;;  %v2730_v23 = vld [vmem:[%s4736_s0 + $0x29c] sm:$0xf0] }
 0x160   :  { %v2733_v57 = vor.u32 %v3119_v21, %v2730_v23  ;;  %v2696_v12 = vld [vmem:[%s4736_s0 + $0x240] sm:$0xf] }
 0x161   :  { %v1794_v3 = vpop.f32.mrf.mxu0  ;;  %v1792_v37 = vadd.f32 %v1791_v4, %v1659_v13  ;;  %1434 = vmatmul.bf16.gmra.mxu1 %v2665_v11  ;;  %1567 = vmatmul.bf16.gmra.mxu2 %v2669_v36  ;;  %v4198_v61 = vpop.f32.mrf.mxu3  ;;  %v2255_v6 = vsel %vm2157_vm8, %v2108_v24, %v2206_v35  ;;  %v3112_v11 = vld [vmem:[%s4736_s0 + $0x250] sm:$0xf0] }
 0x162   :  { %v2697_v24 = vor.u32 %v3112_v11, %v2696_v12  ;;  %v3116_v12 = vld [vmem:[%s4736_s0 + $0x270] sm:$0xf0] }
 0x163   :  { %v2056_v52 = vmul.f32 %v4008_v18, %v1792_v37 }
 0x164   :  { %1833 = vmatmul.bf16.gmra.mxu0 %v2677_v53  ;;  %v1528_v41 = vpop.f32.mrf.mxu2 }
 0x165   :  { %v2109_v46 = vadd.f32 %v4033_v28, %v2056_v52  ;;  %v1529_v29 = vadd.f32 %v1528_v41, %v1396_v49 }
 0x166   :  { %v1397_v0 = vpop.f32.mrf.mxu1 }
 0x167   :  { %vm2158_vm9 = vcmp.ge.f32.partialorder %v2109_v46, 0.0  ;;  %v2207_v40 = vmul.f32 0.1, %v2109_v46  ;;  %v1662_v4 = vadd.f32 %v4113_v1, %v1529_v29  ;;  %v2682_v1 = vld [vmem:[%s4736_s0 + $0x244] sm:$0xf0]  ;;  %v1398_v60 = vadd.f32 %v1397_v0, %v3926_v27 }
 0x168   :  { %v2685_v13 = vor.u32 %v3108_v30, %v2682_v1  ;;  %v3113_v1 = vld [vmem:[%s4736_s0 + $0x25c] sm:$0xf] }
 0x169   :  { %v1796_v32 = vpop.f32.mrf.mxu0  ;;  %v2256_v26 = vsel %vm2158_vm9, %v2109_v46, %v2207_v40  ;;  %v1795_v55 = vadd.f32 %v1794_v3, %v1662_v4  ;;  %1715 = vmatmul.bf16.gmra.mxu3 %v2733_v57  ;;  %v2689_v3 = vor.u32 %v3111_v42, %v2688_v22  ;;  %v4230_v37 = vpop.f32.mrf.mxu3 }
 0x16a   :  { %v3221_v56 = vpack.c.bf16 %v2256_v26, %v2255_v6 }
 0x16b   :  { %v2057_v50 = vmul.f32 %v4008_v18, %v1795_v55  ;;  %v3124_v55 = vld [vmem:[%s4736_s0 + $0x2b4] sm:$0xf] }
 0x16c   :  { %3321 = vst [vmem:[%s4739_s4 + $0x20] sm:$0xff] %v3221_v56   ;;  %v1530_v36 = vpop.f32.mrf.mxu2 }
 0x16d   :  { %v1531_v53 = vadd.f32 %v1530_v36, %v1398_v60  ;;  %v2110_v41 = vadd.f32 %v4033_v28, %v2057_v50  ;;  %v2708_v60 = vld [vmem:[%s4736_s0 + $0x260] sm:$0xf]  ;;  %v2716_v36 = vld [vmem:[%s4736_s0 + $0x268] sm:$0xf]  ;;  %v3117_v50 = vld [vmem:[%s4736_s0 + $0x278] sm:$0xf0] }
 0x16e   :  { %v1400_v27 = vpop.f32.mrf.mxu1 }
 0x16f   :  { %v1664_v52 = vadd.f32 %v4120_v45, %v1531_v53  ;;  %v1401_v29 = vadd.f32 %v1400_v27, %v3958_v2  ;;  %v2208_v40 = vmul.f32 0.1, %v2110_v41  ;;  %vm2159_vm10 = vcmp.ge.f32.partialorder %v2110_v41, 0.0  ;;  %v2750_v2 = vld [vmem:[%s4736_s0 + $0x2c4] sm:$0xf0] }
 0x170   :  { %v2753_v22 = vor.u32 %v3124_v55, %v2750_v2 }
 0x171   :  { %v1799_v49 = vpop.f32.mrf.mxu0  ;;  %v1797_v35 = vadd.f32 %v1796_v32, %v1664_v52  ;;  %1439 = vmatmul.bf16.gmra.mxu1 %v2685_v13  ;;  %1572 = vmatmul.bf16.gmra.mxu2 %v2689_v3  ;;  %v4237_v6 = vpop.f32.mrf.mxu3  ;;  %v2257_v30 = vsel %vm2159_vm10, %v2110_v41, %v2208_v40  ;;  %v2717_v52 = vor.u32 %v3117_v50, %v2716_v36  ;;  %v2736_v36 = vld [vmem:[%s4736_s0 + $0x290] sm:$0xf]  ;;  %v3122_v50 = vld [vmem:[%s4736_s0 + $0x2a0] sm:$0xf0] }
 0x173   :  { %v2058_v46 = vmul.f32 %v4008_v18, %v1797_v35 }
 0x174   :  { %1838 = vmatmul.bf16.gmra.mxu0 %v2697_v24  ;;  %v1533_v0 = vpop.f32.mrf.mxu2  ;;  %v2709_v24 = vor.u32 %v3116_v12, %v2708_v60  ;;  %v2728_v60 = vld [vmem:[%s4736_s0 + $0x288] sm:$0xf]  ;;  %v3121_v12 = vld [vmem:[%s4736_s0 + $0x298] sm:$0xf0] }
 0x175   :  { %v2111_v4 = vadd.f32 %v4033_v28, %v2058_v46  ;;  %v1534_v21 = vadd.f32 %v1533_v0, %v1401_v29 }
 0x176   :  { %v1402_v23 = vpop.f32.mrf.mxu1 }
 0x177   :  { %vm2160_vm11 = vcmp.ge.f32.partialorder %v2111_v4, 0.0  ;;  %v2209_v45 = vmul.f32 0.1, %v2111_v4  ;;  %v1667_v32 = vadd.f32 %v4152_v44, %v1534_v21  ;;  %v2702_v44 = vld [vmem:[%s4736_s0 + $0x26c] sm:$0xf0]  ;;  %v1403_v11 = vadd.f32 %v1402_v23, %v3966_v9 }
 0x178   :  { %v2705_v27 = vor.u32 %v3113_v1, %v2702_v44 }
 0x179   :  { %v1801_v26 = vpop.f32.mrf.mxu0  ;;  %v2258_v57 = vsel %vm2160_vm11, %v2111_v4, %v2209_v45  ;;  %v1800_v56 = vadd.f32 %v1799_v49, %v1667_v32  ;;  %1720 = vmatmul.bf16.gmra.mxu3 %v2753_v22  ;;  %v4269_v49 = vpop.f32.mrf.mxu3  ;;  %v3118_v22 = vld [vmem:[%s4736_s0 + $0x284] sm:$0xf] }
 0x17a   :  { %v3226_v42 = vpack.c.bf16 %v2258_v57, %v2257_v30  ;;  %v3129_v30 = vld [vmem:[%s4736_s0 + $0x2dc] sm:$0xf] }
 0x17b   :  { %v2059_v13 = vmul.f32 %v4008_v18, %v1800_v56 }
 0x17c   :  { %3322 = vst [vmem:[%s4739_s4 + $0x28] sm:$0xff] %v3226_v42   ;;  %v1535_v53 = vpop.f32.mrf.mxu2 }
 0x17d   :  { %v1536_v3 = vadd.f32 %v1535_v53, %v1403_v11  ;;  %v2112_v46 = vadd.f32 %v4033_v28, %v2059_v13 }
 0x17e   :  { %v1405_v9 = vpop.f32.mrf.mxu1 }
 0x17f   :  { %v1669_v41 = vadd.f32 %v4159_v62, %v1536_v3  ;;  %v1406_v40 = vadd.f32 %v1405_v9, %v3722_v16  ;;  %v2210_v21 = vmul.f32 0.1, %v2112_v46  ;;  %vm2161_vm12 = vcmp.ge.f32.partialorder %v2112_v46, 0.0  ;;  %v2770_v16 = vld [vmem:[%s4736_s0 + $0x2ec] sm:$0xf0] }
 0x180   :  { %v2773_v42 = vor.u32 %v3129_v30, %v2770_v16  ;;  %v2737_v9 = vor.u32 %v3122_v50, %v2736_v36  ;;  %v3134_v30 = vld [vmem:[%s4736_s0 + $0x304] sm:$0xf] }
 0x181   :  { %v1804_v35 = vpop.f32.mrf.mxu0  ;;  %v1802_v29 = vadd.f32 %v1801_v26, %v1669_v41  ;;  %1444 = vmatmul.bf16.gmra.mxu1 %v2705_v27  ;;  %1577 = vmatmul.bf16.gmra.mxu2 %v2709_v24  ;;  %v4276_v55 = vpop.f32.mrf.mxu3  ;;  %v2259_v57 = vsel %vm2161_vm12, %v2112_v46, %v2210_v21  ;;  %v2729_v24 = vor.u32 %v3121_v12, %v2728_v60  ;;  %v2756_v12 = vld [vmem:[%s4736_s0 + $0x2b8] sm:$0xf] }
 0x183   :  { %v2060_v0 = vmul.f32 %v4008_v18, %v1802_v29 }
 0x184   :  { %1843 = vmatmul.bf16.gmra.mxu0 %v2717_v52  ;;  %v1538_v4 = vpop.f32.mrf.mxu2 }
 0x185   :  { %v2113_v23 = vadd.f32 %v4033_v28, %v2060_v0  ;;  %v1539_v45 = vadd.f32 %v1538_v4, %v1406_v40 }
 0x186   :  { %v1407_v32 = vpop.f32.mrf.mxu1 }
 0x187   :  { %vm2162_vm13 = vcmp.ge.f32.partialorder %v2113_v23, 0.0  ;;  %v2211_v62 = vmul.f32 0.1, %v2113_v23  ;;  %v1672_v26 = vadd.f32 %v4191_v17, %v1539_v45  ;;  %v2722_v17 = vld [vmem:[%s4736_s0 + $0x294] sm:$0xf0]  ;;  %v1408_v11 = vadd.f32 %v1407_v32, %v3728_v20 }
 0x188   :  { %v2725_v27 = vor.u32 %v3118_v22, %v2722_v17  ;;  %v3126_v17 = vld [vmem:[%s4736_s0 + $0x2c0] sm:$0xf0] }
 0x189   :  { %v1806_v2 = vpop.f32.mrf.mxu0  ;;  %v2260_v56 = vsel %vm2162_vm13, %v2113_v23, %v2211_v62  ;;  %v1805_v1 = vadd.f32 %v1804_v35, %v1672_v26  ;;  %1725 = vmatmul.bf16.gmra.mxu3 %v2773_v42  ;;  %v4308_v52 = vpop.f32.mrf.mxu3 }
 0x18a   :  { %v3231_v44 = vpack.c.bf16 %v2260_v56, %v2259_v57 }
 0x18b   :  { %v2061_v13 = vmul.f32 %v4008_v18, %v1805_v1  ;;  %v3123_v1 = vld [vmem:[%s4736_s0 + $0x2ac] sm:$0xf] }
 0x18c   :  { %3323 = vst [vmem:[%s4739_s4 + $0x30] sm:$0xff] %v3231_v44   ;;  %v1540_v53 = vpop.f32.mrf.mxu2  ;;  %v2748_v44 = vld [vmem:[%s4736_s0 + $0x2b0] sm:$0xf] }
 0x18d   :  { %v1541_v3 = vadd.f32 %v1540_v53, %v1408_v11  ;;  %v2114_v46 = vadd.f32 %v4033_v28, %v2061_v13  ;;  %v3127_v11 = vld [vmem:[%s4736_s0 + $0x2c8] sm:$0xf0] }
 0x18e   :  { %v1410_v20 = vpop.f32.mrf.mxu1 }
 0x18f   :  { %v1674_v41 = vadd.f32 %v4198_v61, %v1541_v3  ;;  %v1411_v40 = vadd.f32 %v1410_v20, %v3758_v34  ;;  %v2212_v21 = vmul.f32 0.1, %v2114_v46  ;;  %vm2163_vm14 = vcmp.ge.f32.partialorder %v2114_v46, 0.0  ;;  %v2790_v34 = vld [vmem:[%s4736_s0 + $0x314] sm:$0xf0] }
 0x190   :  { %v2793_v22 = vor.u32 %v3134_v30, %v2790_v34  ;;  %v2749_v3 = vor.u32 %v3126_v17, %v2748_v44  ;;  %v3132_v44 = vld [vmem:[%s4736_s0 + $0x2f0] sm:$0xf0] }
 0x191   :  { %v1809_v35 = vpop.f32.mrf.mxu0  ;;  %v1807_v29 = vadd.f32 %v1806_v2, %v1674_v41  ;;  %1449 = vmatmul.bf16.gmra.mxu1 %v2725_v27  ;;  %1582 = vmatmul.bf16.gmra.mxu2 %v2729_v24  ;;  %v4315_v62 = vpop.f32.mrf.mxu3  ;;  %v2261_v16 = vsel %vm2163_vm14, %v2114_v46, %v2212_v21  ;;  %v2757_v27 = vor.u32 %v3127_v11, %v2756_v12 }
 0x193   :  { %v2062_v0 = vmul.f32 %v4008_v18, %v1807_v29 }
 0x194   :  { %1848 = vmatmul.bf16.gmra.mxu0 %v2737_v9  ;;  %v1543_v4 = vpop.f32.mrf.mxu2 }
 0x195   :  { %v2115_v23 = vadd.f32 %v4033_v28, %v2062_v0  ;;  %v1544_v45 = vadd.f32 %v1543_v4, %v1411_v40 }
 0x196   :  { %v1412_v32 = vpop.f32.mrf.mxu1 }
 0x197   :  { %vm2164_vm15 = vcmp.ge.f32.partialorder %v2115_v23, 0.0  ;;  %v2213_v61 = vmul.f32 0.1, %v2115_v23  ;;  %v1677_v26 = vadd.f32 %v4230_v37, %v1544_v45  ;;  %v2742_v37 = vld [vmem:[%s4736_s0 + $0x2bc] sm:$0xf0]  ;;  %v1413_v60 = vadd.f32 %v1412_v32, %v3766_v39 }
 0x198   :  { %v2745_v13 = vor.u32 %v3123_v1, %v2742_v37  ;;  %v2768_v1 = vld [vmem:[%s4736_s0 + $0x2d8] sm:$0xf]  ;;  %v2776_v37 = vld [vmem:[%s4736_s0 + $0x2e0] sm:$0xf] }
 0x199   :  { %v1811_v2 = vpop.f32.mrf.mxu0  ;;  %v2262_v57 = vsel %vm2164_vm15, %v2115_v23, %v2213_v61  ;;  %v1810_v56 = vadd.f32 %v1809_v35, %v1677_v26  ;;  %1730 = vmatmul.bf16.gmra.mxu3 %v2793_v22  ;;  %v3139_v26 = vld [vmem:[%s4736_s0 + $0x32c] sm:$0xf] }
 0x19a   :  { %v3236_v42 = vpack.c.bf16 %v2262_v57, %v2261_v16  ;;  %v3128_v16 = vld [vmem:[%s4736_s0 + $0x2d4] sm:$0xf]  ;;  %v3131_v22 = vld [vmem:[%s4736_s0 + $0x2e8] sm:$0xf0] }
 0x19b   :  { %v2063_v50 = vmul.f32 %v4008_v18, %v1810_v56 }
 0x19c   :  { %3324 = vst [vmem:[%s4739_s4 + $0x38] sm:$0xff] %v3236_v42   ;;  %v1545_v36 = vpop.f32.mrf.mxu2  ;;  %v4347_v24 = vpop.f32.mrf.mxu3 }
 0x19d   :  { %v1546_v53 = vadd.f32 %v1545_v36, %v1413_v60  ;;  %v2116_v41 = vadd.f32 %v4033_v28, %v2063_v50  ;;  %v2769_v36 = vor.u32 %v3131_v22, %v2768_v1  ;;  %v2777_v50 = vor.u32 %v3132_v44, %v2776_v37 }
 0x19e   :  { %v1415_v39 = vpop.f32.mrf.mxu1 }
 0x19f   :  { %v1679_v20 = vadd.f32 %v4237_v6, %v1546_v53  ;;  %v1416_v29 = vadd.f32 %v1415_v39, %v3798_v54  ;;  %v2214_v40 = vmul.f32 0.1, %v2116_v41  ;;  %vm2165_vm0 = vcmp.ge.f32.partialorder %v2116_v41, 0.0  ;;  %v2810_v54 = vld [vmem:[%s4736_s0 + $0x33c] sm:$0xf0] }
 0x1a0   :  { %v2813_v57 = vor.u32 %v3139_v26, %v2810_v54  ;;  %v3133_v26 = vld [vmem:[%s4736_s0 + $0x2fc] sm:$0xf] }
 0x1a1   :  { %v1814_v9 = vpop.f32.mrf.mxu0  ;;  %v1812_v35 = vadd.f32 %v1811_v2, %v1679_v20  ;;  %1454 = vmatmul.bf16.gmra.mxu1 %v2745_v13  ;;  %1587 = vmatmul.bf16.gmra.mxu2 %v2749_v3  ;;  %v2263_v2 = vsel %vm2165_vm0, %v2116_v41, %v2214_v40 }
 0x1a3   :  { %v2064_v46 = vmul.f32 %v4008_v18, %v1812_v35 }
 0x1a4   :  { %1853 = vmatmul.bf16.gmra.mxu0 %v2757_v27  ;;  %v1548_v0 = vpop.f32.mrf.mxu2  ;;  %v4354_v45 = vpop.f32.mrf.mxu3 }
 0x1a5   :  { %v2117_v4 = vadd.f32 %v4033_v28, %v2064_v46  ;;  %v1549_v21 = vadd.f32 %v1548_v0, %v1416_v29 }
 0x1a6   :  { %v1417_v23 = vpop.f32.mrf.mxu1 }
 0x1a7   :  { %vm2166_vm1 = vcmp.ge.f32.partialorder %v2117_v4, 0.0  ;;  %v2215_v6 = vmul.f32 0.1, %v2117_v4  ;;  %v1682_v32 = vadd.f32 %v4269_v49, %v1549_v21  ;;  %v2762_v49 = vld [vmem:[%s4736_s0 + $0x2e4] sm:$0xf0]  ;;  %v1418_v42 = vadd.f32 %v1417_v23, %v3806_v59 }
 0x1a8   :  { %v2765_v11 = vor.u32 %v3128_v16, %v2762_v49  ;;  %v3144_v23 = vld [vmem:[%s4736_s0 + $0x354] sm:$0xf] }
 0x1a9   :  { %v1816_v61 = vpop.f32.mrf.mxu0  ;;  %v2264_v30 = vsel %vm2166_vm1, %v2117_v4, %v2215_v6  ;;  %v1815_v34 = vadd.f32 %v1814_v9, %v1682_v32  ;;  %1735 = vmatmul.bf16.gmra.mxu3 %v2813_v57  ;;  %v2796_v57 = vld [vmem:[%s4736_s0 + $0x308] sm:$0xf] }
 0x1aa   :  { %v3241_v56 = vpack.c.bf16 %v2264_v30, %v2263_v2  ;;  %v2788_v30 = vld [vmem:[%s4736_s0 + $0x300] sm:$0xf] }
 0x1ab   :  { %v2065_v60 = vmul.f32 %v4008_v18, %v1815_v34  ;;  %v3136_v34 = vld [vmem:[%s4736_s0 + $0x310] sm:$0xf0] }
 0x1ac   :  { %3325 = vst [vmem:[%s4739_s4 + $0x40] sm:$0xff] %v3241_v56   ;;  %v1550_v17 = vpop.f32.mrf.mxu2  ;;  %v4386_v53 = vpop.f32.mrf.mxu3  ;;  %v3137_v56 = vld [vmem:[%s4736_s0 + $0x318] sm:$0xf0]  ;;  %v2789_v37 = vor.u32 %v3136_v34, %v2788_v30 }
 0x1ad   :  { %v1551_v12 = vadd.f32 %v1550_v17, %v1418_v42  ;;  %v2118_v39 = vadd.f32 %v4033_v28, %v2065_v60  ;;  %v2797_v44 = vor.u32 %v3137_v56, %v2796_v57 }
 0x1ae   :  { %v1420_v59 = vpop.f32.mrf.mxu1 }
 0x1af   :  { %v1684_v13 = vadd.f32 %v4276_v55, %v1551_v12  ;;  %v1421_v9 = vadd.f32 %v1420_v59, %v3838_v10  ;;  %v2216_v35 = vmul.f32 0.1, %v2118_v39  ;;  %vm2167_vm2 = vcmp.ge.f32.partialorder %v2118_v39, 0.0  ;;  %v2830_v10 = vld [vmem:[%s4736_s0 + $0x364] sm:$0xf0] }
 0x1b0   :  { %v2833_v54 = vor.u32 %v3144_v23, %v2830_v10  ;;  %v2808_v10 = vld [vmem:[%s4736_s0 + $0x328] sm:$0xf] }
 0x1b1   :  { %v1819_v3 = vpop.f32.mrf.mxu0  ;;  %v1817_v27 = vadd.f32 %v1816_v61, %v1684_v13  ;;  %1459 = vmatmul.bf16.gmra.mxu1 %v2765_v11  ;;  %1592 = vmatmul.bf16.gmra.mxu2 %v2769_v36  ;;  %v2265_v6 = vsel %vm2167_vm2, %v2118_v39, %v2216_v35 }
 0x1b3   :  { %v2066_v20 = vmul.f32 %v4008_v18, %v1817_v27 }
 0x1b4   :  { %1858 = vmatmul.bf16.gmra.mxu0 %v2777_v50  ;;  %v1553_v41 = vpop.f32.mrf.mxu2  ;;  %v4393_v40 = vpop.f32.mrf.mxu3 }
 0x1b5   :  { %v2119_v46 = vadd.f32 %v4033_v28, %v2066_v20  ;;  %v1554_v29 = vadd.f32 %v1553_v41, %v1421_v9 }
 0x1b6   :  { %v1422_v0 = vpop.f32.mrf.mxu1 }
 0x1b7   :  { %vm2168_vm3 = vcmp.ge.f32.partialorder %v2119_v46, 0.0  ;;  %v2217_v55 = vmul.f32 0.1, %v2119_v46  ;;  %v1687_v4 = vadd.f32 %v4308_v52, %v1554_v29  ;;  %v2782_v52 = vld [vmem:[%s4736_s0 + $0x30c] sm:$0xf0]  ;;  %v1423_v16 = vadd.f32 %v1422_v0, %v3846_v15 }
 0x1b8   :  { %v2785_v42 = vor.u32 %v3133_v26, %v2782_v52  ;;  %v3142_v26 = vld [vmem:[%s4736_s0 + $0x340] sm:$0xf0] }
 0x1b9   :  { %v1821_v21 = vpop.f32.mrf.mxu0  ;;  %v2266_v32 = vsel %vm2168_vm3, %v2119_v46, %v2217_v55  ;;  %v1820_v61 = vadd.f32 %v1819_v3, %v1687_v4  ;;  %1740 = vmatmul.bf16.gmra.mxu3 %v2833_v54  ;;  %v3149_v46 = vld [vmem:[%s4736_s0 + $0x37c] sm:$0xf]  ;;  %v3138_v4 = vld [vmem:[%s4736_s0 + $0x324] sm:$0xf] }
 0x1ba   :  { %v3246_v2 = vpack.c.bf16 %v2266_v32, %v2265_v6  ;;  %v3141_v6 = vld [vmem:[%s4736_s0 + $0x338] sm:$0xf0] }
 0x1bb   :  { %v2067_v1 = vmul.f32 %v4008_v18, %v1820_v61  ;;  %v2816_v61 = vld [vmem:[%s4736_s0 + $0x330] sm:$0xf]  ;;  %v2809_v34 = vor.u32 %v3141_v6, %v2808_v10 }
 0x1bc   :  { %3326 = vst [vmem:[%s4739_s4 + $0x48] sm:$0xff] %v3246_v2   ;;  %v1555_v49 = vpop.f32.mrf.mxu2  ;;  %v4425_v17 = vpop.f32.mrf.mxu3 }
 0x1bd   :  { %v1556_v22 = vadd.f32 %v1555_v49, %v1423_v16  ;;  %v2120_v11 = vadd.f32 %v4033_v28, %v2067_v1  ;;  %v2817_v16 = vor.u32 %v3142_v26, %v2816_v61  ;;  %v4514_v61 = vld [vmem:[%s4738_s3] ss:$0 sm:$0xff] }
 0x1be   :  { %v1425_v15 = vpop.f32.mrf.mxu1 }
 0x1bf   :  { %v1689_v60 = vadd.f32 %v4315_v62, %v1556_v22  ;;  %v1426_v50 = vadd.f32 %v1425_v15, %v3878_v43  ;;  %v2218_v3 = vmul.f32 0.1, %v2120_v11  ;;  %vm2169_vm4 = vcmp.ge.f32.partialorder %v2120_v11, 0.0  ;;  %v2850_v43 = vld [vmem:[%s4736_s0 + $0x38c] sm:$0xf0] }
 0x1c1   :  { %v1824_v12 = vpop.f32.mrf.mxu0  ;;  %v1822_v36 = vadd.f32 %v1821_v21, %v1689_v60  ;;  %1464 = vmatmul.bf16.gmra.mxu1 %v2785_v42  ;;  %1597 = vmatmul.bf16.gmra.mxu2 %v2789_v37  ;;  %v2267_v29 = vsel %vm2169_vm4, %v2120_v11, %v2218_v3  ;;  %v2853_v21 = vor.u32 %v3149_v46, %v2850_v43  ;;  %v2836_v46 = vld [vmem:[%s4736_s0 + $0x358] sm:$0xf]  ;;  %v3147_v43 = vld [vmem:[%s4736_s0 + $0x368] sm:$0xf0] }
 0x1c3   :  { %v2068_v59 = vmul.f32 %v4008_v18, %v1822_v36 }
 0x1c4   :  { %1863 = vmatmul.bf16.gmra.mxu0 %v2797_v44  ;;  %v1558_v13 = vpop.f32.mrf.mxu2  ;;  %v4432_v9 = vpop.f32.mrf.mxu3 }
 0x1c5   :  { %v2121_v39 = vadd.f32 %v4033_v28, %v2068_v59  ;;  %v1559_v27 = vadd.f32 %v1558_v13, %v1426_v50 }
 0x1c6   :  { %v1427_v20 = vpop.f32.mrf.mxu1 }
 0x1c7   :  { %vm2170_vm5 = vcmp.ge.f32.partialorder %v2121_v39, 0.0  ;;  %v2219_v62 = vmul.f32 0.1, %v2121_v39  ;;  %v1692_v41 = vadd.f32 %v4347_v24, %v1559_v27  ;;  %v2802_v24 = vld [vmem:[%s4736_s0 + $0x334] sm:$0xf0]  ;;  %v1428_v32 = vadd.f32 %v1427_v20, %v3886_v48 }
 0x1c8   :  { %v2805_v30 = vor.u32 %v3138_v4, %v2802_v24  ;;  %v2837_v24 = vor.u32 %v3147_v43, %v2836_v46 }
 0x1c9   :  { %v1826_v35 = vpop.f32.mrf.mxu0  ;;  %v2268_v0 = vsel %vm2170_vm5, %v2121_v39, %v2219_v62  ;;  %v1825_v55 = vadd.f32 %v1824_v12, %v1692_v41  ;;  %1745 = vmatmul.bf16.gmra.mxu3 %v2853_v21  ;;  %v3143_v39 = vld [vmem:[%s4736_s0 + $0x34c] sm:$0xf]  ;;  %v2828_v62 = vld [vmem:[%s4736_s0 + $0x350] sm:$0xf]  ;;  %v3146_v41 = vld [vmem:[%s4736_s0 + $0x360] sm:$0xf0] }
 0x1ca   :  { %v3251_v23 = vpack.c.bf16 %v2268_v0, %v2267_v29  ;;  %v4505_v0 = vld [vmem:[%s4737_s2] ss:$0 sm:$0xff]  ;;  %v2829_v21 = vor.u32 %v3146_v41, %v2828_v62 }
 0x1cb   :  { %v2069_v2 = vmul.f32 %v4008_v18, %v1825_v55 }
 0x1cc   :  { %3327 = vst [vmem:[%s4739_s4 + $0x50] sm:$0xff] %v3251_v23   ;;  %v1560_v54 = vpop.f32.mrf.mxu2  ;;  %v4464_v57 = vpop.f32.mrf.mxu3 }
 0x1cd   :  { %v1561_v52 = vadd.f32 %v1560_v54, %v1428_v32  ;;  %v2122_v1 = vadd.f32 %v4033_v28, %v2069_v2 }
 0x1ce   :  { %v1430_v48 = vpop.f32.mrf.mxu1 }
 0x1cf   :  { %v1694_v56 = vadd.f32 %v4354_v45, %v1561_v52  ;;  %v1431_v37 = vadd.f32 %v1430_v48, %v3916_v8  ;;  %v2220_v44 = vmul.f32 0.1, %v2122_v1  ;;  %vm2171_vm6 = vcmp.ge.f32.partialorder %v2122_v1, 0.0  ;;  %v2870_v8 = vld [vmem:[%s4736_s0 + $0x3b4] sm:$0xf0] }
 0x1d1   :  { %v1829_v49 = vpop.f32.mrf.mxu0  ;;  %v1827_v22 = vadd.f32 %v1826_v35, %v1694_v56  ;;  %1469 = vmatmul.bf16.gmra.mxu1 %v2805_v30  ;;  %1602 = vmatmul.bf16.gmra.mxu2 %v2809_v34  ;;  %v2269_v13 = vsel %vm2171_vm6, %v2122_v1, %v2220_v44 }
 0x1d3   :  { %v2070_v42 = vmul.f32 %v4008_v18, %v1827_v22  ;;  %v3154_v18 = vld [vmem:[%s4736_s0 + $0x3a4] sm:$0xf] }
 0x1d4   :  { %1868 = vmatmul.bf16.gmra.mxu0 %v2817_v16  ;;  %v1563_v15 = vpop.f32.mrf.mxu2  ;;  %v4471_v36 = vpop.f32.mrf.mxu3  ;;  %v2873_v27 = vor.u32 %v3154_v18, %v2870_v8  ;;  %v2856_v18 = vld [vmem:[%s4736_s0 + $0x380] sm:$0xf]  ;;  %v3152_v8 = vld [vmem:[%s4736_s0 + $0x390] sm:$0xf0] }
 0x1d5   :  { %v2123_v60 = vadd.f32 %v4033_v28, %v2070_v42  ;;  %v1564_v12 = vadd.f32 %v1563_v15, %v1431_v37 }
 0x1d6   :  { %v1432_v11 = vpop.f32.mrf.mxu1 }
 0x1d7   :  { %vm2172_vm7 = vcmp.ge.f32.partialorder %v2123_v60, 0.0  ;;  %v2221_v45 = vmul.f32 0.1, %v2123_v60  ;;  %v1697_v59 = vadd.f32 %v4386_v53, %v1564_v12  ;;  %v2822_v53 = vld [vmem:[%s4736_s0 + $0x35c] sm:$0xf0]  ;;  %v1433_v35 = vadd.f32 %v1432_v11, %v3922_v25 }
 0x1d8   :  { %v2825_v4 = vor.u32 %v3143_v39, %v2822_v53  ;;  %v2842_v11 = vld [vmem:[%s4736_s0 + $0x384] sm:$0xf0] }
 0x1d9   :  { %v1831_v50 = vpop.f32.mrf.mxu0  ;;  %v2270_v28 = vsel %vm2172_vm7, %v2123_v60, %v2221_v45  ;;  %v1830_v3 = vadd.f32 %v1829_v49, %v1697_v59  ;;  %1750 = vmatmul.bf16.gmra.mxu3 %v2873_v27  ;;  %v4525_v49 = vld [vmem:[%s4736_s0 + $0x3c8] sm:$0xff]  ;;  %v3148_v60 = vld [vmem:[%s4736_s0 + $0x374] sm:$0xf]  ;;  %v2848_v45 = vld [vmem:[%s4736_s0 + $0x378] sm:$0xf] }
 0x1da   :  { %v3256_v20 = vpack.c.bf16 %v2270_v28, %v2269_v13  ;;  %v2845_v39 = vor.u32 %v3148_v60, %v2842_v11 }
 0x1db   :  { %v2071_v25 = vmul.f32 %v4505_v0, %v1830_v3 }
 0x1dc   :  { %3328 = vst [vmem:[%s4739_s4 + $0x58] sm:$0xff] %v3256_v20   ;;  %v1565_v29 = vpop.f32.mrf.mxu2  ;;  %v4508_v10 = vpop.f32.mrf.mxu3  ;;  %v2857_v20 = vor.u32 %v3152_v8, %v2856_v18 }
 0x1dd   :  { %v1566_v55 = vadd.f32 %v1565_v29, %v1433_v35  ;;  %v2124_v26 = vadd.f32 %v4514_v61, %v2071_v25 }
 0x1de   :  { %v1435_v23 = vpop.f32.mrf.mxu1 }
 0x1df   :  { %v1699_v6 = vadd.f32 %v4393_v40, %v1566_v55  ;;  %v1436_v52 = vadd.f32 %v1435_v23, %v3954_v63  ;;  %v2222_v34 = vmul.f32 0.1, %v2124_v26  ;;  %vm2173_vm8 = vcmp.ge.f32.partialorder %v2124_v26, 0.0 }
 0x1e0   :  { %v736_v63 = vunpack.c.h.b16 %v4525_v49 }
 0x1e1   :  { %v1834_v32 = vpop.f32.mrf.mxu0  ;;  %v1832_v54 = vadd.f32 %v1831_v50, %v1699_v6  ;;  %1474 = vmatmul.bf16.gmra.mxu1 %v2825_v4  ;;  %1607 = vmatmul.bf16.gmra.mxu2 %v2829_v21  ;;  %v2271_v37 = vsel %vm2173_vm8, %v2124_v26, %v2222_v34  ;;  %v2868_v34 = vld [vmem:[%s4736_s0 + $0x3a0] sm:$0xf] }
 0x1e2   :  { %v861_v59 = vpack.c.b16 %v736_v63, %v736_v63 }
 0x1e3   :  { %v2072_v2 = vmul.f32 %v4505_v0, %v1832_v54 }
 0x1e4   :  { %1873 = vmatmul.bf16.gmra.mxu0 %v2837_v24  ;;  %v1568_v30 = vpop.f32.mrf.mxu2  ;;  %v4520_v56 = vpop.f32.mrf.mxu3 }
 0x1e5   :  { %v2125_v40 = vadd.f32 %v4514_v61, %v2072_v2  ;;  %v1569_v48 = vadd.f32 %v1568_v30, %v1436_v52  ;;  %v2862_v30 = vld [vmem:[%s4736_s0 + $0x3ac] sm:$0xf0] }
 0x1e6   :  { %v1437_v16 = vpop.f32.mrf.mxu1 }
 0x1e7   :  { %vm2174_vm9 = vcmp.ge.f32.partialorder %v2125_v40, 0.0  ;;  %v2223_v1 = vmul.f32 0.1, %v2125_v40  ;;  %v1702_v22 = vadd.f32 %v4425_v17, %v1569_v48  ;;  %v3151_v17 = vld [vmem:[%s4736_s0 + $0x388] sm:$0xf0]  ;;  %v1438_v50 = vadd.f32 %v1437_v16, %v3962_v5 }
 0x1e8   :  { %v2849_v27 = vor.u32 %v3151_v17, %v2848_v45  ;;  %v2876_v48 = vld [vmem:[%s4736_s0 + $0x3a8] sm:$0xf]  ;;  %v3157_v16 = vld [vmem:[%s4736_s0 + $0x3b8] sm:$0xf0] }
 0x1e9   :  { %v1836_v42 = vpop.f32.mrf.mxu0  ;;  %v2272_v15 = vsel %vm2174_vm9, %v2125_v40, %v2223_v1  ;;  %v1835_v44 = vadd.f32 %v1834_v32, %v1702_v22  ;;  %1755 = vmatmul.bf16.gmra.mxu3 %v861_v59 }
 0x1ea   :  { %v3261_v12 = vpack.c.bf16 %v2272_v15, %v2271_v37 }
 0x1eb   :  { %v2073_v28 = vmul.f32 %v4505_v0, %v1835_v44 }
 0x1ec   :  { %3329 = vst [vmem:[%s4739_s4 + $0x60] sm:$0xff] %v3261_v12   ;;  %v1570_v13 = vpop.f32.mrf.mxu2  ;;  %v4552_v53 = vpop.f32.mrf.mxu3 }
 0x1ed   :  { %v1571_v3 = vadd.f32 %v1570_v13, %v1438_v50  ;;  %v2126_v35 = vadd.f32 %v4514_v61, %v2073_v28 }
 0x1ee   :  { %v1440_v5 = vpop.f32.mrf.mxu1 }
 0x1ef   :  { %v1704_v62 = vadd.f32 %v4432_v9, %v1571_v3  ;;  %v1441_v29 = vadd.f32 %v1440_v5, %v3726_v19  ;;  %v2224_v55 = vmul.f32 0.1, %v2126_v35  ;;  %vm2175_vm10 = vcmp.ge.f32.partialorder %v2126_v35, 0.0  ;;  %v3153_v19 = vld [vmem:[%s4736_s0 + $0x39c] sm:$0xf] }
 0x1f0   :  { %v2865_v63 = vor.u32 %v3153_v19, %v2862_v30  ;;  %v265_v5 = vld [vmem:[%s4736_s0 + $0x3d0] sm:$0xf] }
 0x1f1   :  { %v1839_v41 = vpop.f32.mrf.mxu0  ;;  %v1837_v46 = vadd.f32 %v1836_v42, %v1704_v62  ;;  %1479 = vmatmul.bf16.gmra.mxu1 %v2845_v39  ;;  %1612 = vmatmul.bf16.gmra.mxu2 %v2849_v27  ;;  %v2273_v26 = vsel %vm2175_vm10, %v2126_v35, %v2224_v55 }
 0x1f3   :  { %v2074_v43 = vmul.f32 %v4505_v0, %v1837_v46  ;;  %v735_v46 = vunpack.c.l.b16 %v4525_v49 }
 0x1f4   :  { %1878 = vmatmul.bf16.gmra.mxu0 %v2857_v20  ;;  %v1573_v25 = vpop.f32.mrf.mxu2  ;;  %v4559_v24 = vpop.f32.mrf.mxu3 }
 0x1f5   :  { %v2127_v4 = vadd.f32 %v4514_v61, %v2074_v43  ;;  %v1574_v21 = vadd.f32 %v1573_v25, %v1441_v29  ;;  %v737_v29 = vunpack.c.l.b16 %v265_v5 }
 0x1f6   :  { %v1442_v23 = vpop.f32.mrf.mxu1 }
 0x1f7   :  { %vm2176_vm11 = vcmp.ge.f32.partialorder %v2127_v4, 0.0  ;;  %v2225_v9 = vmul.f32 0.1, %v2127_v4  ;;  %v1707_v6 = vadd.f32 %v4464_v57, %v1574_v21  ;;  %v3156_v57 = vld [vmem:[%s4736_s0 + $0x3b0] sm:$0xf0]  ;;  %v1443_v40 = vadd.f32 %v1442_v23, %v3756_v31 }
 0x1f8   :  { %v2869_v37 = vor.u32 %v3156_v57, %v2868_v34  ;;  %v2877_v31 = vor.u32 %v3157_v16, %v2876_v48  ;;  %v860_v23 = vpack.c.b16 %v735_v46, %v735_v46 }
 0x1f9   :  { %v1841_v32 = vpop.f32.mrf.mxu0  ;;  %v2274_v54 = vsel %vm2176_vm11, %v2127_v4, %v2225_v9  ;;  %v1840_v2 = vadd.f32 %v1839_v41, %v1707_v6  ;;  %v862_v6 = vpack.c.b16 %v737_v29, %v737_v29 }
 0x1fa   :  { %v3266_v52 = vpack.c.bf16 %v2274_v54, %v2273_v26 }
 0x1fb   :  { %v2075_v22 = vmul.f32 %v4505_v0, %v1840_v2 }
 0x1fc   :  { %3330 = vst [vmem:[%s4739_s4 + $0x68] sm:$0xff] %v3266_v52   ;;  %v1575_v1 = vpop.f32.mrf.mxu2  ;;  %v4585_v44 = vpop.f32.mrf.mxu3 }
 0x1fd   :  { %v1576_v42 = vadd.f32 %v1575_v1, %v1443_v40  ;;  %v2128_v11 = vadd.f32 %v4514_v61, %v2075_v22 }
 0x1fe   :  { %v1445_v15 = vpop.f32.mrf.mxu1 }
 0x1ff   :  { %v1709_v60 = vadd.f32 %v4471_v36, %v1576_v42  ;;  %v1446_v59 = vadd.f32 %v1445_v15, %v3764_v38  ;;  %v2226_v18 = vmul.f32 0.1, %v2128_v11  ;;  %vm2177_vm12 = vcmp.ge.f32.partialorder %v2128_v11, 0.0  ;;  %v3369_v38 = vld [vmem:[%s4736_s0 + $0x3c0] sm:$0xff] }
 0x200   :  { %v734_v20 = vunpack.c.h.b16 %v3369_v38 }
 0x201   :  { %v1844_v12 = vpop.f32.mrf.mxu0  ;;  %v1842_v45 = vadd.f32 %v1841_v32, %v1709_v60  ;;  %1484 = vmatmul.bf16.gmra.mxu1 %v2865_v63  ;;  %1617 = vmatmul.bf16.gmra.mxu2 %v2869_v37  ;;  %v2275_v62 = vsel %vm2177_vm12, %v2128_v11, %v2226_v18 }
 0x202   :  { %v859_v21 = vpack.c.b16 %v734_v20, %v734_v20 }
 0x203   :  { %v2076_v17 = vmul.f32 %v4505_v0, %v1842_v45 }
 0x204   :  { %1883 = vmatmul.bf16.gmra.mxu0 %v2877_v31  ;;  %v1578_v50 = vpop.f32.mrf.mxu2  ;;  %v4592_v3 = vpop.f32.mrf.mxu3 }
 0x205   :  { %v2129_v8 = vadd.f32 %v4514_v61, %v2076_v17  ;;  %v1579_v13 = vadd.f32 %v1578_v50, %v1446_v59 }
 0x206   :  { %v1447_v28 = vpop.f32.mrf.mxu1 }
 0x207   :  { %vm2178_vm13 = vcmp.ge.f32.partialorder %v2129_v8, 0.0  ;;  %v2227_v36 = vmul.f32 0.1, %v2129_v8  ;;  %v1712_v39 = vadd.f32 %v4508_v10, %v1579_v13  ;;  %v1448_v25 = vadd.f32 %v1447_v28, %v3796_v51 }
 0x209   :  { %v1846_v27 = vpop.f32.mrf.mxu0  ;;  %v2276_v41 = vsel %vm2178_vm13, %v2129_v8, %v2227_v36  ;;  %v1845_v35 = vadd.f32 %v1844_v12, %v1712_v39 }
 0x20a   :  { %v3271_v43 = vpack.c.bf16 %v2276_v41, %v2275_v62 }
 0x20b   :  { %v2077_v55 = vmul.f32 %v4505_v0, %v1845_v35 }
 0x20c   :  { %3331 = vst [vmem:[%s4739_s4 + $0x70] sm:$0xff] %v3271_v43   ;;  %v1580_v10 = vpop.f32.mrf.mxu2  ;;  %v4607_v32 = vpop.f32.mrf.mxu3 }
 0x20d   :  { %v1581_v4 = vadd.f32 %v1580_v10, %v1448_v25  ;;  %v2130_v54 = vadd.f32 %v4514_v61, %v2077_v55 }
 0x20e   :  { %v1450_v9 = vpop.f32.mrf.mxu1 }
 0x20f   :  { %v1714_v49 = vadd.f32 %v4520_v56, %v1581_v4  ;;  %v1451_v19 = vadd.f32 %v1450_v9, %v3804_v58  ;;  %v2228_v30 = vmul.f32 0.1, %v2130_v54  ;;  %vm2179_vm14 = vcmp.ge.f32.partialorder %v2130_v54, 0.0 }
 0x211   :  { %v1849_v26 = vpop.f32.mrf.mxu0  ;;  %v1847_v51 = vadd.f32 %v1846_v27, %v1714_v49  ;;  %1489 = vmatmul.bf16.gmra.mxu1 %v859_v21  ;;  %1622 = vmatmul.bf16.gmra.mxu2 %v860_v23  ;;  %v2277_v22 = vsel %vm2179_vm14, %v2130_v54, %v2228_v30 }
 0x213   :  { %v2078_v2 = vmul.f32 %v4505_v0, %v1847_v51 }
 0x214   :  { %1888 = vmatmul.bf16.gmra.mxu0 %v862_v6  ;;  %v1583_v52 = vpop.f32.mrf.mxu2  ;;  %v4614_v48 = vpop.f32.mrf.mxu3 }
 0x215   :  { %v2131_v34 = vadd.f32 %v4514_v61, %v2078_v2  ;;  %v1584_v57 = vadd.f32 %v1583_v52, %v1451_v19 }
 0x216   :  { %v1452_v40 = vpop.f32.mrf.mxu1 }
 0x217   :  { %vm2180_vm15 = vcmp.ge.f32.partialorder %v2131_v34, 0.0  ;;  %v2229_v56 = vmul.f32 0.1, %v2131_v34  ;;  %v1717_v16 = vadd.f32 %v4552_v53, %v1584_v57  ;;  %v1453_v58 = vadd.f32 %v1452_v40, %v3836_v7  ;;  %v4752_v57 = vld [vmem:[#allocation10_spill] sm:$0xff] }
 0x219   :  { %v1851_v1 = vpop.f32.mrf.mxu0  ;;  %v2278_v42 = vsel %vm2180_vm15, %v2131_v34, %v2229_v56  ;;  %v1850_v63 = vadd.f32 %v1849_v26, %v1717_v16 }
 0x21a   :  { %v3276_v37 = vpack.c.bf16 %v2278_v42, %v2277_v22 }
 0x21b   :  { %v2079_v31 = vmul.f32 %v4505_v0, %v1850_v63 }
 0x21c   :  { %3332 = vst [vmem:[%s4739_s4 + $0x78] sm:$0xff] %v3276_v37   ;;  %v1585_v15 = vpop.f32.mrf.mxu2  ;;  %v4622_v11 = vpop.f32.mrf.mxu3 }
 0x21d   :  { %v1586_v60 = vadd.f32 %v1585_v15, %v1453_v58  ;;  %v2132_v17 = vadd.f32 %v4514_v61, %v2079_v31  ;;  %v4753_v15 = vld [vmem:[#allocation11_spill] sm:$0xff] }
 0x21e   :  { %v1455_v12 = vpop.f32.mrf.mxu1 }
 0x21f   :  { %v1719_v53 = vadd.f32 %v4559_v24, %v1586_v60  ;;  %v1456_v7 = vadd.f32 %v1455_v12, %v3844_v14  ;;  %v2230_v8 = vmul.f32 0.1, %v2132_v17  ;;  %vm2181_vm0 = vcmp.ge.f32.partialorder %v2132_v17, 0.0 }
 0x221   :  { %v1854_v45 = vpop.f32.mrf.mxu0  ;;  %v1852_v59 = vadd.f32 %v1851_v1, %v1719_v53  ;;  %v2279_v38 = vsel %vm2181_vm0, %v2132_v17, %v2230_v8 }
 0x223   :  { %v2080_v50 = vmul.f32 %v4505_v0, %v1852_v59 }
 0x224   :  { %v1588_v18 = vpop.f32.mrf.mxu2  ;;  %v4629_v39 = vpop.f32.mrf.mxu3 }
 0x225   :  { %v2133_v13 = vadd.f32 %v4514_v61, %v2080_v50  ;;  %v1589_v28 = vadd.f32 %v1588_v18, %v1456_v7 }
 0x226   :  { %v1457_v36 = vpop.f32.mrf.mxu1 }
 0x227   :  { %vm2182_vm1 = vcmp.ge.f32.partialorder %v2133_v13, 0.0  ;;  %v2231_v27 = vmul.f32 0.1, %v2133_v13  ;;  %v1722_v24 = vadd.f32 %v4585_v44, %v1589_v28  ;;  %v1458_v14 = vadd.f32 %v1457_v36, %v3876_v33  ;;  %v4754_v36 = vld [vmem:[#allocation12_spill] sm:$0xff] }
 0x229   :  { %v1856_v5 = vpop.f32.mrf.mxu0  ;;  %v2280_v20 = vsel %vm2182_vm1, %v2133_v13, %v2231_v27  ;;  %v1855_v62 = vadd.f32 %v1854_v45, %v1722_v24 }
 0x22a   :  { %v3281_v41 = vpack.c.bf16 %v2280_v20, %v2279_v38 }
 0x22b   :  { %v2081_v46 = vmul.f32 %v4505_v0, %v1855_v62 }
 0x22c   :  { %3333 = vst [vmem:[%s4739_s4 + $0x80] sm:$0xff] %v3281_v41   ;;  %v1590_v35 = vpop.f32.mrf.mxu2  ;;  %v4637_v25 = vpop.f32.mrf.mxu3 }
 0x22d   :  { %v1591_v43 = vadd.f32 %v1590_v35, %v1458_v14  ;;  %v2134_v55 = vadd.f32 %v4514_v61, %v2081_v46 }
 0x22e   :  { %v1460_v29 = vpop.f32.mrf.mxu1 }
 0x22f   :  { %v1724_v44 = vadd.f32 %v4592_v3, %v1591_v43  ;;  %v1461_v33 = vadd.f32 %v1460_v29, %v3884_v47  ;;  %v2232_v9 = vmul.f32 0.1, %v2134_v55  ;;  %vm2183_vm2 = vcmp.ge.f32.partialorder %v2134_v55, 0.0  ;;  %v4755_v43 = vld [vmem:[#allocation13_spill] sm:$0xff] }
 0x231   :  { %v1859_v10 = vpop.f32.mrf.mxu0  ;;  %v1857_v4 = vadd.f32 %v1856_v5, %v1724_v44  ;;  %v2281_v19 = vsel %vm2183_vm2, %v2134_v55, %v2232_v9 }
 0x233   :  { %v2082_v21 = vmul.f32 %v4505_v0, %v1857_v4 }
 0x234   :  { %v1593_v23 = vpop.f32.mrf.mxu2  ;;  %v4644_v54 = vpop.f32.mrf.mxu3 }
 0x235   :  { %v2135_v6 = vadd.f32 %v4514_v61, %v2082_v21  ;;  %v1594_v49 = vadd.f32 %v1593_v23, %v1461_v33 }
 0x236   :  { %v1462_v26 = vpop.f32.mrf.mxu1 }
 0x237   :  { %vm2184_vm3 = vcmp.ge.f32.partialorder %v2135_v6, 0.0  ;;  %v2233_v51 = vmul.f32 0.1, %v2135_v6  ;;  %v1727_v3 = vadd.f32 %v4607_v32, %v1594_v49  ;;  %v1463_v47 = vadd.f32 %v1462_v26, %v4752_v57 }
 0x239   :  { %v1861_v2 = vpop.f32.mrf.mxu0  ;;  %v2282_v52 = vsel %vm2184_vm3, %v2135_v6, %v2233_v51  ;;  %v1860_v30 = vadd.f32 %v1859_v10, %v1727_v3  ;;  %v4756_v3 = vld [vmem:[#allocation14_spill] sm:$0xff] }
 0x23a   :  { %v3286_v34 = vpack.c.bf16 %v2282_v52, %v2281_v19 }
 0x23b   :  { %v2083_v56 = vmul.f32 %v4505_v0, %v1860_v30 }
 0x23c   :  { %3334 = vst [vmem:[%s4739_s4 + $0x88] sm:$0xff] %v3286_v34   ;;  %v1595_v40 = vpop.f32.mrf.mxu2  ;;  %v4652_v22 = vpop.f32.mrf.mxu3 }
 0x23d   :  { %v1596_v16 = vadd.f32 %v1595_v40, %v1463_v47  ;;  %v2136_v63 = vadd.f32 %v4514_v61, %v2083_v56 }
 0x23e   :  { %v1465_v1 = vpop.f32.mrf.mxu1 }
 0x23f   :  { %v1729_v32 = vadd.f32 %v4614_v48, %v1596_v16  ;;  %v1466_v31 = vadd.f32 %v1465_v1, %v4753_v15  ;;  %v2234_v12 = vmul.f32 0.1, %v2136_v63  ;;  %vm2185_vm4 = vcmp.ge.f32.partialorder %v2136_v63, 0.0  ;;  %v4757_v1 = vld [vmem:[#allocation3_spill] sm:$0xff] }
 0x241   :  { %v1864_v42 = vpop.f32.mrf.mxu0  ;;  %v1862_v37 = vadd.f32 %v1861_v2, %v1729_v32  ;;  %v2283_v18 = vsel %vm2185_vm4, %v2136_v63, %v2234_v12 }
 0x243   :  { %v2084_v58 = vmul.f32 %v4505_v0, %v1862_v37 }
 0x244   :  { %v1598_v60 = vpop.f32.mrf.mxu2  ;;  %v4659_v59 = vpop.f32.mrf.mxu3 }
 0x245   :  { %v2137_v53 = vadd.f32 %v4514_v61, %v2084_v58  ;;  %v1599_v45 = vadd.f32 %v1598_v60, %v1466_v31 }
 0x246   :  { %v1467_v17 = vpop.f32.mrf.mxu1 }
 0x247   :  { %vm2186_vm5 = vcmp.ge.f32.partialorder %v2137_v53, 0.0  ;;  %v2235_v50 = vmul.f32 0.1, %v2137_v53  ;;  %v1732_v48 = vadd.f32 %v4622_v11, %v1599_v45  ;;  %v1468_v27 = vadd.f32 %v1467_v17, %v4754_v36 }
 0x249   :  { %v1866_v7 = vpop.f32.mrf.mxu0  ;;  %v2284_v8 = vsel %vm2186_vm5, %v2137_v53, %v2235_v50  ;;  %v1865_v13 = vadd.f32 %v1864_v42, %v1732_v48  ;;  %v4758_v48 = vld [vmem:[#allocation4_spill] sm:$0xff] }
 0x24a   :  { %v3291_v28 = vpack.c.bf16 %v2284_v8, %v2283_v18 }
 0x24b   :  { %v2085_v5 = vmul.f32 %v4505_v0, %v1865_v13 }
 0x24c   :  { %3335 = vst [vmem:[%s4739_s4 + $0x90] sm:$0xff] %v3291_v28   ;;  %v1600_v24 = vpop.f32.mrf.mxu2  ;;  %v4667_v62 = vpop.f32.mrf.mxu3 }
 0x24d   :  { %v1601_v38 = vadd.f32 %v1600_v24, %v1468_v27  ;;  %v2138_v14 = vadd.f32 %v4514_v61, %v2085_v5 }
 0x24e   :  { %v1470_v20 = vpop.f32.mrf.mxu1 }
 0x24f   :  { %v1734_v11 = vadd.f32 %v4629_v39, %v1601_v38  ;;  %v1471_v29 = vadd.f32 %v1470_v20, %v4755_v43  ;;  %v2236_v10 = vmul.f32 0.1, %v2138_v14  ;;  %vm2187_vm6 = vcmp.ge.f32.partialorder %v2138_v14, 0.0  ;;  %v4759_v20 = vld [vmem:[#allocation5_spill] sm:$0xff] }
 0x251   :  { %v1869_v41 = vpop.f32.mrf.mxu0  ;;  %v1867_v35 = vadd.f32 %v1866_v7, %v1734_v11  ;;  %v2285_v6 = vsel %vm2187_vm6, %v2138_v14, %v2236_v10 }
 0x253   :  { %v2086_v46 = vmul.f32 %v4505_v0, %v1867_v35 }
 0x254   :  { %v1603_v44 = vpop.f32.mrf.mxu2  ;;  %v4674_v33 = vpop.f32.mrf.mxu3 }
 0x255   :  { %v2139_v55 = vadd.f32 %v4514_v61, %v2086_v46  ;;  %v1604_v4 = vadd.f32 %v1603_v44, %v1471_v29 }
 0x256   :  { %v1472_v21 = vpop.f32.mrf.mxu1 }
 0x257   :  { %vm2188_vm7 = vcmp.ge.f32.partialorder %v2139_v55, 0.0  ;;  %v2237_v23 = vmul.f32 0.1, %v2139_v55  ;;  %v1737_v39 = vadd.f32 %v4637_v25, %v1604_v4  ;;  %v1473_v2 = vadd.f32 %v1472_v21, %v4756_v3 }
 0x259   :  { %v1871_v9 = vpop.f32.mrf.mxu0  ;;  %v2286_v49 = vsel %vm2188_vm7, %v2139_v55, %v2237_v23  ;;  %v1870_v26 = vadd.f32 %v1869_v41, %v1737_v39  ;;  %v4760_v39 = vld [vmem:[#allocation6_spill] sm:$0xff] }
 0x25a   :  { %v3296_v51 = vpack.c.bf16 %v2286_v49, %v2285_v6 }
 0x25b   :  { %v2087_v52 = vmul.f32 %v4505_v0, %v1870_v26 }
 0x25c   :  { %3336 = vst [vmem:[%s4739_s4 + $0x98] sm:$0xff] %v3296_v51   ;;  %v1605_v19 = vpop.f32.mrf.mxu2  ;;  %v4682_v57 = vpop.f32.mrf.mxu3 }
 0x25d   :  { %v1606_v30 = vadd.f32 %v1605_v19, %v1473_v2  ;;  %v2140_v40 = vadd.f32 %v4514_v61, %v2087_v52 }
 0x25e   :  { %v1475_v34 = vpop.f32.mrf.mxu1 }
 0x25f   :  { %v1739_v25 = vadd.f32 %v4644_v54, %v1606_v30  ;;  %v1476_v32 = vadd.f32 %v1475_v34, %v4757_v1  ;;  %v2238_v63 = vmul.f32 0.1, %v2140_v40  ;;  %vm2189_vm8 = vcmp.ge.f32.partialorder %v2140_v40, 0.0  ;;  %v4761_v30 = vld [vmem:[#allocation7_spill] sm:$0xff] }
 0x261   :  { %v1874_v47 = vpop.f32.mrf.mxu0  ;;  %v1872_v56 = vadd.f32 %v1871_v9, %v1739_v25  ;;  %v2287_v53 = vsel %vm2189_vm8, %v2140_v40, %v2238_v63 }
 0x263   :  { %v2088_v16 = vmul.f32 %v4505_v0, %v1872_v56 }
 0x264   :  { %v1608_v42 = vpop.f32.mrf.mxu2  ;;  %v4689_v31 = vpop.f32.mrf.mxu3 }
 0x265   :  { %v2141_v37 = vadd.f32 %v4514_v61, %v2088_v16  ;;  %v1609_v58 = vadd.f32 %v1608_v42, %v1476_v32 }
 0x266   :  { %v1477_v15 = vpop.f32.mrf.mxu1 }
 0x267   :  { %vm2190_vm9 = vcmp.ge.f32.partialorder %v2141_v37, 0.0  ;;  %v2239_v60 = vmul.f32 0.1, %v2141_v37  ;;  %v1742_v54 = vadd.f32 %v4652_v22, %v1609_v58  ;;  %v1478_v7 = vadd.f32 %v1477_v15, %v4758_v48  ;;  %v4762_v15 = vld [vmem:[#allocation8_spill] sm:$0xff] }
 0x269   :  { %v1876_v12 = vpop.f32.mrf.mxu0  ;;  %v2288_v45 = vsel %vm2190_vm9, %v2141_v37, %v2239_v60  ;;  %v1875_v17 = vadd.f32 %v1874_v47, %v1742_v54 }
 0x26a   :  { %v3301_v50 = vpack.c.bf16 %v2288_v45, %v2287_v53 }
 0x26b   :  { %v2089_v8 = vmul.f32 %v4505_v0, %v1875_v17 }
 0x26c   :  { %3337 = vst [vmem:[%s4739_s4 + $0xa0] sm:$0xff] %v3301_v50   ;;  %v1610_v18 = vpop.f32.mrf.mxu2  ;;  %v4698_v22 = vpop.f32.mrf.mxu3 }
 0x26d   :  { %v1611_v13 = vadd.f32 %v1610_v18, %v1478_v7  ;;  %v2142_v24 = vadd.f32 %v4514_v61, %v2089_v8  ;;  %v4763_v18 = vld [vmem:[#allocation9_spill] sm:$0xff] }
 0x26e   :  { %v1480_v28 = vpop.f32.mrf.mxu1 }
 0x26f   :  { %v1744_v36 = vadd.f32 %v4659_v59, %v1611_v13  ;;  %v1481_v11 = vadd.f32 %v1480_v28, %v4759_v20  ;;  %v2240_v14 = vmul.f32 0.1, %v2142_v24  ;;  %vm2191_vm10 = vcmp.ge.f32.partialorder %v2142_v24, 0.0 }
 0x271   :  { %v1879_v27 = vpop.f32.mrf.mxu0  ;;  %v1877_v5 = vadd.f32 %v1876_v12, %v1744_v36  ;;  %v2289_v55 = vsel %vm2191_vm10, %v2142_v24, %v2240_v14 }
 0x273   :  { %v2090_v38 = vmul.f32 %v4505_v0, %v1877_v5 }
 0x274   :  { %v1613_v41 = vpop.f32.mrf.mxu2  ;;  %v1758_v10 = vpop.f32.mrf.mxu3 }
 0x275   :  { %v2143_v35 = vadd.f32 %v4514_v61, %v2090_v38  ;;  %v1614_v46 = vadd.f32 %v1613_v41, %v1481_v11 }
 0x276   :  { %v1482_v43 = vpop.f32.mrf.mxu1 }
 0x277   :  { %vm2192_vm11 = vcmp.ge.f32.partialorder %v2143_v35, 0.0  ;;  %v2241_v29 = vmul.f32 0.1, %v2143_v35  ;;  %v1747_v59 = vadd.f32 %v4667_v62, %v1614_v46  ;;  %v1483_v9 = vadd.f32 %v1482_v43, %v4760_v39 }
 0x279   :  { %v1881_v44 = vpop.f32.mrf.mxu0  ;;  %v2290_v4 = vsel %vm2192_vm11, %v2143_v35, %v2241_v29  ;;  %v1880_v21 = vadd.f32 %v1879_v27, %v1747_v59 }
 0x27a   :  { %v3306_v23 = vpack.c.bf16 %v2290_v4, %v2289_v55 }
 0x27b   :  { %v2091_v49 = vmul.f32 %v4505_v0, %v1880_v21 }
 0x27c   :  { %3338 = vst [vmem:[%s4739_s4 + $0xa8] sm:$0xff] %v3306_v23   ;;  %v1615_v6 = vpop.f32.mrf.mxu2 }
 0x27d   :  { %v1616_v26 = vadd.f32 %v1615_v6, %v1483_v9  ;;  %v2144_v2 = vadd.f32 %v4514_v61, %v2091_v49 }
 0x27e   :  { %v1485_v51 = vpop.f32.mrf.mxu1 }
 0x27f   :  { %v1749_v3 = vadd.f32 %v4674_v33, %v1616_v26  ;;  %v1486_v34 = vadd.f32 %v1485_v51, %v4761_v30  ;;  %v2242_v47 = vmul.f32 0.1, %v2144_v2  ;;  %vm2193_vm12 = vcmp.ge.f32.partialorder %v2144_v2, 0.0 }
 0x281   :  { %v1884_v62 = vpop.f32.mrf.mxu0  ;;  %v1882_v19 = vadd.f32 %v1881_v44, %v1749_v3  ;;  %v2291_v42 = vsel %vm2193_vm12, %v2144_v2, %v2242_v47 }
 0x283   :  { %v2092_v52 = vmul.f32 %v4505_v0, %v1882_v19 }
 0x284   :  { %v1618_v25 = vpop.f32.mrf.mxu2 }
 0x285   :  { %v2145_v40 = vadd.f32 %v4514_v61, %v2092_v52  ;;  %v1619_v56 = vadd.f32 %v1618_v25, %v1486_v34 }
 0x286   :  { %v1487_v16 = vpop.f32.mrf.mxu1 }
 0x287   :  { %vm2194_vm13 = vcmp.ge.f32.partialorder %v2145_v40, 0.0  ;;  %v2243_v1 = vmul.f32 0.1, %v2145_v40  ;;  %v1752_v32 = vadd.f32 %v4682_v57, %v1619_v56  ;;  %v1488_v60 = vadd.f32 %v1487_v16, %v4762_v15 }
 0x289   :  { %v1886_v33 = vpop.f32.mrf.mxu0  ;;  %v2292_v63 = vsel %vm2194_vm13, %v2145_v40, %v2243_v1  ;;  %v1885_v37 = vadd.f32 %v1884_v62, %v1752_v32 }
 0x28a   :  { %v3311_v58 = vpack.c.bf16 %v2292_v63, %v2291_v42 }
 0x28b   :  { %v2093_v12 = vmul.f32 %v4505_v0, %v1885_v37 }
 0x28c   :  { %3339 = vst [vmem:[%s4739_s4 + $0xb0] sm:$0xff] %v3311_v58   ;;  %v1620_v54 = vpop.f32.mrf.mxu2 }
 0x28d   :  { %v1621_v53 = vadd.f32 %v1620_v54, %v1488_v60  ;;  %v2146_v57 = vadd.f32 %v4514_v61, %v2093_v12 }
 0x28e   :  { %v1490_v45 = vpop.f32.mrf.mxu1 }
 0x28f   :  { %v1754_v17 = vadd.f32 %v4689_v31, %v1621_v53  ;;  %v1491_v8 = vadd.f32 %v1490_v45, %v4763_v18  ;;  %v2244_v28 = vmul.f32 0.1, %v2146_v57  ;;  %vm2195_vm14 = vcmp.ge.f32.partialorder %v2146_v57, 0.0 }
 0x291   :  { %v1889_v50 = vpop.f32.mrf.mxu0  ;;  %v1887_v48 = vadd.f32 %v1886_v33, %v1754_v17  ;;  %v2293_v20 = vsel %vm2195_vm14, %v2146_v57, %v2244_v28 }
 0x293   :  { %v2094_v7 = vmul.f32 %v4505_v0, %v1887_v48 }
 0x294   :  { %v1623_v13 = vpop.f32.mrf.mxu2 }
 0x295   :  { %v2147_v36 = vadd.f32 %v4514_v61, %v2094_v7  ;;  %v1624_v27 = vadd.f32 %v1623_v13, %v1491_v8 }
 0x296   :  { %v1492_v24 = vpop.f32.mrf.mxu1 }
 0x297   :  { %vm2196_vm15 = vcmp.ge.f32.partialorder %v2147_v36, 0.0  ;;  %v2245_v5 = vmul.f32 0.1, %v2147_v36  ;;  %v1757_v38 = vadd.f32 %v4698_v22, %v1624_v27 }
 0x299   :  { %v1891_v31 = vpop.f32.mrf.mxu0  ;;  %v2294_v11 = vsel %vm2196_vm15, %v2147_v36, %v2245_v5  ;;  %v1890_v41 = vadd.f32 %v1889_v50, %v1757_v38 }
 0x29a   :  { %v3316_v14 = vpack.c.bf16 %v2294_v11, %v2293_v20 }
 0x29b   :  { %v2095_v35 = vmul.f32 %v4505_v0, %v1890_v41 }
 0x29c   :  { %3340 = vst [vmem:[%s4739_s4 + $0xb8] sm:$0xff] %v3316_v14   ;;  %v1625_v46 = vpop.f32.mrf.mxu2 }
 0x29d   :  { %v2148_v43 = vadd.f32 %v4514_v61, %v2095_v35 }
 0x29f   :  { %vm2197_vm0 = vcmp.ge.f32.partialorder %v2148_v43, 0.0  ;;  %v2246_v29 = vmul.f32 0.1, %v2148_v43 }
 0x2a1   :  { %v2295_v59 = vsel %vm2197_vm0, %v2148_v43, %v2246_v29 }
 0x2a2   :  { %v2344_v44 = vpack.c.bf16 %v2295_v59, %v2295_v59 }
 0x2a4   :  { %2393 = vst [vmem:[%s4739_s4 + $0xc0] sm:$0xf] %v2344_v44 }

// kernel: yolo_head_forward.11
= control target key start
LH: loop header
LB: loop body
LE: loop exit
PB: predicated region body
PF: predicated region fallthrough
CT: control target
= control target key end

     0   :  { %s668_s0 = inlined_call_operand.vmem [shape: f32[2,8,1536], index: 0, kind: input, shape index: {}]   ;;  %s669_s1 = inlined_call_operand.vmem [shape: f32[1,1536], index: 1, kind: input, shape index: {}]   ;;  %s670_s2 = inlined_call_operand.vmem [shape: f32[8,1536], index: 2, kind: output, shape index: {}]  }
   0x1   :  { %v11_v0 = vld [vmem:[%s668_s0] sm:$0xff]  ;;  %v12_v5 = vld [vmem:[%s668_s0 + $0x8] sm:$0xff]  ;;  %v13_v8 = vld [vmem:[%s668_s0 + $0x10] sm:$0xff] }
   0x2   :  { %v23_v1 = vld [vmem:[%s668_s0 + $0x60] sm:$0xff]  ;;  %v24_v6 = vld [vmem:[%s668_s0 + $0x68] sm:$0xff]  ;;  %v25_v11 = vld [vmem:[%s668_s0 + $0x70] sm:$0xff] }
   0x3   :  { %v47_v2 = vld [vmem:[%s669_s1] sm:$0xff]  ;;  %v35_v3 = vadd.f32 %v23_v1, %v11_v0  ;;  %v36_v10 = vadd.f32 %v24_v6, %v12_v5  ;;  %v14_v12 = vld [vmem:[%s668_s0 + $0x18] sm:$0xff]  ;;  %v37_v17 = vadd.f32 %v25_v11, %v13_v8  ;;  %v16_v21 = vld [vmem:[%s668_s0 + $0x28] sm:$0xff] }
   0x4   :  { %v51_v4 = vperm.slane %v47_v2, 0  ;;  %v52_v7 = vperm.slane %v47_v2, 1  ;;  %v53_v9 = vperm.slane %v47_v2, 2  ;;  %v26_v13 = vld [vmem:[%s668_s0 + $0x78] sm:$0xff]  ;;  %v54_v14 = vperm.slane %v47_v2, 3  ;;  %v15_v19 = vld [vmem:[%s668_s0 + $0x20] sm:$0xff] }
   0x5   :  { %v55_v15 = vperm.slane %v47_v2, 4  ;;  %v38_v18 = vadd.f32 %v26_v13, %v14_v12  ;;  %v27_v20 = vld [vmem:[%s668_s0 + $0x80] sm:$0xff]  ;;  %v56_v22 = vperm.slane %v47_v2, 5  ;;  %v28_v25 = vld [vmem:[%s668_s0 + $0x88] sm:$0xff]  ;;  %v17_v26 = vld [vmem:[%s668_s0 + $0x30] sm:$0xff]  ;;  %v57_v28 = vperm.slane %v47_v2, 6 }
   0x6   :  { %v75_v16 = vadd.f32 %v51_v4, %v35_v3  ;;  %v76_v23 = vadd.f32 %v52_v7, %v36_v10  ;;  %v39_v24 = vadd.f32 %v27_v20, %v15_v19  ;;  %v29_v27 = vld [vmem:[%s668_s0 + $0x90] sm:$0xff]  ;;  %v58_v29 = vperm.slane %v47_v2, 7  ;;  %v18_v34 = vld [vmem:[%s668_s0 + $0x38] sm:$0xff]  ;;  %v19_v44 = vld [vmem:[%s668_s0 + $0x40] sm:$0xff] }
   0x7   :  { %v77_v31 = vadd.f32 %v53_v9, %v37_v17  ;;  %v78_v32 = vadd.f32 %v54_v14, %v38_v18  ;;  %v40_v33 = vadd.f32 %v28_v25, %v16_v21  ;;  %v30_v35 = vld [vmem:[%s668_s0 + $0x98] sm:$0xff]  ;;  %v41_v38 = vadd.f32 %v29_v27, %v17_v26  ;;  %v31_v49 = vld [vmem:[%s668_s0 + $0xa0] sm:$0xff]  ;;  %v48_v50 = vld [vmem:[%s669_s1 + $0x8] sm:$0xf] }
   0x8   :  { %v87_v30 = vsub.f32 0.0, %v75_v16  ;;  %v88_v36 = vsub.f32 0.0, %v76_v23  ;;  %v79_v37 = vadd.f32 %v55_v15, %v39_v24  ;;  %v42_v39 = vadd.f32 %v30_v35, %v18_v34  ;;  %v20_v60 = vld [vmem:[%s668_s0 + $0x48] sm:$0xff]  ;;  %v21_v63 = vld [vmem:[%s668_s0 + $0x50] sm:$0xff]  ;;  %v22_v3 = vld [vmem:[%s668_s0 + $0x58] sm:$0xff] }
   0x9   :  { %v89_v41 = vsub.f32 0.0, %v77_v31  ;;  %v90_v42 = vsub.f32 0.0, %v78_v32  ;;  %v80_v43 = vadd.f32 %v56_v22, %v40_v33  ;;  %v81_v47 = vadd.f32 %v57_v28, %v41_v38  ;;  %v32_v62 = vld [vmem:[%s668_s0 + $0xa8] sm:$0xff]  ;;  %v33_v0 = vld [vmem:[%s668_s0 + $0xb0] sm:$0xff]  ;;  %v34_v4 = vld [vmem:[%s668_s0 + $0xb8] sm:$0xff] }
   0xa   :  { %v99_v40 = vmul.f32 1.442695, %v87_v30  ;;  %v101_v45 = vmul.f32 1.442695, %v88_v36  ;;  %v91_v46 = vsub.f32 0.0, %v79_v37  ;;  %v82_v48 = vadd.f32 %v58_v29, %v42_v39 }
   0xb   :  { %v103_v51 = vmul.f32 1.442695, %v89_v41  ;;  %v105_v52 = vmul.f32 1.442695, %v90_v42  ;;  %v92_v53 = vsub.f32 0.0, %v80_v43  ;;  %v93_v55 = vsub.f32 0.0, %v81_v47 }
   0xc   :  { %331 = vpow2.f32 %v99_v40  ;;  %v107_v54 = vmul.f32 1.442695, %v91_v46  ;;  %v94_v56 = vsub.f32 0.0, %v82_v48  ;;  %v43_v58 = vadd.f32 %v31_v49, %v19_v44 }
   0xd   :  { %333 = vpow2.f32 %v101_v45  ;;  %v109_v57 = vmul.f32 1.442695, %v92_v53  ;;  %v59_v59 = vperm.slane %v48_v50, 0  ;;  %v111_v61 = vmul.f32 1.442695, %v93_v55 }
   0xe   :  { %335 = vpow2.f32 %v103_v51  ;;  %v113_v1 = vmul.f32 1.442695, %v94_v56  ;;  %v44_v6 = vadd.f32 %v32_v62, %v20_v60  ;;  %v60_v7 = vperm.slane %v48_v50, 1 }
   0xf   :  { %337 = vpow2.f32 %v105_v52  ;;  %v83_v2 = vadd.f32 %v59_v59, %v43_v58  ;;  %v45_v8 = vadd.f32 %v33_v0, %v21_v63  ;;  %v61_v9 = vperm.slane %v48_v50, 2 }
  0x10   :  { %339 = vpow2.f32 %v107_v54  ;;  %v46_v12 = vadd.f32 %v34_v4, %v22_v3  ;;  %v62_v16 = vperm.slane %v48_v50, 3  ;;  %v479_v20 = vadd.f32 %v60_v7, %v44_v6 }
  0x11   :  { %341 = vpow2.f32 %v109_v57  ;;  %v95_v15 = vsub.f32 0.0, %v83_v2  ;;  %v481_v21 = vadd.f32 %v61_v9, %v45_v8 }
  0x12   :  { %v332_v5 = vpop.eup %331  ;;  %343 = vpow2.f32 %v111_v61  ;;  %v492_v30 = vadd.f32 %v62_v16, %v46_v12 }
  0x13   :  { %v334_v10 = vpop.eup %333  ;;  %v472_v11 = vadd.f32 1.0, %v332_v5  ;;  %345 = vpow2.f32 %v113_v1  ;;  %v115_v29 = vmul.f32 1.442695, %v95_v15 }
  0x14   :  { %v336_v13 = vpop.eup %335  ;;  %v474_v14 = vadd.f32 1.0, %v334_v10 }
  0x15   :  { %v338_v17 = vpop.eup %337  ;;  %347 = vrcp.f32 %v472_v11  ;;  %v144_v19 = vand.u32 2147483647, %v472_v11  ;;  %v146_v23 = vand.u32 2147483648, %v472_v11  ;;  %v485_v25 = vadd.f32 1.0, %v336_v13 }
  0x16   :  { %v340_v18 = vpop.eup %339  ;;  %349 = vrcp.f32 %v474_v14  ;;  %v159_v24 = vand.u32 2147483647, %v474_v14  ;;  %v487_v26 = vadd.f32 1.0, %v338_v17  ;;  %v161_v27 = vand.u32 2147483648, %v474_v14 }
  0x17   :  { %v342_v22 = vpop.eup %341  ;;  %v490_v28 = vadd.f32 1.0, %v340_v18  ;;  %vm140_vm0 = vweird.f32 %v472_v11  ;;  %vm155_vm1 = vweird.f32 %v474_v14  ;;  %351 = vrcp.f32 %v485_v25 }
  0x18   :  { %v344_v31 = vpop.eup %343  ;;  %v176_v32 = vand.u32 2147483648, %v485_v25  ;;  %vm498_vm2 = vcmp.eq.f32.partialorder %v144_v19, 8.507059e+37  ;;  %v174_v35 = vand.u32 2147483647, %v485_v25  ;;  %353 = vrcp.f32 %v487_v26 }
  0x19   :  { %v346_v33 = vpop.eup %345  ;;  %v191_v36 = vand.u32 2147483648, %v487_v26  ;;  %v505_v37 = vadd.f32 1.0, %v342_v22  ;;  %v147_v39 = vor.u32 1.1754944e-38, %v146_v23  ;;  %vm507_vm3 = vcmp.eq.f32.partialorder %v159_v24, 8.507059e+37 }
  0x1a   :  { %v189_v41 = vand.u32 2147483647, %v487_v26  ;;  %355 = vrcp.f32 %v490_v28  ;;  %v162_v44 = vor.u32 1.1754944e-38, %v161_v27  ;;  %vm170_vm4 = vweird.f32 %v485_v25 }
  0x1b   :  { %v348_v38 = vpop.eup %347  ;;  %vm185_vm5 = vweird.f32 %v487_v26  ;;  %v177_v46 = vor.u32 1.1754944e-38, %v176_v32  ;;  %vm200_vm6 = vweird.f32 %v490_v28  ;;  %v206_v47 = vand.u32 2147483648, %v490_v28 }
  0x1c   :  { %v350_v42 = vpop.eup %349  ;;  %v136_v43 = vmul.f32 %v348_v38, %v472_v11  ;;  %vm141_vm7 = vweird.f32 %v348_v38  ;;  %vm519_vm8 = vcmp.eq.f32.partialorder %v174_v35, 8.507059e+37  ;;  %v192_v50 = vor.u32 1.1754944e-38, %v191_v36 }
  0x1d   :  { %v151_v45 = vmul.f32 %v350_v42, %v474_v14  ;;  %357 = vrcp.f32 %v505_v37  ;;  %v352_v51 = vpop.eup %351  ;;  %vm156_vm9 = vweird.f32 %v350_v42  ;;  %vm524_vm10 = vcmp.eq.f32.partialorder %v189_v41, 8.507059e+37  ;;  %vm535_vm12 = vmor %vm140_vm0, %vm141_vm7 }
  0x1e   :  { %v137_v48 = vsub.f32 1.0, %v136_v43  ;;  %v204_v54 = vand.u32 2147483647, %v490_v28  ;;  %vm215_vm11 = vweird.f32 %v505_v37  ;;  %v354_v55 = vpop.eup %353  ;;  %v166_v57 = vmul.f32 %v352_v51, %v485_v25  ;;  %vm543_vm15 = vmor %vm155_vm1, %vm156_vm9 }
  0x1f   :  { %v152_v52 = vsub.f32 1.0, %v151_v45  ;;  %v207_v58 = vor.u32 1.1754944e-38, %v206_v47  ;;  %v219_v59 = vand.u32 2147483647, %v505_v37  ;;  %vm171_vm13 = vweird.f32 %v352_v51 }
  0x20   :  { %v138_v56 = vmul.f32 %v348_v38, %v137_v48  ;;  %v356_v60 = vpop.eup %355  ;;  %v181_v63 = vmul.f32 %v354_v55, %v487_v26  ;;  %vm186_vm14 = vweird.f32 %v354_v55  ;;  %v167_v2 = vsub.f32 1.0, %v166_v57  ;;  %vm561_vm1 = vmor %vm170_vm4, %vm171_vm13 }
  0x21   :  { %v153_v62 = vmul.f32 %v350_v42, %v152_v52  ;;  %v196_v3 = vmul.f32 %v356_v60, %v490_v28  ;;  %vm201_vm0 = vweird.f32 %v356_v60  ;;  %v548_v6 = vadd.f32 1.0, %v344_v31 }
  0x22   :  { %v139_v0 = vadd.f32 %v348_v38, %v138_v56  ;;  %v182_v5 = vsub.f32 1.0, %v181_v63  ;;  %v550_v7 = vadd.f32 1.0, %v346_v33  ;;  %v168_v10 = vmul.f32 %v352_v51, %v167_v2 }
  0x23   :  { %v154_v4 = vadd.f32 %v350_v42, %v153_v62  ;;  %v358_v8 = vpop.eup %357  ;;  %v197_v11 = vsub.f32 1.0, %v196_v3  ;;  %359 = vpow2.f32 %v115_v29  ;;  %v221_v23 = vand.u32 2147483648, %v505_v37 }
  0x24   :  { %v143_v9 = vsel %vm535_vm12, %v348_v38, %v139_v0  ;;  %v183_v15 = vmul.f32 %v354_v55, %v182_v5  ;;  %v211_v16 = vmul.f32 %v358_v8, %v505_v37  ;;  %v169_v18 = vadd.f32 %v352_v51, %v168_v10 }
  0x25   :  { %v148_v12 = vsel %vm498_vm2, %v147_v39, %v143_v9  ;;  %v158_v13 = vsel %vm543_vm15, %v350_v42, %v154_v4  ;;  %vm574_vm2 = vmor %vm185_vm5, %vm186_vm14  ;;  %v198_v22 = vmul.f32 %v356_v60, %v197_v11  ;;  %vm216_vm4 = vweird.f32 %v358_v8 }
  0x26   :  { %315 = vst [vmem:[%s670_s2] sm:$0xff] %v148_v12  ;;  %v163_v17 = vsel %vm507_vm3, %v162_v44, %v158_v13  ;;  %v184_v24 = vadd.f32 %v354_v55, %v183_v15  ;;  %vm585_vm3 = vmor %vm200_vm6, %vm201_vm0  ;;  %v212_v26 = vsub.f32 1.0, %v211_v16  ;;  %361 = vrcp.f32 %v548_v6 }
  0x27   :  { %316 = vst [vmem:[%s670_s2 + $0x8] sm:$0xff] %v163_v17  ;;  %v173_v27 = vsel %vm561_vm1, %v352_v51, %v169_v18  ;;  %v199_v29 = vadd.f32 %v356_v60, %v198_v22  ;;  %vm205_vm5 = vcmp.eq.f32.partialorder %v204_v54, 8.507059e+37  ;;  %v96_v31 = vsub.f32 0.0, %v479_v20  ;;  %vm217_vm6 = vmor %vm215_vm11, %vm216_vm4 }
  0x28   :  { %v178_v32 = vsel %vm519_vm8, %v177_v46, %v173_v27  ;;  %v188_v28 = vsel %vm574_vm2, %v354_v55, %v184_v24  ;;  %v213_v33 = vmul.f32 %v358_v8, %v212_v26  ;;  %363 = vrcp.f32 %v550_v7 }
  0x29   :  { %v360_v34 = vpop.eup %359  ;;  %317 = vst [vmem:[%s670_s2 + $0x10] sm:$0xff] %v178_v32  ;;  %v193_v35 = vsel %vm524_vm10, %v192_v50, %v188_v28  ;;  %v203_v20 = vsel %vm585_vm3, %v356_v60, %v199_v29  ;;  %v222_v36 = vor.u32 1.1754944e-38, %v221_v23  ;;  %vm220_vm7 = vcmp.eq.f32.partialorder %v219_v59, 8.507059e+37 }
  0x2a   :  { %318 = vst [vmem:[%s670_s2 + $0x18] sm:$0xff] %v193_v35  ;;  %v208_v38 = vsel %vm205_vm5, %v207_v58, %v203_v20  ;;  %v214_v39 = vadd.f32 %v358_v8, %v213_v33  ;;  %v131_v40 = vadd.f32 1.0, %v360_v34  ;;  %v117_v41 = vmul.f32 1.442695, %v96_v31 }
  0x2b   :  { %319 = vst [vmem:[%s670_s2 + $0x20] sm:$0xff] %v208_v38  ;;  %v97_v44 = vsub.f32 0.0, %v481_v21  ;;  %v98_v37 = vsub.f32 0.0, %v492_v30  ;;  %vm230_vm8 = vweird.f32 %v548_v6  ;;  %v234_v48 = vand.u32 2147483647, %v548_v6 }
  0x2c   :  { %v362_v42 = vpop.eup %361  ;;  %v218_v43 = vsel %vm217_vm6, %v358_v8, %v214_v39  ;;  %v236_v49 = vand.u32 2147483648, %v548_v6  ;;  %365 = vrcp.f32 %v131_v40  ;;  %vm245_vm10 = vweird.f32 %v550_v7 }
  0x2d   :  { %v223_v45 = vsel %vm220_vm7, %v222_v36, %v218_v43  ;;  %v226_v46 = vmul.f32 %v362_v42, %v548_v6  ;;  %vm231_vm9 = vweird.f32 %v362_v42  ;;  %367 = vpow2.f32 %v117_v41 }
  0x2e   :  { %v364_v47 = vpop.eup %363  ;;  %320 = vst [vmem:[%s670_s2 + $0x28] sm:$0xff] %v223_v45  ;;  %v251_v30 = vand.u32 2147483648, %v550_v7  ;;  %v119_v51 = vmul.f32 1.442695, %v97_v44  ;;  %v121_v52 = vmul.f32 1.442695, %v98_v37  ;;  %vm628_vm12 = vmor %vm230_vm8, %vm231_vm9  ;;  %vm260_vm0 = vweird.f32 %v131_v40 }
  0x2f   :  { %v227_v50 = vsub.f32 1.0, %v226_v46  ;;  %v241_v21 = vmul.f32 %v364_v47, %v550_v7  ;;  %vm246_vm11 = vweird.f32 %v364_v47  ;;  %v249_v55 = vand.u32 2147483647, %v550_v7 }
  0x30   :  { %v237_v57 = vor.u32 1.1754944e-38, %v236_v49  ;;  %369 = vpow2.f32 %v119_v51  ;;  %vm235_vm13 = vcmp.eq.f32.partialorder %v234_v48, 8.507059e+37  ;;  %vm634_vm14 = vmor %vm245_vm10, %vm246_vm11  ;;  %v252_v62 = vor.u32 1.1754944e-38, %v251_v30 }
  0x31   :  { %v228_v53 = vmul.f32 %v362_v42, %v227_v50  ;;  %v242_v54 = vsub.f32 1.0, %v241_v21  ;;  %371 = vpow2.f32 %v121_v52  ;;  %vm250_vm15 = vcmp.eq.f32.partialorder %v249_v55, 8.507059e+37 }
  0x32   :  { %v366_v60 = vpop.eup %365  ;;  %v266_v4 = vand.u32 2147483648, %v131_v40  ;;  %v264_v8 = vand.u32 2147483647, %v131_v40 }
  0x33   :  { %v229_v58 = vadd.f32 %v362_v42, %v228_v53  ;;  %v243_v59 = vmul.f32 %v364_v47, %v242_v54  ;;  %v368_v63 = vpop.eup %367  ;;  %v256_v2 = vmul.f32 %v366_v60, %v131_v40  ;;  %vm261_vm1 = vweird.f32 %v366_v60 }
  0x34   :  { %v132_v5 = vadd.f32 1.0, %v368_v63  ;;  %vm262_vm2 = vmor %vm260_vm0, %vm261_vm1  ;;  %v267_v14 = vor.u32 1.1754944e-38, %v266_v4  ;;  %vm265_vm3 = vcmp.eq.f32.partialorder %v264_v8, 8.507059e+37 }
  0x35   :  { %v233_v0 = vsel %vm628_vm12, %v362_v42, %v229_v58  ;;  %v244_v1 = vadd.f32 %v364_v47, %v243_v59  ;;  %v257_v7 = vsub.f32 1.0, %v256_v2 }
  0x36   :  { %v238_v3 = vsel %vm235_vm13, %v237_v57, %v233_v0  ;;  %v370_v9 = vpop.eup %369  ;;  %373 = vrcp.f32 %v132_v5  ;;  %v279_v22 = vand.u32 2147483647, %v132_v5  ;;  %v281_v23 = vand.u32 2147483648, %v132_v5 }
  0x37   :  { %321 = vst [vmem:[%s670_s2 + $0x30] sm:$0xff] %v238_v3  ;;  %v248_v6 = vsel %vm634_vm14, %v364_v47, %v244_v1  ;;  %v372_v11 = vpop.eup %371  ;;  %v258_v12 = vmul.f32 %v366_v60, %v257_v7  ;;  %v133_v13 = vadd.f32 1.0, %v370_v9  ;;  %vm275_vm4 = vweird.f32 %v132_v5 }
  0x38   :  { %v253_v10 = vsel %vm250_vm15, %v252_v62, %v248_v6  ;;  %v134_v15 = vadd.f32 1.0, %v372_v11  ;;  %vm652_vm6 = vcmp.eq.f32.partialorder %v279_v22, 8.507059e+37  ;;  %v282_v31 = vor.u32 1.1754944e-38, %v281_v23 }
  0x39   :  { %322 = vst [vmem:[%s670_s2 + $0x38] sm:$0xff] %v253_v10  ;;  %v259_v16 = vadd.f32 %v366_v60, %v258_v12  ;;  %375 = vrcp.f32 %v133_v13  ;;  %vm290_vm7 = vweird.f32 %v133_v13  ;;  %v294_v33 = vand.u32 2147483647, %v133_v13 }
  0x3a   :  { %377 = vrcp.f32 %v134_v15  ;;  %v296_v34 = vand.u32 2147483648, %v133_v13  ;;  %vm305_vm10 = vweird.f32 %v134_v15  ;;  %v311_v36 = vand.u32 2147483648, %v134_v15 }
  0x3b   :  { %v263_v17 = vsel %vm262_vm2, %v366_v60, %v259_v16  ;;  %v309_v40 = vand.u32 2147483647, %v134_v15  ;;  %vm295_vm13 = vcmp.eq.f32.partialorder %v294_v33, 8.507059e+37 }
  0x3c   :  { %v374_v18 = vpop.eup %373  ;;  %v268_v19 = vsel %vm265_vm3, %v267_v14, %v263_v17  ;;  %v297_v43 = vor.u32 1.1754944e-38, %v296_v34  ;;  %v312_v46 = vor.u32 1.1754944e-38, %v311_v36 }
  0x3d   :  { %323 = vst [vmem:[%s670_s2 + $0x40] sm:$0xff] %v268_v19  ;;  %v271_v24 = vmul.f32 %v374_v18, %v132_v5  ;;  %vm276_vm5 = vweird.f32 %v374_v18  ;;  %vm310_vm15 = vcmp.eq.f32.partialorder %v309_v40, 8.507059e+37 }
  0x3e   :  { %vm277_vm8 = vmor %vm275_vm4, %vm276_vm5 }
  0x3f   :  { %v376_v25 = vpop.eup %375  ;;  %v272_v26 = vsub.f32 1.0, %v271_v24 }
  0x40   :  { %v378_v27 = vpop.eup %377  ;;  %v286_v32 = vmul.f32 %v376_v25, %v133_v13  ;;  %vm291_vm9 = vweird.f32 %v376_v25 }
  0x41   :  { %v273_v28 = vmul.f32 %v374_v18, %v272_v26  ;;  %v301_v35 = vmul.f32 %v378_v27, %v134_v15  ;;  %vm306_vm11 = vweird.f32 %v378_v27  ;;  %vm292_vm12 = vmor %vm290_vm7, %vm291_vm9 }
  0x42   :  { %v287_v20 = vsub.f32 1.0, %v286_v32  ;;  %vm307_vm14 = vmor %vm305_vm10, %vm306_vm11 }
  0x43   :  { %v274_v38 = vadd.f32 %v374_v18, %v273_v28  ;;  %v302_v39 = vsub.f32 1.0, %v301_v35 }
  0x44   :  { %v288_v41 = vmul.f32 %v376_v25, %v287_v20 }
  0x45   :  { %v278_v42 = vsel %vm277_vm8, %v374_v18, %v274_v38  ;;  %v303_v44 = vmul.f32 %v378_v27, %v302_v39 }
  0x46   :  { %v283_v37 = vsel %vm652_vm6, %v282_v31, %v278_v42  ;;  %v289_v45 = vadd.f32 %v376_v25, %v288_v41 }
  0x47   :  { %324 = vst [vmem:[%s670_s2 + $0x48] sm:$0xff] %v283_v37  ;;  %v304_v47 = vadd.f32 %v378_v27, %v303_v44 }
  0x48   :  { %v293_v48 = vsel %vm292_vm12, %v376_v25, %v289_v45 }
  0x49   :  { %v298_v49 = vsel %vm295_vm13, %v297_v43, %v293_v48  ;;  %v308_v50 = vsel %vm307_vm14, %v378_v27, %v304_v47 }
  0x4a   :  { %325 = vst [vmem:[%s670_s2 + $0x50] sm:$0xff] %v298_v49  ;;  %v313_v21 = vsel %vm310_vm15, %v312_v46, %v308_v50 }
  0x4b   :  { %326 = vst [vmem:[%s670_s2 + $0x58] sm:$0xff] %v313_v21 }

// kernel: yolo_head_forward.7
= control target key start
LH: loop header
LB: loop body
LE: loop exit
PB: predicated region body
PF: predicated region fallthrough
CT: control target
= control target key end

     0   :  { %s1773_s1 = inlined_call_operand.vmem [shape: bf16[640,128], index: 1, kind: input, shape index: {}]   ;;  %s1774_s0 = inlined_call_operand.vmem [shape: bf16[104,640], index: 0, kind: input, shape index: {}]   ;;  %s1775_s2 = inlined_call_operand.vmem [shape: f32[1,128], index: 2, kind: input, shape index: {}]   ;;  %s1776_s3 = inlined_call_operand.vmem [shape: f32[1,128], index: 3, kind: input, shape index: {}]   ;;  %s1777_s4 = inlined_call_operand.vmem [shape: bf16[104,128], index: 4, kind: output, shape index: {}]  }
   0x1   :  { %v1257_v0 = vld [vmem:[%s1773_s1 + $0x38] sm:$0xff]  ;;  %v1256_v1 = vld [vmem:[%s1773_s1 + $0x30] sm:$0xff]  ;;  %v1255_v2 = vld [vmem:[%s1773_s1 + $0x28] sm:$0xff] }
   0x2   :  { %1325 = vmatpush.bf16.msra.mxu1 %v1257_v0  ;;  %1326 = vmatpush.bf16.msra.mxu2 %v1257_v0  ;;  %v1254_v3 = vld [vmem:[%s1773_s1 + $0x20] sm:$0xff]  ;;  %v1253_v4 = vld [vmem:[%s1773_s1 + $0x18] sm:$0xff]  ;;  %v1252_v5 = vld [vmem:[%s1773_s1 + $0x10] sm:$0xff] }
   0x3   :  { %1327 = vmatpush.bf16.msra.mxu3 %v1257_v0  ;;  %580 = vmatpush.bf16.msra.mxu0 %v1257_v0  ;;  %v1251_v6 = vld [vmem:[%s1773_s1 + $0x8] sm:$0xff]  ;;  %v1400_v7 = vld [vmem:[%s1774_s0 + $0xf0] sm:$0xff]  ;;  %v1250_v8 = vld [vmem:[%s1773_s1] sm:$0xff] }
   0x4   :  { %v982_v9 = vld [vmem:[%s1774_s0 + $0x50] sm:$0xf]  ;;  %v1232_v10 = vld [vmem:[%s1774_s0 + $0x60] sm:$0xf0]  ;;  %v1022_v11 = vld [vmem:[%s1774_s0 + $0xa0] sm:$0xf]  ;;  %v265_v15 = vunpack.c.l.b16 %v1400_v7 }
   0x5   :  { %v1242_v12 = vld [vmem:[%s1774_s0 + $0xb0] sm:$0xf0]  ;;  %v942_v13 = vld [vmem:[%s1774_s0] sm:$0xf]  ;;  %v1281_v16 = vld [vmem:[%s1773_s1 + $0xf8] sm:$0xff]  ;;  %v983_v18 = vor.u32 %v1232_v10, %v982_v9 }
   0x6   :  { %1328 = vmatpush.bf16.msra.mxu1 %v1256_v1  ;;  %1329 = vmatpush.bf16.msra.mxu2 %v1256_v1  ;;  %v1222_v14 = vld [vmem:[%s1774_s0 + $0x10] sm:$0xf0]  ;;  %v1273_v17 = vld [vmem:[%s1773_s1 + $0xb8] sm:$0xff]  ;;  %v1023_v19 = vor.u32 %v1242_v12, %v1022_v11  ;;  %v300_v23 = vpack.c.b16 %v265_v15, %v265_v15  ;;  %v1279_v28 = vld [vmem:[%s1773_s1 + $0xe8] sm:$0xff] }
   0x7   :  { %1330 = vmatpush.bf16.msra.mxu3 %v1256_v1  ;;  %581 = vmatpush.bf16.msra.mxu0 %v1256_v1  ;;  %v1265_v20 = vld [vmem:[%s1773_s1 + $0x78] sm:$0xff]  ;;  %v943_v21 = vor.u32 %v1222_v14, %v942_v13  ;;  %v1280_v24 = vld [vmem:[%s1773_s1 + $0xf0] sm:$0xff]  ;;  %v1271_v29 = vld [vmem:[%s1773_s1 + $0xa8] sm:$0xff] }
   0x8   :  { %v1289_v22 = vld [vmem:[%s1773_s1 + $0x138] sm:$0xff]  ;;  %v1272_v25 = vld [vmem:[%s1773_s1 + $0xb0] sm:$0xff]  ;;  %v1263_v30 = vld [vmem:[%s1773_s1 + $0x68] sm:$0xff] }
   0x9   :  { %v1264_v26 = vld [vmem:[%s1773_s1 + $0x70] sm:$0xff]  ;;  %v1287_v31 = vld [vmem:[%s1773_s1 + $0x128] sm:$0xff]  ;;  %v1278_v32 = vld [vmem:[%s1773_s1 + $0xe0] sm:$0xff] }
   0xa   :  { %1331 = vmatpush.bf16.msra.mxu1 %v1255_v2  ;;  %1332 = vmatpush.bf16.msra.mxu2 %v1255_v2  ;;  %v1288_v27 = vld [vmem:[%s1773_s1 + $0x130] sm:$0xff]  ;;  %v1270_v33 = vld [vmem:[%s1773_s1 + $0xa0] sm:$0xff]  ;;  %v1002_v35 = vld [vmem:[%s1774_s0 + $0x78] sm:$0xf] }
   0xb   :  { %1333 = vmatpush.bf16.msra.mxu3 %v1255_v2  ;;  %582 = vmatpush.bf16.msra.mxu0 %v1255_v2  ;;  %v1262_v34 = vld [vmem:[%s1773_s1 + $0x60] sm:$0xff]  ;;  %v1237_v36 = vld [vmem:[%s1774_s0 + $0x88] sm:$0xf0]  ;;  %v1042_v37 = vld [vmem:[%s1774_s0 + $0xc8] sm:$0xf] }
   0xc   :  { %v1247_v38 = vld [vmem:[%s1774_s0 + $0xd8] sm:$0xf0]  ;;  %v1286_v39 = vld [vmem:[%s1773_s1 + $0x120] sm:$0xff]  ;;  %v962_v40 = vld [vmem:[%s1774_s0 + $0x28] sm:$0xf]  ;;  %v1003_v44 = vor.u32 %v1237_v36, %v1002_v35 }
   0xd   :  { %v1227_v41 = vld [vmem:[%s1774_s0 + $0x38] sm:$0xf0]  ;;  %v1043_v45 = vor.u32 %v1247_v38, %v1042_v37  ;;  %v1276_v49 = vld [vmem:[%s1773_s1 + $0xd0] sm:$0xff]  ;;  %v1275_v53 = vld [vmem:[%s1773_s1 + $0xc8] sm:$0xff] }
   0xe   :  { %1334 = vmatpush.bf16.msra.mxu1 %v1254_v3  ;;  %1335 = vmatpush.bf16.msra.mxu2 %v1254_v3  ;;  %v1277_v42 = vld [vmem:[%s1773_s1 + $0xd8] sm:$0xff]  ;;  %v963_v47 = vor.u32 %v1227_v41, %v962_v40  ;;  %v1268_v50 = vld [vmem:[%s1773_s1 + $0x90] sm:$0xff]  ;;  %v1267_v54 = vld [vmem:[%s1773_s1 + $0x88] sm:$0xff] }
   0xf   :  { %1336 = vmatpush.bf16.msra.mxu3 %v1254_v3  ;;  %583 = vmatpush.bf16.msra.mxu0 %v1254_v3  ;;  %v1269_v43 = vld [vmem:[%s1773_s1 + $0x98] sm:$0xff]  ;;  %v1260_v51 = vld [vmem:[%s1773_s1 + $0x50] sm:$0xff]  ;;  %v1259_v55 = vld [vmem:[%s1773_s1 + $0x48] sm:$0xff] }
  0x10   :  { %v1261_v46 = vld [vmem:[%s1773_s1 + $0x58] sm:$0xff]  ;;  %v1284_v52 = vld [vmem:[%s1773_s1 + $0x110] sm:$0xff]  ;;  %v1274_v56 = vld [vmem:[%s1773_s1 + $0xc0] sm:$0xff] }
  0x11   :  { %v1285_v48 = vld [vmem:[%s1773_s1 + $0x118] sm:$0xff]  ;;  %v1283_v57 = vld [vmem:[%s1773_s1 + $0x108] sm:$0xff]  ;;  %v1266_v58 = vld [vmem:[%s1773_s1 + $0x80] sm:$0xff] }
  0x12   :  { %1337 = vmatpush.bf16.msra.mxu1 %v1253_v4  ;;  %1338 = vmatpush.bf16.msra.mxu2 %v1253_v4  ;;  %v1221_v59 = vld [vmem:[%s1774_s0 + $0xc] sm:$0xf]  ;;  %v952_v60 = vld [vmem:[%s1774_s0 + $0x1c] sm:$0xf0]  ;;  %v1220_v62 = vld [vmem:[%s1774_s0 + $0x4] sm:$0xf] }
  0x13   :  { %1339 = vmatpush.bf16.msra.mxu3 %v1253_v4  ;;  %584 = vmatpush.bf16.msra.mxu0 %v1253_v4  ;;  %v1258_v61 = vld [vmem:[%s1773_s1 + $0x40] sm:$0xff]  ;;  %v944_v63 = vld [vmem:[%s1774_s0 + $0x14] sm:$0xf0]  ;;  %v950_v0 = vld [vmem:[%s1774_s0 + $0x8] sm:$0xf]  ;;  %v955_v2 = vor.u32 %v1221_v59, %v952_v60 }
  0x14   :  { %v1223_v1 = vld [vmem:[%s1774_s0 + $0x18] sm:$0xf0]  ;;  %v1282_v3 = vld [vmem:[%s1773_s1 + $0x100] sm:$0xff]  ;;  %v958_v4 = vld [vmem:[%s1774_s0 + $0x10] sm:$0xf] }
  0x15   :  { %v1226_v10 = vld [vmem:[%s1774_s0 + $0x34] sm:$0xf]  ;;  %v972_v11 = vld [vmem:[%s1774_s0 + $0x44] sm:$0xf0]  ;;  %v1225_v12 = vld [vmem:[%s1774_s0 + $0x2c] sm:$0xf] }
  0x16   :  { %1340 = vmatpush.bf16.msra.mxu1 %v1252_v5  ;;  %1341 = vmatpush.bf16.msra.mxu2 %v1252_v5  ;;  %v964_v13 = vld [vmem:[%s1774_s0 + $0x3c] sm:$0xf0]  ;;  %v970_v14 = vld [vmem:[%s1774_s0 + $0x30] sm:$0xf]  ;;  %v1228_v15 = vld [vmem:[%s1774_s0 + $0x40] sm:$0xf0] }
  0x17   :  { %1342 = vmatpush.bf16.msra.mxu3 %v1252_v5  ;;  %585 = vmatpush.bf16.msra.mxu0 %v1252_v5  ;;  %v1224_v5 = vld [vmem:[%s1774_s0 + $0x20] sm:$0xf0]  ;;  %v1012_v35 = vld [vmem:[%s1774_s0 + $0x94] sm:$0xf0]  ;;  %v1235_v36 = vld [vmem:[%s1774_s0 + $0x7c] sm:$0xf] }
  0x18   :  { %v959_v9 = vor.u32 %v1224_v5, %v958_v4  ;;  %v1004_v37 = vld [vmem:[%s1774_s0 + $0x8c] sm:$0xf0]  ;;  %v1010_v38 = vld [vmem:[%s1774_s0 + $0x80] sm:$0xf]  ;;  %v1018_v41 = vld [vmem:[%s1774_s0 + $0x88] sm:$0xf] }
  0x19   :  { %v1052_v59 = vld [vmem:[%s1774_s0 + $0xe4] sm:$0xf0]  ;;  %v1245_v60 = vld [vmem:[%s1774_s0 + $0xcc] sm:$0xf] }
  0x1a   :  { %1343 = vmatpush.bf16.msra.mxu1 %v1251_v6  ;;  %1344 = vmatpush.bf16.msra.mxu2 %v1251_v6 }
  0x1b   :  { %1345 = vmatpush.bf16.msra.mxu3 %v1251_v6  ;;  %586 = vmatpush.bf16.msra.mxu0 %v1251_v6  ;;  %v947_v6 = vor.u32 %v1220_v62, %v944_v63  ;;  %v1050_v62 = vld [vmem:[%s1774_s0 + $0xd0] sm:$0xf]  ;;  %v1248_v63 = vld [vmem:[%s1774_s0 + $0xe0] sm:$0xf0] }
  0x1c   :  { %v1051_v4 = vor.u32 %v1248_v63, %v1050_v62 }
  0x1e   :  { %1346 = vmatpush.bf16.msra.mxu1 %v1250_v8  ;;  %1347 = vmatpush.bf16.msra.mxu2 %v1250_v8 }
  0x1f   :  { %1348 = vmatpush.bf16.msra.mxu3 %v1250_v8  ;;  %587 = vmatpush.bf16.msra.mxu0 %v1250_v8  ;;  %v951_v8 = vor.u32 %v1223_v1, %v950_v0  ;;  %v1058_v1 = vld [vmem:[%s1774_s0 + $0xd8] sm:$0xf] }
  0x21   :  { %598 = vmatmul.bf16.vlgmr.msra.gmra.mxu1 %v983_v18  ;;  %608 = vmatmul.bf16.vlgmr.msra.gmra.mxu2 %v1023_v19  ;;  %v1229_v18 = vld [vmem:[%s1774_s0 + $0x48] sm:$0xf0]  ;;  %v967_v19 = vor.u32 %v1225_v12, %v964_v13 }
  0x22   :  { %666 = vmatpush.bf16.msrb.mxu2 %v1273_v17  ;;  %623 = vmatpush.bf16.msrb.mxu1 %v1265_v20  ;;  %v978_v17 = vld [vmem:[%s1774_s0 + $0x38] sm:$0xf]  ;;  %v971_v20 = vor.u32 %v1228_v15, %v970_v14 }
  0x23   :  { %709 = vmatpush.bf16.msrb.mxu3 %v1281_v16  ;;  %588 = vmatmul.bf16.vlgmr.msra.gmra.mxu0 %v943_v21  ;;  %v975_v16 = vor.u32 %v1226_v10, %v972_v11  ;;  %v979_v21 = vor.u32 %v1229_v18, %v978_v17  ;;  %v266_v10 = vunpack.c.h.b16 %v1400_v7 }
  0x24   :  { %752 = vmatpush.bf16.msrb.mxu0 %v1289_v22  ;;  %618 = vmatmul.bf16.vlgmr.msra.gmra.mxu3 %v300_v23  ;;  %v1231_v22 = vld [vmem:[%s1774_s0 + $0x5c] sm:$0xf]  ;;  %v992_v23 = vld [vmem:[%s1774_s0 + $0x6c] sm:$0xf0] }
  0x25   :  { %v301_v14 = vpack.c.b16 %v266_v10, %v266_v10 }
  0x26   :  { %667 = vmatpush.bf16.msrb.mxu2 %v1272_v25  ;;  %624 = vmatpush.bf16.msrb.mxu1 %v1264_v26  ;;  %v984_v25 = vld [vmem:[%s1774_s0 + $0x64] sm:$0xf0]  ;;  %v990_v26 = vld [vmem:[%s1774_s0 + $0x58] sm:$0xf] }
  0x27   :  { %710 = vmatpush.bf16.msrb.mxu3 %v1280_v24  ;;  %v1230_v24 = vld [vmem:[%s1774_s0 + $0x54] sm:$0xf] }
  0x28   :  { %753 = vmatpush.bf16.msrb.mxu0 %v1288_v27  ;;  %v1233_v27 = vld [vmem:[%s1774_s0 + $0x68] sm:$0xf0] }
  0x2a   :  { %668 = vmatpush.bf16.msrb.mxu2 %v1271_v29  ;;  %625 = vmatpush.bf16.msrb.mxu1 %v1263_v30  ;;  %v998_v29 = vld [vmem:[%s1774_s0 + $0x60] sm:$0xf]  ;;  %v1234_v30 = vld [vmem:[%s1774_s0 + $0x70] sm:$0xf0] }
  0x2b   :  { %711 = vmatpush.bf16.msrb.mxu3 %v1279_v28  ;;  %v995_v28 = vor.u32 %v1231_v22, %v992_v23 }
  0x2c   :  { %754 = vmatpush.bf16.msrb.mxu0 %v1287_v31  ;;  %v987_v31 = vor.u32 %v1230_v24, %v984_v25 }
  0x2e   :  { %669 = vmatpush.bf16.msrb.mxu2 %v1270_v33  ;;  %626 = vmatpush.bf16.msrb.mxu1 %v1262_v34  ;;  %v999_v33 = vor.u32 %v1234_v30, %v998_v29  ;;  %v1236_v34 = vld [vmem:[%s1774_s0 + $0x84] sm:$0xf] }
  0x2f   :  { %712 = vmatpush.bf16.msrb.mxu3 %v1278_v32  ;;  %v991_v32 = vor.u32 %v1233_v27, %v990_v26  ;;  %v1015_v40 = vor.u32 %v1236_v34, %v1012_v35 }
  0x30   :  { %755 = vmatpush.bf16.msrb.mxu0 %v1286_v39  ;;  %v1238_v39 = vld [vmem:[%s1774_s0 + $0x90] sm:$0xf0] }
  0x31   :  { %603 = vmatmul.bf16.gmra.mxu1 %v1003_v44  ;;  %613 = vmatmul.bf16.gmra.mxu2 %v1043_v45  ;;  %v1011_v44 = vor.u32 %v1238_v39, %v1010_v38 }
  0x32   :  { %670 = vmatpush.bf16.msrb.mxu2 %v1269_v43  ;;  %627 = vmatpush.bf16.msrb.mxu1 %v1261_v46  ;;  %v1007_v43 = vor.u32 %v1235_v36, %v1004_v37  ;;  %v1241_v46 = vld [vmem:[%s1774_s0 + $0xac] sm:$0xf] }
  0x33   :  { %713 = vmatpush.bf16.msrb.mxu3 %v1277_v42  ;;  %593 = vmatmul.bf16.gmra.mxu0 %v963_v47  ;;  %v1239_v42 = vld [vmem:[%s1774_s0 + $0x98] sm:$0xf0]  ;;  %v1032_v47 = vld [vmem:[%s1774_s0 + $0xbc] sm:$0xf0] }
  0x34   :  { %756 = vmatpush.bf16.msrb.mxu0 %v1285_v48  ;;  %v1019_v45 = vor.u32 %v1239_v42, %v1018_v41  ;;  %v1240_v48 = vld [vmem:[%s1774_s0 + $0xa4] sm:$0xf] }
  0x36   :  { %671 = vmatpush.bf16.msrb.mxu2 %v1268_v50  ;;  %628 = vmatpush.bf16.msrb.mxu1 %v1260_v51  ;;  %v1030_v50 = vld [vmem:[%s1774_s0 + $0xa8] sm:$0xf]  ;;  %v1243_v51 = vld [vmem:[%s1774_s0 + $0xb8] sm:$0xf0] }
  0x37   :  { %714 = vmatpush.bf16.msrb.mxu3 %v1276_v49  ;;  %v1024_v49 = vld [vmem:[%s1774_s0 + $0xb4] sm:$0xf0] }
  0x38   :  { %757 = vmatpush.bf16.msrb.mxu0 %v1284_v52  ;;  %v1035_v52 = vor.u32 %v1241_v46, %v1032_v47 }
  0x3a   :  { %672 = vmatpush.bf16.msrb.mxu2 %v1267_v54  ;;  %629 = vmatpush.bf16.msrb.mxu1 %v1259_v55  ;;  %v1244_v54 = vld [vmem:[%s1774_s0 + $0xc0] sm:$0xf0]  ;;  %v1027_v55 = vor.u32 %v1240_v48, %v1024_v49 }
  0x3b   :  { %715 = vmatpush.bf16.msrb.mxu3 %v1275_v53  ;;  %v1038_v53 = vld [vmem:[%s1774_s0 + $0xb0] sm:$0xf] }
  0x3c   :  { %758 = vmatpush.bf16.msrb.mxu0 %v1283_v57  ;;  %v1039_v57 = vor.u32 %v1244_v54, %v1038_v53 }
  0x3e   :  { %673 = vmatpush.bf16.msrb.mxu2 %v1266_v58  ;;  %630 = vmatpush.bf16.msrb.mxu1 %v1258_v61  ;;  %v1246_v58 = vld [vmem:[%s1774_s0 + $0xd4] sm:$0xf]  ;;  %v1044_v61 = vld [vmem:[%s1774_s0 + $0xdc] sm:$0xf0] }
  0x3f   :  { %716 = vmatpush.bf16.msrb.mxu3 %v1274_v56  ;;  %v1031_v56 = vor.u32 %v1243_v51, %v1030_v50  ;;  %v1055_v0 = vor.u32 %v1246_v58, %v1052_v59 }
  0x40   :  { %759 = vmatpush.bf16.msrb.mxu0 %v1282_v3  ;;  %v1047_v3 = vor.u32 %v1245_v60, %v1044_v61 }
  0x41   :  { %631 = vmatmul.bf16.vlgmr.msrb.gmra.mxu1 %v947_v6  ;;  %674 = vmatmul.bf16.vlgmr.msrb.gmra.mxu2 %v951_v8  ;;  %v84_v6 = vld [vmem:[%s1774_s0 + $0xf8] sm:$0xff] }
  0x42   :  { %717 = vmatmul.bf16.vlgmr.msrb.gmra.mxu3 %v955_v2  ;;  %v1249_v2 = vld [vmem:[%s1774_s0 + $0xe8] sm:$0xf0]  ;;  %v268_v8 = vunpack.c.h.b16 %v84_v6  ;;  %v267_v11 = vunpack.c.l.b16 %v84_v6 }
  0x43   :  { %760 = vmatmul.bf16.vlgmr.msrb.gmra.mxu0 %v959_v9  ;;  %v1059_v5 = vor.u32 %v1249_v2, %v1058_v1  ;;  %v85_v9 = vld [vmem:[%s1774_s0 + $0x100] sm:$0xf] }
  0x44   :  { %v269_v12 = vunpack.c.l.b16 %v85_v9  ;;  %v303_v13 = vpack.c.b16 %v268_v8, %v268_v8  ;;  %v302_v15 = vpack.c.b16 %v267_v11, %v267_v11 }
  0x46   :  { %v304_v17 = vpack.c.b16 %v269_v12, %v269_v12 }
  0x51   :  { %636 = vmatmul.bf16.gmra.mxu1 %v967_v19  ;;  %679 = vmatmul.bf16.gmra.mxu2 %v971_v20 }
  0x52   :  { %722 = vmatmul.bf16.gmra.mxu3 %v975_v16 }
  0x53   :  { %765 = vmatmul.bf16.gmra.mxu0 %v979_v21 }
  0x61   :  { %641 = vmatmul.bf16.gmra.mxu1 %v987_v31  ;;  %684 = vmatmul.bf16.gmra.mxu2 %v991_v32 }
  0x62   :  { %727 = vmatmul.bf16.gmra.mxu3 %v995_v28 }
  0x63   :  { %770 = vmatmul.bf16.gmra.mxu0 %v999_v33 }
  0x71   :  { %646 = vmatmul.bf16.gmra.mxu1 %v1007_v43  ;;  %689 = vmatmul.bf16.gmra.mxu2 %v1011_v44 }
  0x72   :  { %732 = vmatmul.bf16.gmra.mxu3 %v1015_v40  ;;  %v1710_v40 = vld [vmem:[%s1775_s2] ss:$0 sm:$0xff] }
  0x73   :  { %775 = vmatmul.bf16.gmra.mxu0 %v1019_v45  ;;  %v1716_v45 = vld [vmem:[%s1776_s3] ss:$0 sm:$0xff] }
  0x81   :  { %651 = vmatmul.bf16.gmra.mxu1 %v1027_v55  ;;  %694 = vmatmul.bf16.gmra.mxu2 %v1031_v56 }
  0x82   :  { %737 = vmatmul.bf16.gmra.mxu3 %v1035_v52 }
  0x83   :  { %780 = vmatmul.bf16.gmra.mxu0 %v1039_v57 }
  0x91   :  { %656 = vmatmul.bf16.gmra.mxu1 %v1047_v3  ;;  %699 = vmatmul.bf16.gmra.mxu2 %v1051_v4 }
  0x92   :  { %742 = vmatmul.bf16.gmra.mxu3 %v1055_v0 }
  0x93   :  { %785 = vmatmul.bf16.gmra.mxu0 %v1059_v5 }
  0x9e   :  { %v1689_v16 = vpop.f32.mrf.mxu1 }
  0xa0   :  { %v589_v18 = vpop.f32.mrf.mxu0 }
  0xa1   :  { %661 = vmatmul.bf16.gmra.mxu1 %v301_v14  ;;  %704 = vmatmul.bf16.gmra.mxu2 %v302_v15 }
  0xa2   :  { %747 = vmatmul.bf16.gmra.mxu3 %v303_v13 }
  0xa3   :  { %790 = vmatmul.bf16.gmra.mxu0 %v304_v17 }
  0xa4   :  { %v1691_v19 = vpop.f32.mrf.mxu2 }
  0xa6   :  { %v1693_v20 = vpop.f32.mrf.mxu1 }
  0xa7   :  { %v1695_v21 = vpop.f32.mrf.mxu3 }
  0xa8   :  { %v591_v7 = vpop.f32.mrf.mxu0 }
  0xac   :  { %v1697_v22 = vpop.f32.mrf.mxu2 }
  0xae   :  { %v1699_v23 = vpop.f32.mrf.mxu1 }
  0xaf   :  { %v621_v24 = vpop.f32.mrf.mxu3 }
  0xb0   :  { %v594_v25 = vpop.f32.mrf.mxu0 }
  0xb4   :  { %v1701_v26 = vpop.f32.mrf.mxu2 }
  0xb6   :  { %v1703_v27 = vpop.f32.mrf.mxu1 }
  0xb8   :  { %v596_v28 = vpop.f32.mrf.mxu0 }
  0xbc   :  { %v1705_v29 = vpop.f32.mrf.mxu2 }
  0xbe   :  { %v632_v30 = vpop.f32.mrf.mxu1 }
  0xbf   :  { %v633_v33 = vadd.f32 %v632_v30, %v589_v18 }
  0xc0   :  { %v761_v31 = vpop.f32.mrf.mxu0 }
  0xc4   :  { %v675_v34 = vpop.f32.mrf.mxu2 }
  0xc5   :  { %v718_v32 = vpop.f32.mrf.mxu3  ;;  %v676_v35 = vadd.f32 %v675_v34, %v633_v33 }
  0xc6   :  { %v634_v36 = vpop.f32.mrf.mxu1 }
  0xc7   :  { %v719_v37 = vadd.f32 %v718_v32, %v676_v35  ;;  %v635_v42 = vadd.f32 %v634_v36, %v591_v7 }
  0xc8   :  { %v763_v38 = vpop.f32.mrf.mxu0 }
  0xc9   :  { %v762_v39 = vadd.f32 %v761_v31, %v719_v37 }
  0xcb   :  { %v841_v44 = vmul.f32 %v1710_v40, %v762_v39 }
  0xcc   :  { %v677_v43 = vpop.f32.mrf.mxu2 }
  0xcd   :  { %v720_v41 = vpop.f32.mrf.mxu3  ;;  %v678_v46 = vadd.f32 %v677_v43, %v635_v42  ;;  %v858_v50 = vadd.f32 %v1716_v45, %v841_v44 }
  0xce   :  { %v637_v47 = vpop.f32.mrf.mxu1 }
  0xcf   :  { %v721_v48 = vadd.f32 %v720_v41, %v678_v46  ;;  %v638_v54 = vadd.f32 %v637_v47, %v594_v25  ;;  %v884_v56 = vmul.f32 0.1, %v858_v50  ;;  %vm871_vm0 = vcmp.ge.f32.partialorder %v858_v50, 0.0 }
  0xd0   :  { %v766_v49 = vpop.f32.mrf.mxu0 }
  0xd1   :  { %v764_v51 = vadd.f32 %v763_v38, %v721_v48  ;;  %v897_v63 = vsel %vm871_vm0, %v858_v50, %v884_v56 }
  0xd3   :  { %v842_v53 = vmul.f32 %v1710_v40, %v764_v51 }
  0xd4   :  { %v680_v55 = vpop.f32.mrf.mxu2 }
  0xd5   :  { %v723_v52 = vpop.f32.mrf.mxu3  ;;  %v859_v57 = vadd.f32 %v1716_v45, %v842_v53  ;;  %v681_v58 = vadd.f32 %v680_v55, %v638_v54 }
  0xd6   :  { %v639_v59 = vpop.f32.mrf.mxu1 }
  0xd7   :  { %vm872_vm1 = vcmp.ge.f32.partialorder %v859_v57, 0.0  ;;  %v885_v60 = vmul.f32 0.1, %v859_v57  ;;  %v724_v61 = vadd.f32 %v723_v52, %v681_v58  ;;  %v640_v4 = vadd.f32 %v639_v59, %v596_v28 }
  0xd8   :  { %v768_v62 = vpop.f32.mrf.mxu0 }
  0xd9   :  { %v898_v0 = vsel %vm872_vm1, %v859_v57, %v885_v60  ;;  %v767_v1 = vadd.f32 %v766_v49, %v724_v61 }
  0xda   :  { %v1293_v2 = vpack.c.bf16 %v898_v0, %v897_v63 }
  0xdb   :  { %v843_v6 = vmul.f32 %v1710_v40, %v767_v1 }
  0xdc   :  { %1294 = vst [vmem:[%s1777_s4] sm:$0xff] %v1293_v2   ;;  %v682_v5 = vpop.f32.mrf.mxu2 }
  0xdd   :  { %v725_v3 = vpop.f32.mrf.mxu3  ;;  %v683_v8 = vadd.f32 %v682_v5, %v640_v4  ;;  %v860_v12 = vadd.f32 %v1716_v45, %v843_v6 }
  0xde   :  { %v642_v9 = vpop.f32.mrf.mxu1 }
  0xdf   :  { %v726_v10 = vadd.f32 %v725_v3, %v683_v8  ;;  %v643_v17 = vadd.f32 %v642_v9, %v1689_v16  ;;  %v886_v7 = vmul.f32 0.1, %v860_v12  ;;  %vm873_vm2 = vcmp.ge.f32.partialorder %v860_v12, 0.0 }
  0xe0   :  { %v771_v11 = vpop.f32.mrf.mxu0 }
  0xe1   :  { %v769_v13 = vadd.f32 %v768_v62, %v726_v10  ;;  %v899_v33 = vsel %vm873_vm2, %v860_v12, %v886_v7 }
  0xe3   :  { %v844_v15 = vmul.f32 %v1710_v40, %v769_v13 }
  0xe4   :  { %v685_v18 = vpop.f32.mrf.mxu2 }
  0xe5   :  { %v728_v14 = vpop.f32.mrf.mxu3  ;;  %v861_v24 = vadd.f32 %v1716_v45, %v844_v15  ;;  %v686_v25 = vadd.f32 %v685_v18, %v643_v17 }
  0xe6   :  { %v644_v28 = vpop.f32.mrf.mxu1 }
  0xe7   :  { %vm874_vm3 = vcmp.ge.f32.partialorder %v861_v24, 0.0  ;;  %v887_v30 = vmul.f32 0.1, %v861_v24  ;;  %v729_v31 = vadd.f32 %v728_v14, %v686_v25  ;;  %v645_v38 = vadd.f32 %v644_v28, %v1693_v20 }
  0xe8   :  { %v773_v32 = vpop.f32.mrf.mxu0 }
  0xe9   :  { %v900_v34 = vsel %vm874_vm3, %v861_v24, %v887_v30  ;;  %v772_v35 = vadd.f32 %v771_v11, %v729_v31 }
  0xea   :  { %v1298_v36 = vpack.c.bf16 %v900_v34, %v899_v33 }
  0xeb   :  { %v845_v39 = vmul.f32 %v1710_v40, %v772_v35 }
  0xec   :  { %1320 = vst [vmem:[%s1777_s4 + $0x8] sm:$0xff] %v1298_v36   ;;  %v687_v16 = vpop.f32.mrf.mxu2 }
  0xed   :  { %v730_v37 = vpop.f32.mrf.mxu3  ;;  %v688_v41 = vadd.f32 %v687_v16, %v645_v38  ;;  %v862_v46 = vadd.f32 %v1716_v45, %v845_v39 }
  0xee   :  { %v647_v42 = vpop.f32.mrf.mxu1 }
  0xef   :  { %v731_v43 = vadd.f32 %v730_v37, %v688_v41  ;;  %v648_v50 = vadd.f32 %v647_v42, %v1699_v23  ;;  %v888_v51 = vmul.f32 0.1, %v862_v46  ;;  %vm875_vm4 = vcmp.ge.f32.partialorder %v862_v46, 0.0 }
  0xf0   :  { %v776_v44 = vpop.f32.mrf.mxu0 }
  0xf1   :  { %v774_v47 = vadd.f32 %v773_v32, %v731_v43  ;;  %v901_v58 = vsel %vm875_vm4, %v862_v46, %v888_v51 }
  0xf3   :  { %v846_v49 = vmul.f32 %v1710_v40, %v774_v47 }
  0xf4   :  { %v690_v20 = vpop.f32.mrf.mxu2 }
  0xf5   :  { %v733_v48 = vpop.f32.mrf.mxu3  ;;  %v863_v52 = vadd.f32 %v1716_v45, %v846_v49  ;;  %v691_v53 = vadd.f32 %v690_v20, %v648_v50 }
  0xf6   :  { %v649_v54 = vpop.f32.mrf.mxu1 }
  0xf7   :  { %vm876_vm5 = vcmp.ge.f32.partialorder %v863_v52, 0.0  ;;  %v889_v55 = vmul.f32 0.1, %v863_v52  ;;  %v734_v56 = vadd.f32 %v733_v48, %v691_v53  ;;  %v650_v63 = vadd.f32 %v649_v54, %v1703_v27 }
  0xf8   :  { %v778_v57 = vpop.f32.mrf.mxu0 }
  0xf9   :  { %v902_v59 = vsel %vm876_vm5, %v863_v52, %v889_v55  ;;  %v777_v60 = vadd.f32 %v776_v44, %v734_v56 }
  0xfa   :  { %v1303_v61 = vpack.c.bf16 %v902_v59, %v901_v58 }
  0xfb   :  { %v847_v0 = vmul.f32 %v1710_v40, %v777_v60 }
  0xfc   :  { %1321 = vst [vmem:[%s1777_s4 + $0x10] sm:$0xff] %v1303_v61   ;;  %v692_v23 = vpop.f32.mrf.mxu2 }
  0xfd   :  { %v735_v62 = vpop.f32.mrf.mxu3  ;;  %v693_v1 = vadd.f32 %v692_v23, %v650_v63  ;;  %v864_v5 = vadd.f32 %v1716_v45, %v847_v0 }
  0xfe   :  { %v652_v2 = vpop.f32.mrf.mxu1 }
  0xff   :  { %v736_v3 = vadd.f32 %v735_v62, %v693_v1  ;;  %v653_v10 = vadd.f32 %v652_v2, %v1691_v19  ;;  %v890_v11 = vmul.f32 0.1, %v864_v5  ;;  %vm877_vm6 = vcmp.ge.f32.partialorder %v864_v5, 0.0 }
 0x100   :  { %v781_v4 = vpop.f32.mrf.mxu0 }
 0x101   :  { %v779_v6 = vadd.f32 %v778_v57, %v736_v3  ;;  %v903_v7 = vsel %vm877_vm6, %v864_v5, %v890_v11 }
 0x103   :  { %v848_v9 = vmul.f32 %v1710_v40, %v779_v6 }
 0x104   :  { %v695_v27 = vpop.f32.mrf.mxu2 }
 0x105   :  { %v738_v8 = vpop.f32.mrf.mxu3  ;;  %v865_v12 = vadd.f32 %v1716_v45, %v848_v9  ;;  %v696_v13 = vadd.f32 %v695_v27, %v653_v10 }
 0x106   :  { %v654_v14 = vpop.f32.mrf.mxu1 }
 0x107   :  { %vm878_vm7 = vcmp.ge.f32.partialorder %v865_v12, 0.0  ;;  %v891_v15 = vmul.f32 0.1, %v865_v12  ;;  %v739_v17 = vadd.f32 %v738_v8, %v696_v13  ;;  %v655_v31 = vadd.f32 %v654_v14, %v1697_v22 }
 0x108   :  { %v783_v18 = vpop.f32.mrf.mxu0 }
 0x109   :  { %v904_v24 = vsel %vm878_vm7, %v865_v12, %v891_v15  ;;  %v782_v25 = vadd.f32 %v781_v4, %v739_v17 }
 0x10a   :  { %v1308_v28 = vpack.c.bf16 %v904_v24, %v903_v7 }
 0x10b   :  { %v849_v32 = vmul.f32 %v1710_v40, %v782_v25 }
 0x10c   :  { %1322 = vst [vmem:[%s1777_s4 + $0x18] sm:$0xff] %v1308_v28   ;;  %v697_v19 = vpop.f32.mrf.mxu2 }
 0x10d   :  { %v740_v30 = vpop.f32.mrf.mxu3  ;;  %v698_v33 = vadd.f32 %v697_v19, %v655_v31  ;;  %v866_v37 = vadd.f32 %v1716_v45, %v849_v32 }
 0x10e   :  { %v657_v34 = vpop.f32.mrf.mxu1 }
 0x10f   :  { %v741_v35 = vadd.f32 %v740_v30, %v698_v33  ;;  %v658_v41 = vadd.f32 %v657_v34, %v1701_v26  ;;  %v892_v42 = vmul.f32 0.1, %v866_v37  ;;  %vm879_vm8 = vcmp.ge.f32.partialorder %v866_v37, 0.0 }
 0x110   :  { %v786_v36 = vpop.f32.mrf.mxu0 }
 0x111   :  { %v784_v38 = vadd.f32 %v783_v18, %v741_v35  ;;  %v905_v50 = vsel %vm879_vm8, %v866_v37, %v892_v42 }
 0x113   :  { %v850_v39 = vmul.f32 %v1710_v40, %v784_v38 }
 0x114   :  { %v700_v22 = vpop.f32.mrf.mxu2 }
 0x115   :  { %v743_v16 = vpop.f32.mrf.mxu3  ;;  %v867_v43 = vadd.f32 %v1716_v45, %v850_v39  ;;  %v701_v44 = vadd.f32 %v700_v22, %v658_v41 }
 0x116   :  { %v659_v46 = vpop.f32.mrf.mxu1 }
 0x117   :  { %vm880_vm9 = vcmp.ge.f32.partialorder %v867_v43, 0.0  ;;  %v893_v47 = vmul.f32 0.1, %v867_v43  ;;  %v744_v48 = vadd.f32 %v743_v16, %v701_v44  ;;  %v660_v54 = vadd.f32 %v659_v46, %v1705_v29 }
 0x118   :  { %v788_v49 = vpop.f32.mrf.mxu0 }
 0x119   :  { %v906_v20 = vsel %vm880_vm9, %v867_v43, %v893_v47  ;;  %v787_v51 = vadd.f32 %v786_v36, %v744_v48 }
 0x11a   :  { %v1313_v52 = vpack.c.bf16 %v906_v20, %v905_v50 }
 0x11b   :  { %v851_v55 = vmul.f32 %v1710_v40, %v787_v51 }
 0x11c   :  { %1323 = vst [vmem:[%s1777_s4 + $0x20] sm:$0xff] %v1313_v52   ;;  %v702_v26 = vpop.f32.mrf.mxu2 }
 0x11d   :  { %v745_v53 = vpop.f32.mrf.mxu3  ;;  %v703_v56 = vadd.f32 %v702_v26, %v660_v54  ;;  %v868_v60 = vadd.f32 %v1716_v45, %v851_v55 }
 0x11e   :  { %v662_v57 = vpop.f32.mrf.mxu1 }
 0x11f   :  { %v746_v58 = vadd.f32 %v745_v53, %v703_v56  ;;  %v663_v23 = vadd.f32 %v662_v57, %v1695_v21  ;;  %v894_v0 = vmul.f32 0.1, %v868_v60  ;;  %vm881_vm10 = vcmp.ge.f32.partialorder %v868_v60, 0.0 }
 0x120   :  { %v791_v59 = vpop.f32.mrf.mxu0 }
 0x121   :  { %v789_v61 = vadd.f32 %v788_v49, %v746_v58  ;;  %v907_v8 = vsel %vm881_vm10, %v868_v60, %v894_v0 }
 0x123   :  { %v852_v63 = vmul.f32 %v1710_v40, %v789_v61 }
 0x124   :  { %v705_v29 = vpop.f32.mrf.mxu2 }
 0x125   :  { %v748_v62 = vpop.f32.mrf.mxu3  ;;  %v869_v1 = vadd.f32 %v1716_v45, %v852_v63  ;;  %v706_v2 = vadd.f32 %v705_v29, %v663_v23 }
 0x126   :  { %v664_v3 = vpop.f32.mrf.mxu1 }
 0x127   :  { %vm882_vm11 = vcmp.ge.f32.partialorder %v869_v1, 0.0  ;;  %v895_v4 = vmul.f32 0.1, %v869_v1  ;;  %v749_v5 = vadd.f32 %v748_v62, %v706_v2 }
 0x128   :  { %v793_v6 = vpop.f32.mrf.mxu0 }
 0x129   :  { %v908_v9 = vsel %vm882_vm11, %v869_v1, %v895_v4  ;;  %v792_v10 = vadd.f32 %v791_v59, %v749_v5 }
 0x12a   :  { %v1318_v27 = vpack.c.bf16 %v908_v9, %v907_v8 }
 0x12b   :  { %v853_v12 = vmul.f32 %v1710_v40, %v792_v10 }
 0x12c   :  { %1324 = vst [vmem:[%s1777_s4 + $0x28] sm:$0xff] %v1318_v27   ;;  %v707_v21 = vpop.f32.mrf.mxu2 }
 0x12d   :  { %v750_v11 = vpop.f32.mrf.mxu3  ;;  %v870_v13 = vadd.f32 %v1716_v45, %v853_v12 }
 0x12f   :  { %vm883_vm12 = vcmp.ge.f32.partialorder %v870_v13, 0.0  ;;  %v896_v14 = vmul.f32 0.1, %v870_v13 }
 0x131   :  { %v909_v15 = vsel %vm883_vm12, %v870_v13, %v896_v14 }
 0x132   :  { %v922_v17 = vpack.c.bf16 %v909_v15, %v909_v15 }
 0x134   :  { %935 = vst [vmem:[%s1777_s4 + $0x30] sm:$0xf] %v922_v17 }

// kernel: yolo_head_forward.10
= control target key start
LH: loop header
LB: loop body
LE: loop exit
PB: predicated region body
PF: predicated region fallthrough
CT: control target
= control target key end

     0   :  { %s3311_s15 = smov 0   ;;  %s3313_s16 = smov 0   ;;  %s3976_s0 = inlined_call_operand.vmem [shape: bf16[8,4096], index: 0, kind: input, shape index: {}]   ;;  %s3977_s1 = inlined_call_operand.vmem [shape: bf16[4096,256], index: 1, kind: input, shape index: {}]   ;;  %s3978_s2 = inlined_call_operand.vmem [shape: f32[1,256], index: 2, kind: input, shape index: {}]   ;;  %s3979_s3 = inlined_call_operand.vmem [shape: bf16[256,1536], index: 3, kind: input, shape index: {}]   ;;  %s3980_s4 = inlined_call_operand.vmem [shape: f32[2,8,1536], index: 4, kind: output, shape index: {}]  }
   0x1   :  { %s3315_s17 = smov 0   ;;  %s3317_s18 = smov 0  }
   0x2   :  { %s3319_s19 = smov 0   ;;  %s3321_s20 = smov 0  }
   0x3   :  { %s3323_s21 = smov 0  }
   0x4 LB: > { %s23_s22 = sadd.s32 1, %s3275_s19  ;;  %s26_s23 = sadd.s32 1, %s3279_s20  ;;  %s3283_s21 = sphi %s3323_s21, %s14_s21   ;;  %s3279_s20 = sphi %s3321_s20, %s3986_s20   ;;  %s3275_s19 = sphi %s3319_s19, %s3985_s19   ;;  %s3271_s18 = sphi %s3317_s18, %s3984_s18   ;;  %s3267_s17 = sphi %s3315_s17, %s3983_s17   ;;  %s3263_s16 = sphi %s3313_s16, %s3982_s16   ;;  %s3259_s15 = sphi %s3311_s15, %s3981_s15  }
   0x5   : > { %p24_p0 = scmp.ge.s32.totalorder %s23_s22, 4  ;;  %p68_p1 = scmp.ne.s32.totalorder %s3263_s16, %s3259_s15 }
   0x6   : > { %p69_p2 = scmp.eq.s32.totalorder %s3283_s21, 0  ;;  %s61_s27 = sadd.s32 1, %s3263_s16 }
   0x7   : > { %s3988_s22 = smov (%p24_p0, %s23_s22), 0  ;;  %s3990_s23 = smov (!%p24_p0, %s26_s23), %s3279_s20 }
   0x8   : > { %p70_p3 = por %p69_p2, %p68_p1  ;;  %p28_p4 = scmp.ge.s32.totalorder %s3990_s23, 2 }
   0x9   : > { %s56_s24 = ssub.s32 %s3275_s19, %s3988_s22  ;;  %p2352_p6 = scmp.ge.s32.totalorder %s3283_s21, 8 }
   0xa   : > { %s3992_s23 = smov (%p28_p4, %s3990_s23), 0 }
   0xb   : > { %s57_s25 = ssub.s32 %s3279_s20, %s3992_s23  ;;  %172 = sbr.rel (%p2352_p6) target bundleno = 150 (0x96), region = 16 }
   0xc   : > { %s58_s26 = sor.u32 %s57_s25, %s56_s24 }
   0xd   : > { %p59_p5 = scmp.eq.s32.totalorder %s58_s26, 0 }
   0xf   : > { %s3362_s28 = scalar_select %p59_p5, %s3263_s16, %s61_s27  }
  0x10   : > { %184 = sbr.rel (!%p70_p3) target bundleno = 150 (0x96), region = 24  ;;  %s186_s29 = sand.u32 (%p70_p3), 1, %s3263_s16  }
  0x11   : > { %s3008_s30 = sshll.u32 (%p70_p3), %s3275_s19, 8  ;;  %s2353_s5 = sshll.u32 (%p70_p3), %s186_s29, 9 }
  0x12   : > { %s191_s6 = sadd.s32 (%p70_p3), %s3279_s20, %s3008_s30  ;;  %s3376_s11 = scalar_lea.vmem (%p70_p3), [#allocation3], %s2353_s5 }
  0x13   : > { %s2356_s7 = sshll.u32 (%p70_p3), %s191_s6, 2 }
  0x14   : > { %s3371_s10 = scalar_lea.vmem (%p70_p3), %s3977_s1, %s2356_s7 }
  0x15   : > { %v210_v0 = vld [vmem:[%s3371_s10] sm:$0xf]  ;;  %v212_v1 = vld [vmem:[%s3371_s10 + $0x8] sm:$0xf]  ;;  %v214_v2 = vld [vmem:[%s3371_s10 + $0x10] sm:$0xf] }
  0x16   : > { %211 = vst [vmem:[%s3376_s11] sm:$0xf] %v210_v0  ;;  %v216_v3 = vld [vmem:[%s3371_s10 + $0x18] sm:$0xf]  ;;  %v218_v4 = vld [vmem:[%s3371_s10 + $0x20] sm:$0xf] }
  0x17   : > { %213 = vst [vmem:[%s3376_s11 + $0x4] sm:$0xf] %v212_v1  ;;  %v220_v5 = vld [vmem:[%s3371_s10 + $0x28] sm:$0xf]  ;;  %v222_v6 = vld [vmem:[%s3371_s10 + $0x30] sm:$0xf] }
  0x18   : > { %215 = vst [vmem:[%s3376_s11 + $0x8] sm:$0xf] %v214_v2  ;;  %v224_v7 = vld [vmem:[%s3371_s10 + $0x38] sm:$0xf]  ;;  %v226_v8 = vld [vmem:[%s3371_s10 + $0x40] sm:$0xf] }
  0x19   : > { %217 = vst [vmem:[%s3376_s11 + $0xc] sm:$0xf] %v216_v3  ;;  %v228_v9 = vld [vmem:[%s3371_s10 + $0x48] sm:$0xf]  ;;  %v230_v10 = vld [vmem:[%s3371_s10 + $0x50] sm:$0xf] }
  0x1a   : > { %219 = vst [vmem:[%s3376_s11 + $0x10] sm:$0xf] %v218_v4  ;;  %v232_v11 = vld [vmem:[%s3371_s10 + $0x58] sm:$0xf]  ;;  %v234_v12 = vld [vmem:[%s3371_s10 + $0x60] sm:$0xf] }
  0x1b   : > { %221 = vst [vmem:[%s3376_s11 + $0x14] sm:$0xf] %v220_v5  ;;  %v236_v13 = vld [vmem:[%s3371_s10 + $0x68] sm:$0xf]  ;;  %v238_v14 = vld [vmem:[%s3371_s10 + $0x70] sm:$0xf] }
  0x1c   : > { %223 = vst [vmem:[%s3376_s11 + $0x18] sm:$0xf] %v222_v6  ;;  %v240_v15 = vld [vmem:[%s3371_s10 + $0x78] sm:$0xf]  ;;  %v242_v16 = vld [vmem:[%s3371_s10 + $0x80] sm:$0xf] }
  0x1d   : > { %225 = vst [vmem:[%s3376_s11 + $0x1c] sm:$0xf] %v224_v7  ;;  %v244_v17 = vld [vmem:[%s3371_s10 + $0x88] sm:$0xf]  ;;  %v246_v18 = vld [vmem:[%s3371_s10 + $0x90] sm:$0xf] }
  0x1e   : > { %227 = vst [vmem:[%s3376_s11 + $0x20] sm:$0xf] %v226_v8  ;;  %v248_v19 = vld [vmem:[%s3371_s10 + $0x98] sm:$0xf]  ;;  %v250_v20 = vld [vmem:[%s3371_s10 + $0xa0] sm:$0xf] }
  0x1f   : > { %229 = vst [vmem:[%s3376_s11 + $0x24] sm:$0xf] %v228_v9  ;;  %v252_v21 = vld [vmem:[%s3371_s10 + $0xa8] sm:$0xf]  ;;  %v254_v22 = vld [vmem:[%s3371_s10 + $0xb0] sm:$0xf] }
  0x20   : > { %231 = vst [vmem:[%s3376_s11 + $0x28] sm:$0xf] %v230_v10  ;;  %v256_v23 = vld [vmem:[%s3371_s10 + $0xb8] sm:$0xf]  ;;  %v258_v24 = vld [vmem:[%s3371_s10 + $0xc0] sm:$0xf] }
  0x21   : > { %233 = vst [vmem:[%s3376_s11 + $0x2c] sm:$0xf] %v232_v11  ;;  %v260_v25 = vld [vmem:[%s3371_s10 + $0xc8] sm:$0xf]  ;;  %v262_v26 = vld [vmem:[%s3371_s10 + $0xd0] sm:$0xf] }
  0x22   : > { %235 = vst [vmem:[%s3376_s11 + $0x30] sm:$0xf] %v234_v12  ;;  %v264_v27 = vld [vmem:[%s3371_s10 + $0xd8] sm:$0xf]  ;;  %v266_v28 = vld [vmem:[%s3371_s10 + $0xe0] sm:$0xf] }
  0x23   : > { %237 = vst [vmem:[%s3376_s11 + $0x34] sm:$0xf] %v236_v13  ;;  %v268_v29 = vld [vmem:[%s3371_s10 + $0xe8] sm:$0xf]  ;;  %v270_v30 = vld [vmem:[%s3371_s10 + $0xf0] sm:$0xf] }
  0x24   : > { %239 = vst [vmem:[%s3376_s11 + $0x38] sm:$0xf] %v238_v14  ;;  %v272_v31 = vld [vmem:[%s3371_s10 + $0xf8] sm:$0xf]  ;;  %v274_v32 = vld [vmem:[%s3371_s10 + $0x100] sm:$0xf] }
  0x25   : > { %241 = vst [vmem:[%s3376_s11 + $0x3c] sm:$0xf] %v240_v15  ;;  %v276_v33 = vld [vmem:[%s3371_s10 + $0x108] sm:$0xf]  ;;  %v278_v34 = vld [vmem:[%s3371_s10 + $0x110] sm:$0xf] }
  0x26   : > { %243 = vst [vmem:[%s3376_s11 + $0x40] sm:$0xf] %v242_v16  ;;  %v280_v35 = vld [vmem:[%s3371_s10 + $0x118] sm:$0xf]  ;;  %v282_v36 = vld [vmem:[%s3371_s10 + $0x120] sm:$0xf] }
  0x27   : > { %245 = vst [vmem:[%s3376_s11 + $0x44] sm:$0xf] %v244_v17  ;;  %v284_v37 = vld [vmem:[%s3371_s10 + $0x128] sm:$0xf]  ;;  %v286_v38 = vld [vmem:[%s3371_s10 + $0x130] sm:$0xf] }
  0x28   : > { %247 = vst [vmem:[%s3376_s11 + $0x48] sm:$0xf] %v246_v18  ;;  %v288_v39 = vld [vmem:[%s3371_s10 + $0x138] sm:$0xf]  ;;  %v290_v40 = vld [vmem:[%s3371_s10 + $0x140] sm:$0xf] }
  0x29   : > { %249 = vst [vmem:[%s3376_s11 + $0x4c] sm:$0xf] %v248_v19  ;;  %v292_v41 = vld [vmem:[%s3371_s10 + $0x148] sm:$0xf]  ;;  %v294_v42 = vld [vmem:[%s3371_s10 + $0x150] sm:$0xf] }
  0x2a   : > { %251 = vst [vmem:[%s3376_s11 + $0x50] sm:$0xf] %v250_v20  ;;  %v296_v43 = vld [vmem:[%s3371_s10 + $0x158] sm:$0xf]  ;;  %v298_v44 = vld [vmem:[%s3371_s10 + $0x160] sm:$0xf] }
  0x2b   : > { %253 = vst [vmem:[%s3376_s11 + $0x54] sm:$0xf] %v252_v21  ;;  %v300_v45 = vld [vmem:[%s3371_s10 + $0x168] sm:$0xf]  ;;  %v302_v46 = vld [vmem:[%s3371_s10 + $0x170] sm:$0xf] }
  0x2c   : > { %255 = vst [vmem:[%s3376_s11 + $0x58] sm:$0xf] %v254_v22  ;;  %v304_v47 = vld [vmem:[%s3371_s10 + $0x178] sm:$0xf]  ;;  %v306_v48 = vld [vmem:[%s3371_s10 + $0x180] sm:$0xf] }
  0x2d   : > { %257 = vst [vmem:[%s3376_s11 + $0x5c] sm:$0xf] %v256_v23  ;;  %v308_v49 = vld [vmem:[%s3371_s10 + $0x188] sm:$0xf]  ;;  %v310_v50 = vld [vmem:[%s3371_s10 + $0x190] sm:$0xf] }
  0x2e   : > { %259 = vst [vmem:[%s3376_s11 + $0x60] sm:$0xf] %v258_v24  ;;  %v312_v51 = vld [vmem:[%s3371_s10 + $0x198] sm:$0xf]  ;;  %v314_v52 = vld [vmem:[%s3371_s10 + $0x1a0] sm:$0xf] }
  0x2f   : > { %261 = vst [vmem:[%s3376_s11 + $0x64] sm:$0xf] %v260_v25  ;;  %v316_v53 = vld [vmem:[%s3371_s10 + $0x1a8] sm:$0xf]  ;;  %v318_v54 = vld [vmem:[%s3371_s10 + $0x1b0] sm:$0xf] }
  0x30   : > { %263 = vst [vmem:[%s3376_s11 + $0x68] sm:$0xf] %v262_v26  ;;  %v320_v55 = vld [vmem:[%s3371_s10 + $0x1b8] sm:$0xf]  ;;  %v322_v56 = vld [vmem:[%s3371_s10 + $0x1c0] sm:$0xf] }
  0x31   : > { %265 = vst [vmem:[%s3376_s11 + $0x6c] sm:$0xf] %v264_v27  ;;  %v324_v57 = vld [vmem:[%s3371_s10 + $0x1c8] sm:$0xf]  ;;  %v326_v58 = vld [vmem:[%s3371_s10 + $0x1d0] sm:$0xf] }
  0x32   : > { %267 = vst [vmem:[%s3376_s11 + $0x70] sm:$0xf] %v266_v28  ;;  %v328_v59 = vld [vmem:[%s3371_s10 + $0x1d8] sm:$0xf]  ;;  %v330_v60 = vld [vmem:[%s3371_s10 + $0x1e0] sm:$0xf] }
  0x33   : > { %269 = vst [vmem:[%s3376_s11 + $0x74] sm:$0xf] %v268_v29  ;;  %v332_v61 = vld [vmem:[%s3371_s10 + $0x1e8] sm:$0xf]  ;;  %v334_v62 = vld [vmem:[%s3371_s10 + $0x1f0] sm:$0xf] }
  0x34   : > { %271 = vst [vmem:[%s3376_s11 + $0x78] sm:$0xf] %v270_v30  ;;  %v336_v63 = vld [vmem:[%s3371_s10 + $0x1f8] sm:$0xf]  ;;  %v338_v0 = vld [vmem:[%s3371_s10 + $0x200] sm:$0xf] }
  0x35   : > { %273 = vst [vmem:[%s3376_s11 + $0x7c] sm:$0xf] %v272_v31  ;;  %v340_v1 = vld [vmem:[%s3371_s10 + $0x208] sm:$0xf]  ;;  %v342_v2 = vld [vmem:[%s3371_s10 + $0x210] sm:$0xf] }
  0x36   : > { %275 = vst [vmem:[%s3376_s11 + $0x80] sm:$0xf] %v274_v32  ;;  %v344_v3 = vld [vmem:[%s3371_s10 + $0x218] sm:$0xf]  ;;  %v346_v4 = vld [vmem:[%s3371_s10 + $0x220] sm:$0xf] }
  0x37   : > { %277 = vst [vmem:[%s3376_s11 + $0x84] sm:$0xf] %v276_v33  ;;  %v348_v5 = vld [vmem:[%s3371_s10 + $0x228] sm:$0xf]  ;;  %v350_v6 = vld [vmem:[%s3371_s10 + $0x230] sm:$0xf] }
  0x38   : > { %279 = vst [vmem:[%s3376_s11 + $0x88] sm:$0xf] %v278_v34  ;;  %v352_v7 = vld [vmem:[%s3371_s10 + $0x238] sm:$0xf]  ;;  %v354_v8 = vld [vmem:[%s3371_s10 + $0x240] sm:$0xf] }
  0x39   : > { %281 = vst [vmem:[%s3376_s11 + $0x8c] sm:$0xf] %v280_v35  ;;  %v356_v9 = vld [vmem:[%s3371_s10 + $0x248] sm:$0xf]  ;;  %v358_v10 = vld [vmem:[%s3371_s10 + $0x250] sm:$0xf] }
  0x3a   : > { %283 = vst [vmem:[%s3376_s11 + $0x90] sm:$0xf] %v282_v36  ;;  %v360_v11 = vld [vmem:[%s3371_s10 + $0x258] sm:$0xf]  ;;  %v362_v12 = vld [vmem:[%s3371_s10 + $0x260] sm:$0xf] }
  0x3b   : > { %285 = vst [vmem:[%s3376_s11 + $0x94] sm:$0xf] %v284_v37  ;;  %v364_v13 = vld [vmem:[%s3371_s10 + $0x268] sm:$0xf]  ;;  %v366_v14 = vld [vmem:[%s3371_s10 + $0x270] sm:$0xf] }
  0x3c   : > { %287 = vst [vmem:[%s3376_s11 + $0x98] sm:$0xf] %v286_v38  ;;  %v368_v15 = vld [vmem:[%s3371_s10 + $0x278] sm:$0xf]  ;;  %v370_v16 = vld [vmem:[%s3371_s10 + $0x280] sm:$0xf] }
  0x3d   : > { %289 = vst [vmem:[%s3376_s11 + $0x9c] sm:$0xf] %v288_v39  ;;  %v372_v17 = vld [vmem:[%s3371_s10 + $0x288] sm:$0xf]  ;;  %v374_v18 = vld [vmem:[%s3371_s10 + $0x290] sm:$0xf] }
  0x3e   : > { %291 = vst [vmem:[%s3376_s11 + $0xa0] sm:$0xf] %v290_v40  ;;  %v376_v19 = vld [vmem:[%s3371_s10 + $0x298] sm:$0xf]  ;;  %v378_v20 = vld [vmem:[%s3371_s10 + $0x2a0] sm:$0xf] }
  0x3f   : > { %293 = vst [vmem:[%s3376_s11 + $0xa4] sm:$0xf] %v292_v41  ;;  %v380_v21 = vld [vmem:[%s3371_s10 + $0x2a8] sm:$0xf]  ;;  %v382_v22 = vld [vmem:[%s3371_s10 + $0x2b0] sm:$0xf] }
  0x40   : > { %295 = vst [vmem:[%s3376_s11 + $0xa8] sm:$0xf] %v294_v42  ;;  %v384_v23 = vld [vmem:[%s3371_s10 + $0x2b8] sm:$0xf]  ;;  %v386_v24 = vld [vmem:[%s3371_s10 + $0x2c0] sm:$0xf] }
  0x41   : > { %297 = vst [vmem:[%s3376_s11 + $0xac] sm:$0xf] %v296_v43  ;;  %v388_v25 = vld [vmem:[%s3371_s10 + $0x2c8] sm:$0xf]  ;;  %v390_v26 = vld [vmem:[%s3371_s10 + $0x2d0] sm:$0xf] }
  0x42   : > { %299 = vst [vmem:[%s3376_s11 + $0xb0] sm:$0xf] %v298_v44  ;;  %v392_v27 = vld [vmem:[%s3371_s10 + $0x2d8] sm:$0xf]  ;;  %v394_v28 = vld [vmem:[%s3371_s10 + $0x2e0] sm:$0xf] }
  0x43   : > { %301 = vst [vmem:[%s3376_s11 + $0xb4] sm:$0xf] %v300_v45  ;;  %v396_v29 = vld [vmem:[%s3371_s10 + $0x2e8] sm:$0xf]  ;;  %v398_v30 = vld [vmem:[%s3371_s10 + $0x2f0] sm:$0xf] }
  0x44   : > { %303 = vst [vmem:[%s3376_s11 + $0xb8] sm:$0xf] %v302_v46  ;;  %v400_v31 = vld [vmem:[%s3371_s10 + $0x2f8] sm:$0xf]  ;;  %v402_v32 = vld [vmem:[%s3371_s10 + $0x300] sm:$0xf] }
  0x45   : > { %305 = vst [vmem:[%s3376_s11 + $0xbc] sm:$0xf] %v304_v47  ;;  %v404_v33 = vld [vmem:[%s3371_s10 + $0x308] sm:$0xf]  ;;  %v406_v34 = vld [vmem:[%s3371_s10 + $0x310] sm:$0xf] }
  0x46   : > { %307 = vst [vmem:[%s3376_s11 + $0xc0] sm:$0xf] %v306_v48  ;;  %v408_v35 = vld [vmem:[%s3371_s10 + $0x318] sm:$0xf]  ;;  %v410_v36 = vld [vmem:[%s3371_s10 + $0x320] sm:$0xf] }
  0x47   : > { %309 = vst [vmem:[%s3376_s11 + $0xc4] sm:$0xf] %v308_v49  ;;  %v412_v37 = vld [vmem:[%s3371_s10 + $0x328] sm:$0xf]  ;;  %v414_v38 = vld [vmem:[%s3371_s10 + $0x330] sm:$0xf] }
  0x48   : > { %311 = vst [vmem:[%s3376_s11 + $0xc8] sm:$0xf] %v310_v50  ;;  %v416_v39 = vld [vmem:[%s3371_s10 + $0x338] sm:$0xf]  ;;  %v418_v40 = vld [vmem:[%s3371_s10 + $0x340] sm:$0xf] }
  0x49   : > { %313 = vst [vmem:[%s3376_s11 + $0xcc] sm:$0xf] %v312_v51  ;;  %v420_v41 = vld [vmem:[%s3371_s10 + $0x348] sm:$0xf]  ;;  %v422_v42 = vld [vmem:[%s3371_s10 + $0x350] sm:$0xf] }
  0x4a   : > { %315 = vst [vmem:[%s3376_s11 + $0xd0] sm:$0xf] %v314_v52  ;;  %v424_v43 = vld [vmem:[%s3371_s10 + $0x358] sm:$0xf]  ;;  %v426_v44 = vld [vmem:[%s3371_s10 + $0x360] sm:$0xf] }
  0x4b   : > { %317 = vst [vmem:[%s3376_s11 + $0xd4] sm:$0xf] %v316_v53  ;;  %v428_v45 = vld [vmem:[%s3371_s10 + $0x368] sm:$0xf]  ;;  %v430_v46 = vld [vmem:[%s3371_s10 + $0x370] sm:$0xf] }
  0x4c   : > { %319 = vst [vmem:[%s3376_s11 + $0xd8] sm:$0xf] %v318_v54  ;;  %v432_v47 = vld [vmem:[%s3371_s10 + $0x378] sm:$0xf]  ;;  %v434_v48 = vld [vmem:[%s3371_s10 + $0x380] sm:$0xf] }
  0x4d   : > { %321 = vst [vmem:[%s3376_s11 + $0xdc] sm:$0xf] %v320_v55  ;;  %v436_v49 = vld [vmem:[%s3371_s10 + $0x388] sm:$0xf]  ;;  %v438_v50 = vld [vmem:[%s3371_s10 + $0x390] sm:$0xf] }
  0x4e   : > { %323 = vst [vmem:[%s3376_s11 + $0xe0] sm:$0xf] %v322_v56  ;;  %v440_v51 = vld [vmem:[%s3371_s10 + $0x398] sm:$0xf]  ;;  %v442_v52 = vld [vmem:[%s3371_s10 + $0x3a0] sm:$0xf] }
  0x4f   : > { %325 = vst [vmem:[%s3376_s11 + $0xe4] sm:$0xf] %v324_v57  ;;  %v444_v53 = vld [vmem:[%s3371_s10 + $0x3a8] sm:$0xf]  ;;  %v446_v54 = vld [vmem:[%s3371_s10 + $0x3b0] sm:$0xf] }
  0x50   : > { %327 = vst [vmem:[%s3376_s11 + $0xe8] sm:$0xf] %v326_v58  ;;  %v448_v55 = vld [vmem:[%s3371_s10 + $0x3b8] sm:$0xf]  ;;  %v450_v56 = vld [vmem:[%s3371_s10 + $0x3c0] sm:$0xf] }
  0x51   : > { %329 = vst [vmem:[%s3376_s11 + $0xec] sm:$0xf] %v328_v59  ;;  %v452_v57 = vld [vmem:[%s3371_s10 + $0x3c8] sm:$0xf]  ;;  %v454_v58 = vld [vmem:[%s3371_s10 + $0x3d0] sm:$0xf] }
  0x52   : > { %331 = vst [vmem:[%s3376_s11 + $0xf0] sm:$0xf] %v330_v60  ;;  %v456_v59 = vld [vmem:[%s3371_s10 + $0x3d8] sm:$0xf]  ;;  %v458_v60 = vld [vmem:[%s3371_s10 + $0x3e0] sm:$0xf] }
  0x53   : > { %333 = vst [vmem:[%s3376_s11 + $0xf4] sm:$0xf] %v332_v61  ;;  %v460_v61 = vld [vmem:[%s3371_s10 + $0x3e8] sm:$0xf] }
  0x54   : > { %335 = vst [vmem:[%s3376_s11 + $0xf8] sm:$0xf] %v334_v62  ;;  %v462_v62 = vld [vmem:[%s3371_s10 + $0x3f0] sm:$0xf] }
  0x55   : > { %337 = vst [vmem:[%s3376_s11 + $0xfc] sm:$0xf] %v336_v63  ;;  %v464_v63 = vld [vmem:[%s3371_s10 + $0x3f8] sm:$0xf] }
  0x56   : > { %339 = vst [vmem:[%s3376_s11 + $0x100] sm:$0xf] %v338_v0 }
  0x57   : > { %341 = vst [vmem:[%s3376_s11 + $0x104] sm:$0xf] %v340_v1 }
  0x58   : > { %343 = vst [vmem:[%s3376_s11 + $0x108] sm:$0xf] %v342_v2 }
  0x59   : > { %345 = vst [vmem:[%s3376_s11 + $0x10c] sm:$0xf] %v344_v3 }
  0x5a   : > { %347 = vst [vmem:[%s3376_s11 + $0x110] sm:$0xf] %v346_v4 }
  0x5b   : > { %349 = vst [vmem:[%s3376_s11 + $0x114] sm:$0xf] %v348_v5 }
  0x5c   : > { %351 = vst [vmem:[%s3376_s11 + $0x118] sm:$0xf] %v350_v6 }
  0x5d   : > { %353 = vst [vmem:[%s3376_s11 + $0x11c] sm:$0xf] %v352_v7 }
  0x5e   : > { %355 = vst [vmem:[%s3376_s11 + $0x120] sm:$0xf] %v354_v8 }
  0x5f   : > { %357 = vst [vmem:[%s3376_s11 + $0x124] sm:$0xf] %v356_v9 }
  0x60   : > { %359 = vst [vmem:[%s3376_s11 + $0x128] sm:$0xf] %v358_v10 }
  0x61   : > { %361 = vst [vmem:[%s3376_s11 + $0x12c] sm:$0xf] %v360_v11 }
  0x62   : > { %363 = vst [vmem:[%s3376_s11 + $0x130] sm:$0xf] %v362_v12 }
  0x63   : > { %365 = vst [vmem:[%s3376_s11 + $0x134] sm:$0xf] %v364_v13 }
  0x64   : > { %367 = vst [vmem:[%s3376_s11 + $0x138] sm:$0xf] %v366_v14 }
  0x65   : > { %369 = vst [vmem:[%s3376_s11 + $0x13c] sm:$0xf] %v368_v15 }
  0x66   : > { %371 = vst [vmem:[%s3376_s11 + $0x140] sm:$0xf] %v370_v16 }
  0x67   : > { %373 = vst [vmem:[%s3376_s11 + $0x144] sm:$0xf] %v372_v17 }
  0x68   : > { %375 = vst [vmem:[%s3376_s11 + $0x148] sm:$0xf] %v374_v18 }
  0x69   : > { %377 = vst [vmem:[%s3376_s11 + $0x14c] sm:$0xf] %v376_v19 }
  0x6a   : > { %379 = vst [vmem:[%s3376_s11 + $0x150] sm:$0xf] %v378_v20 }
  0x6b   : > { %381 = vst [vmem:[%s3376_s11 + $0x154] sm:$0xf] %v380_v21 }
  0x6c   : > { %383 = vst [vmem:[%s3376_s11 + $0x158] sm:$0xf] %v382_v22 }
  0x6d   : > { %385 = vst [vmem:[%s3376_s11 + $0x15c] sm:$0xf] %v384_v23 }
  0x6e   : > { %387 = vst [vmem:[%s3376_s11 + $0x160] sm:$0xf] %v386_v24 }
  0x6f   : > { %389 = vst [vmem:[%s3376_s11 + $0x164] sm:$0xf] %v388_v25 }
  0x70   : > { %391 = vst [vmem:[%s3376_s11 + $0x168] sm:$0xf] %v390_v26 }
  0x71   : > { %393 = vst [vmem:[%s3376_s11 + $0x16c] sm:$0xf] %v392_v27 }
  0x72   : > { %395 = vst [vmem:[%s3376_s11 + $0x170] sm:$0xf] %v394_v28 }
  0x73   : > { %397 = vst [vmem:[%s3376_s11 + $0x174] sm:$0xf] %v396_v29 }
  0x74   : > { %399 = vst [vmem:[%s3376_s11 + $0x178] sm:$0xf] %v398_v30 }
  0x75   : > { %401 = vst [vmem:[%s3376_s11 + $0x17c] sm:$0xf] %v400_v31 }
  0x76   : > { %403 = vst [vmem:[%s3376_s11 + $0x180] sm:$0xf] %v402_v32 }
  0x77   : > { %405 = vst [vmem:[%s3376_s11 + $0x184] sm:$0xf] %v404_v33 }
  0x78   : > { %407 = vst [vmem:[%s3376_s11 + $0x188] sm:$0xf] %v406_v34 }
  0x79   : > { %409 = vst [vmem:[%s3376_s11 + $0x18c] sm:$0xf] %v408_v35 }
  0x7a   : > { %411 = vst [vmem:[%s3376_s11 + $0x190] sm:$0xf] %v410_v36 }
  0x7b   : > { %413 = vst [vmem:[%s3376_s11 + $0x194] sm:$0xf] %v412_v37 }
  0x7c   : > { %415 = vst [vmem:[%s3376_s11 + $0x198] sm:$0xf] %v414_v38 }
  0x7d   : > { %417 = vst [vmem:[%s3376_s11 + $0x19c] sm:$0xf] %v416_v39 }
  0x7e   : > { %419 = vst [vmem:[%s3376_s11 + $0x1a0] sm:$0xf] %v418_v40 }
  0x7f   : > { %421 = vst [vmem:[%s3376_s11 + $0x1a4] sm:$0xf] %v420_v41 }
  0x80   : > { %423 = vst [vmem:[%s3376_s11 + $0x1a8] sm:$0xf] %v422_v42 }
  0x81   : > { %425 = vst [vmem:[%s3376_s11 + $0x1ac] sm:$0xf] %v424_v43 }
  0x82   : > { %427 = vst [vmem:[%s3376_s11 + $0x1b0] sm:$0xf] %v426_v44 }
  0x83   : > { %429 = vst [vmem:[%s3376_s11 + $0x1b4] sm:$0xf] %v428_v45 }
  0x84   : > { %431 = vst [vmem:[%s3376_s11 + $0x1b8] sm:$0xf] %v430_v46 }
  0x85   : > { %433 = vst [vmem:[%s3376_s11 + $0x1bc] sm:$0xf] %v432_v47 }
  0x86   : > { %435 = vst [vmem:[%s3376_s11 + $0x1c0] sm:$0xf] %v434_v48 }
  0x87   : > { %437 = vst [vmem:[%s3376_s11 + $0x1c4] sm:$0xf] %v436_v49 }
  0x88   : > { %439 = vst [vmem:[%s3376_s11 + $0x1c8] sm:$0xf] %v438_v50 }
  0x89   : > { %441 = vst [vmem:[%s3376_s11 + $0x1cc] sm:$0xf] %v440_v51 }
  0x8a   : > { %443 = vst [vmem:[%s3376_s11 + $0x1d0] sm:$0xf] %v442_v52 }
  0x8b   : > { %445 = vst [vmem:[%s3376_s11 + $0x1d4] sm:$0xf] %v444_v53 }
  0x8c   : > { %447 = vst [vmem:[%s3376_s11 + $0x1d8] sm:$0xf] %v446_v54 }
  0x8d   : > { %449 = vst [vmem:[%s3376_s11 + $0x1dc] sm:$0xf] %v448_v55 }
  0x8e   : > { %451 = vst [vmem:[%s3376_s11 + $0x1e0] sm:$0xf] %v450_v56 }
  0x8f   : > { %453 = vst [vmem:[%s3376_s11 + $0x1e4] sm:$0xf] %v452_v57 }
  0x90   : > { %455 = vst [vmem:[%s3376_s11 + $0x1e8] sm:$0xf] %v454_v58 }
  0x91   : > { %457 = vst [vmem:[%s3376_s11 + $0x1ec] sm:$0xf] %v456_v59 }
  0x92   : > { %459 = vst [vmem:[%s3376_s11 + $0x1f0] sm:$0xf] %v458_v60 }
  0x93   : > { %461 = vst [vmem:[%s3376_s11 + $0x1f4] sm:$0xf] %v460_v61 }
  0x94   : > { %463 = vst [vmem:[%s3376_s11 + $0x1f8] sm:$0xf] %v462_v62 }
  0x95   : > { %465 = vst [vmem:[%s3376_s11 + $0x1fc] sm:$0xf] %v464_v63 }
  0x96 PF: > { %p2357_p7 = scmp.ge.s32.totalorder %s3283_s21, 1  ;;  %p760_p8 = scmp.lt.s32.totalorder %s3283_s21, 9 }
  0x98   : > { %p761_p9 = pnand %p2357_p7, %p760_p8 }
  0x99   : > { %s767_s12 = sand.u32 (!%p761_p9), 1, %s3259_s15   ;;  %s2359_s13 = sshll.u32 (!%p761_p9), %s3267_s17, 3 }
  0x9a   : > { %764 = sbr.rel (%p761_p9) target bundleno = 618 (0x26a), region = 73  ;;  %s2358_s14 = sshll.u32 (!%p761_p9), %s767_s12, 9 }
  0x9b   : > { %p807_p10 = scmp.lt.s32.totalorder (!%p761_p9), %s2359_s13, 31  ;;  %p813_p11 = scmp.lt.s32.totalorder (!%p761_p9), %s3271_s18, 1 }
  0x9c   : > { %s2361_s26 = sshll.u32 (!%p761_p9), %s3271_s18, 4  ;;  %p2364_p13 = scmp.ne.s32.totalorder (!%p761_p9), %s3267_s17, 0 }
  0x9d   : > { %p817_p12 = scmp.lt.s32.totalorder (!%p761_p9), %s2361_s26, 31 }
  0x9f   : > { %s3994_s13 = smov (!%p807_p10, %s2359_s13), 31  ;;  %s3996_s26 = smov (!%p817_p12, %s2361_s26), 31 }
  0xa0   : > { %s3637_s24 = scalar_select %p813_p11, %s3271_s18, 1 }
  0xa1   : > { %s2360_s25 = sshll.u32 %s3994_s13, 2  ;;  %s3169_s11 = smul.u32 48, %s3996_s26 }
  0xa2   : > { %s3643_s30 = scalar_lea.vmem %s3976_s0, %s2360_s25  ;;  %s815_s15 = scalar_lea.vmem %s3978_s2, %s3637_s24 }
  0xa3   : > { %s3170_s7 = smul.u32 96, %s3637_s24  ;;  %s3658_s13 = scalar_lea.vmem %s3979_s3, %s3169_s11 }
  0xa4   : > { %s3660_s25 = scalar_lea.vmem [#allocation3], %s2358_s14  ;;  %831 = sbr.rel (%p2364_p13) target bundleno = 171 (0xab), region = 81 }
  0xa5   : > { %s3653_s10 = scalar_lea.vmem %s3980_s4, %s3170_s7 }
  0xa9   : > { %v3285_v0 = vmov 0.0  }
  0xaa   : > { %832 = vst [vmem:[#allocation2] sm:$0xff] %v3285_v0 }
  0xab PF: > { %v3016_v1 = vld [vmem:[%s3660_s25 + $0x38] sm:$0xff]  ;;  %v3015_v5 = vld [vmem:[%s3660_s25 + $0x30] sm:$0xff]  ;;  %v3014_v9 = vld [vmem:[%s3660_s25 + $0x28] sm:$0xff]  ;;  %p2621_p0 = scmp.ne.s32.totalorder %s3267_s17, 3 }
  0xac   : > { %v3024_v2 = vld [vmem:[%s3660_s25 + $0x78] sm:$0xff]  ;;  %1378 = vmatpush.bf16.msra.mxu0 %v3016_v1  ;;  %v3023_v6 = vld [vmem:[%s3660_s25 + $0x70] sm:$0xff]  ;;  %v3022_v10 = vld [vmem:[%s3660_s25 + $0x68] sm:$0xff] }
  0xad   : > { %v3032_v3 = vld [vmem:[%s3660_s25 + $0xb8] sm:$0xff]  ;;  %1391 = vmatpush.bf16.msra.mxu1 %v3024_v2  ;;  %v3031_v7 = vld [vmem:[%s3660_s25 + $0xb0] sm:$0xff]  ;;  %v3030_v11 = vld [vmem:[%s3660_s25 + $0xa8] sm:$0xff] }
  0xae   : > { %v3040_v4 = vld [vmem:[%s3660_s25 + $0xf8] sm:$0xff]  ;;  %1404 = vmatpush.bf16.msra.mxu2 %v3032_v3  ;;  %v3039_v8 = vld [vmem:[%s3660_s25 + $0xf0] sm:$0xff]  ;;  %v3038_v12 = vld [vmem:[%s3660_s25 + $0xe8] sm:$0xff] }
  0xaf   : > { %1417 = vmatpush.bf16.msra.mxu3 %v3040_v4  ;;  %v3013_v13 = vld [vmem:[%s3660_s25 + $0x20] sm:$0xff]  ;;  %v3012_v17 = vld [vmem:[%s3660_s25 + $0x18] sm:$0xff]  ;;  %v3011_v21 = vld [vmem:[%s3660_s25 + $0x10] sm:$0xff] }
  0xb0   : > { %1379 = vmatpush.bf16.msra.mxu0 %v3015_v5  ;;  %v3021_v14 = vld [vmem:[%s3660_s25 + $0x60] sm:$0xff]  ;;  %v3020_v18 = vld [vmem:[%s3660_s25 + $0x58] sm:$0xff]  ;;  %v3019_v22 = vld [vmem:[%s3660_s25 + $0x50] sm:$0xff] }
  0xb1   : > { %1392 = vmatpush.bf16.msra.mxu1 %v3023_v6  ;;  %v3029_v15 = vld [vmem:[%s3660_s25 + $0xa0] sm:$0xff]  ;;  %v3028_v19 = vld [vmem:[%s3660_s25 + $0x98] sm:$0xff]  ;;  %v3027_v23 = vld [vmem:[%s3660_s25 + $0x90] sm:$0xff] }
  0xb2   : > { %1405 = vmatpush.bf16.msra.mxu2 %v3031_v7  ;;  %v3037_v16 = vld [vmem:[%s3660_s25 + $0xe0] sm:$0xff]  ;;  %v3036_v20 = vld [vmem:[%s3660_s25 + $0xd8] sm:$0xff]  ;;  %v3035_v24 = vld [vmem:[%s3660_s25 + $0xd0] sm:$0xff] }
  0xb3   : > { %1418 = vmatpush.bf16.msra.mxu3 %v3039_v8  ;;  %v3010_v25 = vld [vmem:[%s3660_s25 + $0x8] sm:$0xff]  ;;  %v835_v29 = vld [vmem:[%s3643_s30 + $0x8] sm:$0xff]  ;;  %v834_v30 = vld [vmem:[%s3643_s30] sm:$0xff] }
  0xb4   : > { %1380 = vmatpush.bf16.msra.mxu0 %v3014_v9  ;;  %v3018_v26 = vld [vmem:[%s3660_s25 + $0x48] sm:$0xff]  ;;  %v3009_v31 = vld [vmem:[%s3660_s25] sm:$0xff]  ;;  %v972_v33 = vunpack.c.l.b16 %v835_v29  ;;  %v973_v34 = vunpack.c.h.b16 %v835_v29  ;;  %v970_v37 = vunpack.c.l.b16 %v834_v30  ;;  %v971_v38 = vunpack.c.h.b16 %v834_v30  ;;  %v3048_v39 = vld [vmem:[%s3660_s25 + $0x138] sm:$0xff] }
  0xb5   : > { %1393 = vmatpush.bf16.msra.mxu1 %v3022_v10  ;;  %v3026_v27 = vld [vmem:[%s3660_s25 + $0x88] sm:$0xff]  ;;  %v3017_v32 = vld [vmem:[%s3660_s25 + $0x40] sm:$0xff]  ;;  %v3056_v40 = vld [vmem:[%s3660_s25 + $0x178] sm:$0xff] }
  0xb6   : > { %1406 = vmatpush.bf16.msra.mxu2 %v3030_v11  ;;  %v3034_v28 = vld [vmem:[%s3660_s25 + $0xc8] sm:$0xff]  ;;  %v3025_v35 = vld [vmem:[%s3660_s25 + $0x80] sm:$0xff]  ;;  %v3064_v41 = vld [vmem:[%s3660_s25 + $0x1b8] sm:$0xff]  ;;  %v980_v43 = vpack.c.b16 %v972_v33, %v972_v33  ;;  %v981_v44 = vpack.c.b16 %v973_v34, %v973_v34  ;;  %v978_v45 = vpack.c.b16 %v970_v37, %v970_v37  ;;  %v979_v46 = vpack.c.b16 %v971_v38, %v971_v38 }
  0xb7   : > { %1419 = vmatpush.bf16.msra.mxu3 %v3038_v12  ;;  %v3033_v36 = vld [vmem:[%s3660_s25 + $0xc0] sm:$0xff]  ;;  %v3072_v42 = vld [vmem:[%s3660_s25 + $0x1f8] sm:$0xff]  ;;  %v3047_v47 = vld [vmem:[%s3660_s25 + $0x130] sm:$0xff] }
  0xb8   : > { %1381 = vmatpush.bf16.msra.mxu0 %v3013_v13  ;;  %v3055_v48 = vld [vmem:[%s3660_s25 + $0x170] sm:$0xff]  ;;  %v3046_v51 = vld [vmem:[%s3660_s25 + $0x128] sm:$0xff]  ;;  %v3045_v55 = vld [vmem:[%s3660_s25 + $0x120] sm:$0xff] }
  0xb9   : > { %1394 = vmatpush.bf16.msra.mxu1 %v3021_v14  ;;  %v3063_v49 = vld [vmem:[%s3660_s25 + $0x1b0] sm:$0xff]  ;;  %v3054_v52 = vld [vmem:[%s3660_s25 + $0x168] sm:$0xff]  ;;  %v3053_v56 = vld [vmem:[%s3660_s25 + $0x160] sm:$0xff] }
  0xba   : > { %1407 = vmatpush.bf16.msra.mxu2 %v3029_v15  ;;  %v3071_v50 = vld [vmem:[%s3660_s25 + $0x1f0] sm:$0xff]  ;;  %v3062_v53 = vld [vmem:[%s3660_s25 + $0x1a8] sm:$0xff]  ;;  %v3061_v57 = vld [vmem:[%s3660_s25 + $0x1a0] sm:$0xff] }
  0xbb   : > { %1420 = vmatpush.bf16.msra.mxu3 %v3037_v16  ;;  %v3070_v54 = vld [vmem:[%s3660_s25 + $0x1e8] sm:$0xff]  ;;  %v3069_v58 = vld [vmem:[%s3660_s25 + $0x1e0] sm:$0xff]  ;;  %v3044_v59 = vld [vmem:[%s3660_s25 + $0x118] sm:$0xff] }
  0xbc   : > { %1382 = vmatpush.bf16.msra.mxu0 %v3012_v17  ;;  %v3052_v60 = vld [vmem:[%s3660_s25 + $0x158] sm:$0xff]  ;;  %v3043_v63 = vld [vmem:[%s3660_s25 + $0x110] sm:$0xff]  ;;  %v3042_v3 = vld [vmem:[%s3660_s25 + $0x108] sm:$0xff] }
  0xbd   : > { %1395 = vmatpush.bf16.msra.mxu1 %v3020_v18  ;;  %v3060_v61 = vld [vmem:[%s3660_s25 + $0x198] sm:$0xff]  ;;  %v3051_v0 = vld [vmem:[%s3660_s25 + $0x150] sm:$0xff]  ;;  %v3050_v4 = vld [vmem:[%s3660_s25 + $0x148] sm:$0xff] }
  0xbe   : > { %1408 = vmatpush.bf16.msra.mxu2 %v3028_v19  ;;  %v3068_v62 = vld [vmem:[%s3660_s25 + $0x1d8] sm:$0xff]  ;;  %v3059_v1 = vld [vmem:[%s3660_s25 + $0x190] sm:$0xff]  ;;  %v836_v5 = vld [vmem:[%s3643_s30 + $0x10] sm:$0xff] }
  0xbf   : > { %1421 = vmatpush.bf16.msra.mxu3 %v3036_v20  ;;  %v3067_v2 = vld [vmem:[%s3660_s25 + $0x1d0] sm:$0xff]  ;;  %v3058_v6 = vld [vmem:[%s3660_s25 + $0x188] sm:$0xff]  ;;  %v974_v9 = vunpack.c.l.b16 %v836_v5  ;;  %v975_v10 = vunpack.c.h.b16 %v836_v5  ;;  %v3041_v11 = vld [vmem:[%s3660_s25 + $0x100] sm:$0xff] }
  0xc0   : > { %1383 = vmatpush.bf16.msra.mxu0 %v3011_v21  ;;  %v3066_v7 = vld [vmem:[%s3660_s25 + $0x1c8] sm:$0xff]  ;;  %v837_v8 = vld [vmem:[%s3643_s30 + $0x18] sm:$0xff]  ;;  %v3049_v12 = vld [vmem:[%s3660_s25 + $0x140] sm:$0xff] }
  0xc1   : > { %1396 = vmatpush.bf16.msra.mxu1 %v3019_v22  ;;  %v976_v13 = vunpack.c.l.b16 %v837_v8  ;;  %v977_v14 = vunpack.c.h.b16 %v837_v8  ;;  %v3057_v15 = vld [vmem:[%s3660_s25 + $0x180] sm:$0xff]  ;;  %v982_v17 = vpack.c.b16 %v974_v9, %v974_v9  ;;  %v983_v18 = vpack.c.b16 %v975_v10, %v975_v10 }
  0xc2   : > { %1409 = vmatpush.bf16.msra.mxu2 %v3027_v23  ;;  %v3065_v16 = vld [vmem:[%s3660_s25 + $0x1c0] sm:$0xff] }
  0xc3   : > { %1422 = vmatpush.bf16.msra.mxu3 %v3035_v24  ;;  %v984_v19 = vpack.c.b16 %v976_v13, %v976_v13  ;;  %v985_v20 = vpack.c.b16 %v977_v14, %v977_v14 }
  0xc4   : > { %1384 = vmatpush.bf16.msra.mxu0 %v3010_v25 }
  0xc5   : > { %1397 = vmatpush.bf16.msra.mxu1 %v3018_v26 }
  0xc6   : > { %1410 = vmatpush.bf16.msra.mxu2 %v3026_v27 }
  0xc7   : > { %1423 = vmatpush.bf16.msra.mxu3 %v3034_v28 }
  0xc8   : > { %1385 = vmatpush.bf16.msra.mxu0 %v3009_v31 }
  0xc9   : > { %1398 = vmatpush.bf16.msra.mxu1 %v3017_v32 }
  0xca   : > { %1411 = vmatpush.bf16.msra.mxu2 %v3025_v35 }
  0xcb   : > { %1424 = vmatpush.bf16.msra.mxu3 %v3033_v36  ;;  %1386 = vmatmul.bf16.vlgmr.msra.gmra.mxu0 %v978_v45 }
  0xcc   : > { %1430 = vmatpush.bf16.msrb.mxu0 %v3048_v39  ;;  %1399 = vmatmul.bf16.vlgmr.msra.gmra.mxu1 %v979_v46 }
  0xcd   : > { %1443 = vmatpush.bf16.msrb.mxu1 %v3056_v40  ;;  %1412 = vmatmul.bf16.vlgmr.msra.gmra.mxu2 %v980_v43 }
  0xce   : > { %1456 = vmatpush.bf16.msrb.mxu2 %v3064_v41  ;;  %1425 = vmatmul.bf16.vlgmr.msra.gmra.mxu3 %v981_v44  ;;  %v833_v41 = vld [vmem:[#allocation2] sm:$0xff] }
  0xcf   : > { %1469 = vmatpush.bf16.msrb.mxu3 %v3072_v42 }
  0xd0   : > { %1431 = vmatpush.bf16.msrb.mxu0 %v3047_v47 }
  0xd1   : > { %1444 = vmatpush.bf16.msrb.mxu1 %v3055_v48 }
  0xd2   : > { %1457 = vmatpush.bf16.msrb.mxu2 %v3063_v49 }
  0xd3   : > { %1470 = vmatpush.bf16.msrb.mxu3 %v3071_v50 }
  0xd4   : > { %1432 = vmatpush.bf16.msrb.mxu0 %v3046_v51 }
  0xd5   : > { %1445 = vmatpush.bf16.msrb.mxu1 %v3054_v52 }
  0xd6   : > { %1458 = vmatpush.bf16.msrb.mxu2 %v3062_v53 }
  0xd7   : > { %1471 = vmatpush.bf16.msrb.mxu3 %v3070_v54 }
  0xd8   : > { %1433 = vmatpush.bf16.msrb.mxu0 %v3045_v55 }
  0xd9   : > { %1446 = vmatpush.bf16.msrb.mxu1 %v3053_v56 }
  0xda   : > { %1459 = vmatpush.bf16.msrb.mxu2 %v3061_v57 }
  0xdb   : > { %1472 = vmatpush.bf16.msrb.mxu3 %v3069_v58 }
  0xdc   : > { %1434 = vmatpush.bf16.msrb.mxu0 %v3044_v59 }
  0xdd   : > { %1447 = vmatpush.bf16.msrb.mxu1 %v3052_v60 }
  0xde   : > { %1460 = vmatpush.bf16.msrb.mxu2 %v3060_v61 }
  0xdf   : > { %1473 = vmatpush.bf16.msrb.mxu3 %v3068_v62 }
  0xe0   : > { %1435 = vmatpush.bf16.msrb.mxu0 %v3043_v63 }
  0xe1   : > { %1448 = vmatpush.bf16.msrb.mxu1 %v3051_v0 }
  0xe2   : > { %1461 = vmatpush.bf16.msrb.mxu2 %v3059_v1 }
  0xe3   : > { %1474 = vmatpush.bf16.msrb.mxu3 %v3067_v2 }
  0xe4   : > { %1436 = vmatpush.bf16.msrb.mxu0 %v3042_v3 }
  0xe5   : > { %1449 = vmatpush.bf16.msrb.mxu1 %v3050_v4 }
  0xe6   : > { %1462 = vmatpush.bf16.msrb.mxu2 %v3058_v6 }
  0xe7   : > { %1475 = vmatpush.bf16.msrb.mxu3 %v3066_v7 }
  0xe8   : > { %1437 = vmatpush.bf16.msrb.mxu0 %v3041_v11 }
  0xe9   : > { %1450 = vmatpush.bf16.msrb.mxu1 %v3049_v12 }
  0xea   : > { %1463 = vmatpush.bf16.msrb.mxu2 %v3057_v15 }
  0xeb   : > { %1476 = vmatpush.bf16.msrb.mxu3 %v3065_v16  ;;  %1438 = vmatmul.bf16.vlgmr.msrb.gmra.mxu0 %v982_v17 }
  0xec   : > { %1451 = vmatmul.bf16.vlgmr.msrb.gmra.mxu1 %v983_v18 }
  0xed   : > { %1464 = vmatmul.bf16.vlgmr.msrb.gmra.mxu2 %v984_v19 }
  0xee   : > { %1477 = vmatmul.bf16.vlgmr.msrb.gmra.mxu3 %v985_v20 }
 0x148   : > { %v1387_v21 = vpop.f32.mrf.mxu0 }
 0x149   : > { %v1400_v22 = vpop.f32.mrf.mxu1 }
 0x14a   : > { %v1401_v29 = vadd.f32 %v1400_v22, %v1387_v21 }
 0x150   : > { %v1413_v23 = vpop.f32.mrf.mxu2  ;;  %v1389_v25 = vpop.f32.mrf.mxu0 }
 0x151   : > { %v1426_v24 = vpop.f32.mrf.mxu3  ;;  %v1402_v26 = vpop.f32.mrf.mxu1  ;;  %v1414_v30 = vadd.f32 %v1413_v23, %v1401_v29 }
 0x153   : > { %v1427_v31 = vadd.f32 %v1426_v24, %v1414_v30 }
 0x158   : > { %v1415_v27 = vpop.f32.mrf.mxu2 }
 0x159   : > { %v1428_v28 = vpop.f32.mrf.mxu3 }
 0x168   : > { %v1439_v32 = vpop.f32.mrf.mxu0 }
 0x169   : > { %v1452_v33 = vpop.f32.mrf.mxu1  ;;  %v1440_v34 = vadd.f32 %v1439_v32, %v1427_v31 }
 0x16b   : > { %v1453_v35 = vadd.f32 %v1452_v33, %v1440_v34 }
 0x170   : > { %v1465_v36 = vpop.f32.mrf.mxu2  ;;  %v1441_v39 = vpop.f32.mrf.mxu0 }
 0x171   : > { %v1478_v37 = vpop.f32.mrf.mxu3  ;;  %v1466_v38 = vadd.f32 %v1465_v36, %v1453_v35  ;;  %v1454_v40 = vpop.f32.mrf.mxu1 }
 0x173   : > { %v1479_v42 = vadd.f32 %v1478_v37, %v1466_v38 }
 0x175   : > { %v1482_v43 = vadd.f32 %v1479_v42, %v833_v41  ;;  %1487 = sbr.rel (%p2621_p0) target bundleno = 618 (0x26a), region = 85 }
 0x177   : > { %1483 = vst [vmem:[#allocation2] sm:$0xff] %v1482_v43 }
 0x178   : > { %v1467_v44 = vpop.f32.mrf.mxu2 }
 0x179   : > { %v1480_v45 = vpop.f32.mrf.mxu3 }
 0x17a   : > { %v2960_v46 = vld [vmem:[%s3658_s13 + $0x2a0] sm:$0xf]  ;;  %v3163_v47 = vld [vmem:[%s3658_s13 + $0x2cc] sm:$0xf0]  ;;  %v3157_v48 = vld [vmem:[%s3658_s13 + $0x2a4] sm:$0xf] }
 0x17b   : > { %v2961_v49 = vor.u32 %v3163_v47, %v2960_v46  ;;  %v2962_v50 = vld [vmem:[%s3658_s13 + $0x2d0] sm:$0xf0]  ;;  %v2968_v51 = vld [vmem:[%s3658_s13 + $0x2a8] sm:$0xf]  ;;  %v3164_v52 = vld [vmem:[%s3658_s13 + $0x2d4] sm:$0xf0] }
 0x17c   : > { %v2965_v53 = vor.u32 %v3157_v48, %v2962_v50  ;;  %v2969_v54 = vor.u32 %v3164_v52, %v2968_v51  ;;  %v3158_v55 = vld [vmem:[%s3658_s13 + $0x2ac] sm:$0xf]  ;;  %v2970_v56 = vld [vmem:[%s3658_s13 + $0x2d8] sm:$0xf0]  ;;  %v2912_v57 = vld [vmem:[%s3658_s13 + $0x240] sm:$0xf] }
 0x17d   : > { %2074 = vmatpush.bf16.msra.mxu0 %v2961_v49  ;;  %v2973_v58 = vor.u32 %v3158_v55, %v2970_v56  ;;  %v3151_v59 = vld [vmem:[%s3658_s13 + $0x26c] sm:$0xf0]  ;;  %v3145_v60 = vld [vmem:[%s3658_s13 + $0x244] sm:$0xf]  ;;  %v2914_v61 = vld [vmem:[%s3658_s13 + $0x270] sm:$0xf0] }
 0x17e   : > { %2087 = vmatpush.bf16.msra.mxu1 %v2965_v53  ;;  %2100 = vmatpush.bf16.msra.mxu2 %v2969_v54  ;;  %v2913_v62 = vor.u32 %v3151_v59, %v2912_v57  ;;  %v2917_v63 = vor.u32 %v3145_v60, %v2914_v61  ;;  %v2920_v0 = vld [vmem:[%s3658_s13 + $0x248] sm:$0xf]  ;;  %v3152_v1 = vld [vmem:[%s3658_s13 + $0x274] sm:$0xf0]  ;;  %v3146_v2 = vld [vmem:[%s3658_s13 + $0x24c] sm:$0xf] }
 0x17f   : > { %2113 = vmatpush.bf16.msra.mxu3 %v2973_v58  ;;  %v2921_v3 = vor.u32 %v3152_v1, %v2920_v0  ;;  %v2922_v4 = vld [vmem:[%s3658_s13 + $0x278] sm:$0xf0]  ;;  %v2864_v5 = vld [vmem:[%s3658_s13 + $0x1e0] sm:$0xf]  ;;  %v3139_v6 = vld [vmem:[%s3658_s13 + $0x20c] sm:$0xf0] }
 0x180   : > { %v2925_v7 = vor.u32 %v3146_v2, %v2922_v4  ;;  %v3133_v8 = vld [vmem:[%s3658_s13 + $0x1e4] sm:$0xf]  ;;  %v2866_v9 = vld [vmem:[%s3658_s13 + $0x210] sm:$0xf0]  ;;  %v2872_v10 = vld [vmem:[%s3658_s13 + $0x1e8] sm:$0xf]  ;;  %v2865_v11 = vor.u32 %v3139_v6, %v2864_v5 }
 0x181   : > { %2075 = vmatpush.bf16.msra.mxu0 %v2913_v62  ;;  %v3140_v12 = vld [vmem:[%s3658_s13 + $0x214] sm:$0xf0]  ;;  %v3134_v13 = vld [vmem:[%s3658_s13 + $0x1ec] sm:$0xf]  ;;  %v2874_v14 = vld [vmem:[%s3658_s13 + $0x218] sm:$0xf0]  ;;  %v2869_v15 = vor.u32 %v3133_v8, %v2866_v9 }
 0x182   : > { %2088 = vmatpush.bf16.msra.mxu1 %v2917_v63  ;;  %2101 = vmatpush.bf16.msra.mxu2 %v2921_v3  ;;  %v2873_v16 = vor.u32 %v3140_v12, %v2872_v10  ;;  %v2816_v17 = vld [vmem:[%s3658_s13 + $0x180] sm:$0xf]  ;;  %v3127_v18 = vld [vmem:[%s3658_s13 + $0x1ac] sm:$0xf0]  ;;  %v3121_v19 = vld [vmem:[%s3658_s13 + $0x184] sm:$0xf]  ;;  %v2877_v20 = vor.u32 %v3134_v13, %v2874_v14 }
 0x183   : > { %2114 = vmatpush.bf16.msra.mxu3 %v2925_v7  ;;  %v2818_v21 = vld [vmem:[%s3658_s13 + $0x1b0] sm:$0xf0]  ;;  %v2824_v22 = vld [vmem:[%s3658_s13 + $0x188] sm:$0xf]  ;;  %v3128_v23 = vld [vmem:[%s3658_s13 + $0x1b4] sm:$0xf0]  ;;  %v2817_v26 = vor.u32 %v3127_v18, %v2816_v17 }
 0x184   : > { %v3122_v24 = vld [vmem:[%s3658_s13 + $0x18c] sm:$0xf]  ;;  %v2826_v25 = vld [vmem:[%s3658_s13 + $0x1b8] sm:$0xf0]  ;;  %v2821_v27 = vor.u32 %v3121_v19, %v2818_v21  ;;  %v2825_v28 = vor.u32 %v3128_v23, %v2824_v22  ;;  %v2768_v29 = vld [vmem:[%s3658_s13 + $0x120] sm:$0xf] }
 0x185   : > { %2076 = vmatpush.bf16.msra.mxu0 %v2865_v11  ;;  %v3115_v30 = vld [vmem:[%s3658_s13 + $0x14c] sm:$0xf0]  ;;  %v3109_v31 = vld [vmem:[%s3658_s13 + $0x124] sm:$0xf]  ;;  %v2829_v32 = vor.u32 %v3122_v24, %v2826_v25  ;;  %v2770_v33 = vld [vmem:[%s3658_s13 + $0x150] sm:$0xf0] }
 0x186   : > { %2089 = vmatpush.bf16.msra.mxu1 %v2869_v15  ;;  %2102 = vmatpush.bf16.msra.mxu2 %v2873_v16  ;;  %v2776_v34 = vld [vmem:[%s3658_s13 + $0x128] sm:$0xf]  ;;  %v3116_v35 = vld [vmem:[%s3658_s13 + $0x154] sm:$0xf0]  ;;  %v3110_v36 = vld [vmem:[%s3658_s13 + $0x12c] sm:$0xf]  ;;  %v2769_v38 = vor.u32 %v3115_v30, %v2768_v29  ;;  %v2773_v39 = vor.u32 %v3109_v31, %v2770_v33 }
 0x187   : > { %2115 = vmatpush.bf16.msra.mxu3 %v2877_v20  ;;  %v2778_v37 = vld [vmem:[%s3658_s13 + $0x158] sm:$0xf0]  ;;  %v2777_v40 = vor.u32 %v3116_v35, %v2776_v34  ;;  %v2720_v41 = vld [vmem:[%s3658_s13 + $0xc0] sm:$0xf]  ;;  %v3103_v42 = vld [vmem:[%s3658_s13 + $0xec] sm:$0xf0] }
 0x188   : > { %v3097_v43 = vld [vmem:[%s3658_s13 + $0xc4] sm:$0xf]  ;;  %v2781_v44 = vor.u32 %v3110_v36, %v2778_v37  ;;  %v2722_v45 = vld [vmem:[%s3658_s13 + $0xf0] sm:$0xf0]  ;;  %v2728_v46 = vld [vmem:[%s3658_s13 + $0xc8] sm:$0xf]  ;;  %v2721_v50 = vor.u32 %v3103_v42, %v2720_v41 }
 0x189   : > { %2077 = vmatpush.bf16.msra.mxu0 %v2817_v26  ;;  %v3104_v47 = vld [vmem:[%s3658_s13 + $0xf4] sm:$0xf0]  ;;  %v3098_v48 = vld [vmem:[%s3658_s13 + $0xcc] sm:$0xf]  ;;  %v2730_v49 = vld [vmem:[%s3658_s13 + $0xf8] sm:$0xf0]  ;;  %v2725_v51 = vor.u32 %v3097_v43, %v2722_v45 }
 0x18a   : > { %2090 = vmatpush.bf16.msra.mxu1 %v2821_v27  ;;  %2103 = vmatpush.bf16.msra.mxu2 %v2825_v28  ;;  %v2729_v52 = vor.u32 %v3104_v47, %v2728_v46  ;;  %v2672_v53 = vld [vmem:[%s3658_s13 + $0x60] sm:$0xf]  ;;  %v3091_v54 = vld [vmem:[%s3658_s13 + $0x8c] sm:$0xf0]  ;;  %v3085_v55 = vld [vmem:[%s3658_s13 + $0x64] sm:$0xf]  ;;  %v2733_v56 = vor.u32 %v3098_v48, %v2730_v49 }
 0x18b   : > { %2116 = vmatpush.bf16.msra.mxu3 %v2829_v32  ;;  %v2674_v57 = vld [vmem:[%s3658_s13 + $0x90] sm:$0xf0]  ;;  %v2680_v58 = vld [vmem:[%s3658_s13 + $0x68] sm:$0xf]  ;;  %v3092_v59 = vld [vmem:[%s3658_s13 + $0x94] sm:$0xf0]  ;;  %v2673_v62 = vor.u32 %v3091_v54, %v2672_v53 }
 0x18c   : > { %v3086_v60 = vld [vmem:[%s3658_s13 + $0x6c] sm:$0xf]  ;;  %v2682_v61 = vld [vmem:[%s3658_s13 + $0x98] sm:$0xf0]  ;;  %v2624_v63 = vld [vmem:[%s3658_s13] sm:$0xf]  ;;  %v2677_v1 = vor.u32 %v3085_v55, %v2674_v57  ;;  %v2681_v2 = vor.u32 %v3092_v59, %v2680_v58 }
 0x18d   : > { %2078 = vmatpush.bf16.msra.mxu0 %v2769_v38  ;;  %v3079_v0 = vld [vmem:[%s3658_s13 + $0x2c] sm:$0xf0]  ;;  %v3073_v3 = vld [vmem:[%s3658_s13 + $0x4] sm:$0xf]  ;;  %v2626_v4 = vld [vmem:[%s3658_s13 + $0x30] sm:$0xf0]  ;;  %v2685_v6 = vor.u32 %v3086_v60, %v2682_v61 }
 0x18e   : > { %2091 = vmatpush.bf16.msra.mxu1 %v2773_v39  ;;  %2104 = vmatpush.bf16.msra.mxu2 %v2777_v40  ;;  %v2632_v5 = vld [vmem:[%s3658_s13 + $0x8] sm:$0xf]  ;;  %v3080_v7 = vld [vmem:[%s3658_s13 + $0x34] sm:$0xf0]  ;;  %v3074_v8 = vld [vmem:[%s3658_s13 + $0xc] sm:$0xf]  ;;  %v2625_v13 = vor.u32 %v3079_v0, %v2624_v63  ;;  %v2629_v17 = vor.u32 %v3073_v3, %v2626_v4 }
 0x18f   : > { %2117 = vmatpush.bf16.msra.mxu3 %v2781_v44  ;;  %v2634_v9 = vld [vmem:[%s3658_s13 + $0x38] sm:$0xf0]  ;;  %v2976_v10 = vld [vmem:[%s3658_s13 + $0x2b0] sm:$0xf]  ;;  %v3165_v11 = vld [vmem:[%s3658_s13 + $0x2dc] sm:$0xf0]  ;;  %v2633_v18 = vor.u32 %v3080_v7, %v2632_v5 }
 0x190   : > { %v3159_v12 = vld [vmem:[%s3658_s13 + $0x2b4] sm:$0xf]  ;;  %v2978_v14 = vld [vmem:[%s3658_s13 + $0x2e0] sm:$0xf0]  ;;  %v2984_v15 = vld [vmem:[%s3658_s13 + $0x2b8] sm:$0xf]  ;;  %v2637_v21 = vor.u32 %v3074_v8, %v2634_v9  ;;  %v2977_v22 = vor.u32 %v3165_v11, %v2976_v10 }
 0x191   : > { %2079 = vmatpush.bf16.msra.mxu0 %v2721_v50  ;;  %v3166_v16 = vld [vmem:[%s3658_s13 + $0x2e4] sm:$0xf0]  ;;  %v3160_v19 = vld [vmem:[%s3658_s13 + $0x2bc] sm:$0xf]  ;;  %v2986_v20 = vld [vmem:[%s3658_s13 + $0x2e8] sm:$0xf0]  ;;  %v2981_v23 = vor.u32 %v3159_v12, %v2978_v14 }
 0x192   : > { %2092 = vmatpush.bf16.msra.mxu1 %v2725_v51  ;;  %2105 = vmatpush.bf16.msra.mxu2 %v2729_v52  ;;  %v2985_v24 = vor.u32 %v3166_v16, %v2984_v15  ;;  %v2928_v25 = vld [vmem:[%s3658_s13 + $0x250] sm:$0xf]  ;;  %v3153_v26 = vld [vmem:[%s3658_s13 + $0x27c] sm:$0xf0]  ;;  %v3147_v27 = vld [vmem:[%s3658_s13 + $0x254] sm:$0xf]  ;;  %v2989_v28 = vor.u32 %v3160_v19, %v2986_v20 }
 0x193   : > { %2118 = vmatpush.bf16.msra.mxu3 %v2733_v56  ;;  %v2930_v29 = vld [vmem:[%s3658_s13 + $0x280] sm:$0xf0]  ;;  %v2936_v30 = vld [vmem:[%s3658_s13 + $0x258] sm:$0xf]  ;;  %v3154_v31 = vld [vmem:[%s3658_s13 + $0x284] sm:$0xf0]  ;;  %v2929_v34 = vor.u32 %v3153_v26, %v2928_v25 }
 0x194   : > { %v3148_v32 = vld [vmem:[%s3658_s13 + $0x25c] sm:$0xf]  ;;  %v2938_v33 = vld [vmem:[%s3658_s13 + $0x288] sm:$0xf0]  ;;  %v2880_v35 = vld [vmem:[%s3658_s13 + $0x1f0] sm:$0xf]  ;;  %v2933_v38 = vor.u32 %v3147_v27, %v2930_v29  ;;  %v2937_v39 = vor.u32 %v3154_v31, %v2936_v30 }
 0x195   : > { %2080 = vmatpush.bf16.msra.mxu0 %v2673_v62  ;;  %v3141_v36 = vld [vmem:[%s3658_s13 + $0x21c] sm:$0xf0]  ;;  %v3135_v37 = vld [vmem:[%s3658_s13 + $0x1f4] sm:$0xf]  ;;  %v2882_v40 = vld [vmem:[%s3658_s13 + $0x220] sm:$0xf0]  ;;  %v2941_v43 = vor.u32 %v3148_v32, %v2938_v33 }
 0x196   : > { %2093 = vmatpush.bf16.msra.mxu1 %v2677_v1  ;;  %2106 = vmatpush.bf16.msra.mxu2 %v2681_v2  ;;  %v2888_v41 = vld [vmem:[%s3658_s13 + $0x1f8] sm:$0xf]  ;;  %v1488_v42 = vld [vmem:[#allocation2] sm:$0xff]  ;;  %v3142_v44 = vld [vmem:[%s3658_s13 + $0x224] sm:$0xf0]  ;;  %v2881_v48 = vor.u32 %v3141_v36, %v2880_v35  ;;  %v2885_v52 = vor.u32 %v3135_v37, %v2882_v40 }
 0x197   : > { %2119 = vmatpush.bf16.msra.mxu3 %v2685_v6  ;;  %v3228_v45 = vld [vmem:[%s815_s15] ss:$0 sm:$0xff]  ;;  %v3136_v46 = vld [vmem:[%s3658_s13 + $0x1fc] sm:$0xf]  ;;  %v2890_v47 = vld [vmem:[%s3658_s13 + $0x228] sm:$0xf0]  ;;  %v2889_v53 = vor.u32 %v3142_v44, %v2888_v41 }
 0x198   : > { %v2832_v49 = vld [vmem:[%s3658_s13 + $0x190] sm:$0xf]  ;;  %v3129_v50 = vld [vmem:[%s3658_s13 + $0x1bc] sm:$0xf0]  ;;  %v1493_v51 = vadd.f32 %v3228_v45, %v1488_v42  ;;  %v3123_v54 = vld [vmem:[%s3658_s13 + $0x194] sm:$0xf]  ;;  %v2893_v57 = vor.u32 %v3136_v46, %v2890_v47 }
 0x199   : > { %2081 = vmatpush.bf16.msra.mxu0 %v2625_v13  ;;  %v2834_v55 = vld [vmem:[%s3658_s13 + $0x1c0] sm:$0xf0]  ;;  %v2840_v56 = vld [vmem:[%s3658_s13 + $0x198] sm:$0xf]  ;;  %v3130_v58 = vld [vmem:[%s3658_s13 + $0x1c4] sm:$0xf0]  ;;  %v2833_v62 = vor.u32 %v3129_v50, %v2832_v49 }
 0x19a   : > { %2094 = vmatpush.bf16.msra.mxu1 %v2629_v17  ;;  %2107 = vmatpush.bf16.msra.mxu2 %v2633_v18  ;;  %vm1494_vm0 = vcmp.ge.f32.partialorder %v1493_v51, 0.0  ;;  %v1495_v59 = vmul.f32 0.1, %v1493_v51  ;;  %v3124_v60 = vld [vmem:[%s3658_s13 + $0x19c] sm:$0xf]  ;;  %v2837_v0 = vor.u32 %v3123_v54, %v2834_v55  ;;  %v2841_v1 = vor.u32 %v3130_v58, %v2840_v56 }
 0x19b   : > { %2120 = vmatpush.bf16.msra.mxu3 %v2637_v21  ;;  %v2842_v61 = vld [vmem:[%s3658_s13 + $0x1c8] sm:$0xf0]  ;;  %v2784_v2 = vld [vmem:[%s3658_s13 + $0x130] sm:$0xf]  ;;  %v3117_v3 = vld [vmem:[%s3658_s13 + $0x15c] sm:$0xf0] }
 0x19c   : > { %v1496_v63 = vsel %vm1494_vm0, %v1493_v51, %v1495_v59  ;;  %v3111_v4 = vld [vmem:[%s3658_s13 + $0x134] sm:$0xf]  ;;  %v2845_v6 = vor.u32 %v3124_v60, %v2842_v61  ;;  %v2786_v7 = vld [vmem:[%s3658_s13 + $0x160] sm:$0xf0]  ;;  %v2792_v8 = vld [vmem:[%s3658_s13 + $0x138] sm:$0xf]  ;;  %v2785_v12 = vor.u32 %v3117_v3, %v2784_v2 }
 0x19d   : > { %2126 = vmatpush.bf16.msrb.mxu0 %v2977_v22  ;;  %v3836_v5 = vpack.c.bf16 %v1496_v63, %v1496_v63  ;;  %v3118_v9 = vld [vmem:[%s3658_s13 + $0x164] sm:$0xf0]  ;;  %v3112_v10 = vld [vmem:[%s3658_s13 + $0x13c] sm:$0xf]  ;;  %v2794_v11 = vld [vmem:[%s3658_s13 + $0x168] sm:$0xf0]  ;;  %v2789_v13 = vor.u32 %v3111_v4, %v2786_v7 }
 0x19e   : > { %2139 = vmatpush.bf16.msrb.mxu1 %v2981_v23  ;;  %2152 = vmatpush.bf16.msrb.mxu2 %v2985_v24  ;;  %v2793_v14 = vor.u32 %v3118_v9, %v2792_v8  ;;  %v2736_v15 = vld [vmem:[%s3658_s13 + $0xd0] sm:$0xf]  ;;  %v3105_v16 = vld [vmem:[%s3658_s13 + $0xfc] sm:$0xf0]  ;;  %v3099_v17 = vld [vmem:[%s3658_s13 + $0xd4] sm:$0xf]  ;;  %v2797_v18 = vor.u32 %v3112_v10, %v2794_v11 }
 0x19f   : > { %2165 = vmatpush.bf16.msrb.mxu3 %v2989_v28  ;;  %2108 = vmatmul.bf16.vlgmr.msra.gmra.mxu2 %v3836_v5  ;;  %v2738_v19 = vld [vmem:[%s3658_s13 + $0x100] sm:$0xf0]  ;;  %v2744_v20 = vld [vmem:[%s3658_s13 + $0xd8] sm:$0xf]  ;;  %v3106_v21 = vld [vmem:[%s3658_s13 + $0x104] sm:$0xf0]  ;;  %v2737_v24 = vor.u32 %v3105_v16, %v2736_v15 }
 0x1a0   : > { %2121 = vmatmul.bf16.vlgmr.msra.gmra.mxu3 %v3836_v5  ;;  %2095 = vmatmul.bf16.vlgmr.msra.gmra.mxu1 %v3836_v5  ;;  %v3100_v22 = vld [vmem:[%s3658_s13 + $0xdc] sm:$0xf]  ;;  %v2746_v23 = vld [vmem:[%s3658_s13 + $0x108] sm:$0xf0]  ;;  %v2741_v25 = vor.u32 %v3099_v17, %v2738_v19  ;;  %v2745_v26 = vor.u32 %v3106_v21, %v2744_v20  ;;  %v2688_v27 = vld [vmem:[%s3658_s13 + $0x70] sm:$0xf] }
 0x1a1   : > { %2127 = vmatpush.bf16.msrb.mxu0 %v2929_v34  ;;  %v3093_v28 = vld [vmem:[%s3658_s13 + $0x9c] sm:$0xf0]  ;;  %v3087_v29 = vld [vmem:[%s3658_s13 + $0x74] sm:$0xf]  ;;  %v2749_v30 = vor.u32 %v3100_v22, %v2746_v23  ;;  %v2690_v31 = vld [vmem:[%s3658_s13 + $0xa0] sm:$0xf0] }
 0x1a2   : > { %2140 = vmatpush.bf16.msrb.mxu1 %v2933_v38  ;;  %2153 = vmatpush.bf16.msrb.mxu2 %v2937_v39  ;;  %v2696_v32 = vld [vmem:[%s3658_s13 + $0x78] sm:$0xf]  ;;  %v3094_v33 = vld [vmem:[%s3658_s13 + $0xa4] sm:$0xf0]  ;;  %v3088_v34 = vld [vmem:[%s3658_s13 + $0x7c] sm:$0xf]  ;;  %v2689_v36 = vor.u32 %v3093_v28, %v2688_v27  ;;  %v2693_v39 = vor.u32 %v3087_v29, %v2690_v31 }
 0x1a3   : > { %2166 = vmatpush.bf16.msrb.mxu3 %v2941_v43  ;;  %2082 = vmatmul.bf16.vlgmr.msra.gmra.mxu0 %v3836_v5  ;;  %v2698_v35 = vld [vmem:[%s3658_s13 + $0xa8] sm:$0xf0]  ;;  %v2640_v37 = vld [vmem:[%s3658_s13 + $0x10] sm:$0xf]  ;;  %v3081_v38 = vld [vmem:[%s3658_s13 + $0x3c] sm:$0xf0]  ;;  %v2697_v40 = vor.u32 %v3094_v33, %v2696_v32 }
 0x1a4   : > { %v3075_v41 = vld [vmem:[%s3658_s13 + $0x14] sm:$0xf]  ;;  %v2642_v42 = vld [vmem:[%s3658_s13 + $0x40] sm:$0xf0]  ;;  %v2648_v43 = vld [vmem:[%s3658_s13 + $0x18] sm:$0xf]  ;;  %v2701_v44 = vor.u32 %v3088_v34, %v2698_v35  ;;  %v2641_v51 = vor.u32 %v3081_v38, %v2640_v37 }
 0x1a5   : > { %2128 = vmatpush.bf16.msrb.mxu0 %v2881_v48  ;;  %v3082_v45 = vld [vmem:[%s3658_s13 + $0x44] sm:$0xf0]  ;;  %v3076_v46 = vld [vmem:[%s3658_s13 + $0x1c] sm:$0xf]  ;;  %v2650_v47 = vld [vmem:[%s3658_s13 + $0x48] sm:$0xf0]  ;;  %v2645_v55 = vor.u32 %v3075_v41, %v2642_v42 }
 0x1a6   : > { %2141 = vmatpush.bf16.msrb.mxu1 %v2885_v52  ;;  %2154 = vmatpush.bf16.msrb.mxu2 %v2889_v53  ;;  %v2992_v48 = vld [vmem:[%s3658_s13 + $0x2c0] sm:$0xf]  ;;  %v3167_v49 = vld [vmem:[%s3658_s13 + $0x2ec] sm:$0xf0]  ;;  %v3161_v50 = vld [vmem:[%s3658_s13 + $0x2c4] sm:$0xf]  ;;  %v2649_v56 = vor.u32 %v3082_v45, %v2648_v43  ;;  %v2653_v59 = vor.u32 %v3076_v46, %v2650_v47 }
 0x1a7   : > { %2167 = vmatpush.bf16.msrb.mxu3 %v2893_v57  ;;  %v2994_v52 = vld [vmem:[%s3658_s13 + $0x2f0] sm:$0xf0]  ;;  %v3000_v53 = vld [vmem:[%s3658_s13 + $0x2c8] sm:$0xf]  ;;  %v3168_v54 = vld [vmem:[%s3658_s13 + $0x2f4] sm:$0xf0]  ;;  %v2993_v60 = vor.u32 %v3167_v49, %v2992_v48 }
 0x1a8   : > { %v3162_v57 = vld [vmem:[%s3658_s13 + $0x2cc] sm:$0xf]  ;;  %v3002_v58 = vld [vmem:[%s3658_s13 + $0x2f8] sm:$0xf0]  ;;  %v2997_v61 = vor.u32 %v3161_v50, %v2994_v52  ;;  %v2944_v63 = vld [vmem:[%s3658_s13 + $0x260] sm:$0xf] }
 0x1a9   : > { %2129 = vmatpush.bf16.msrb.mxu0 %v2833_v62  ;;  %v3001_v62 = vor.u32 %v3168_v54, %v3000_v53  ;;  %v3005_v2 = vor.u32 %v3162_v57, %v3002_v58  ;;  %v2946_v3 = vld [vmem:[%s3658_s13 + $0x290] sm:$0xf0]  ;;  %v2952_v4 = vld [vmem:[%s3658_s13 + $0x268] sm:$0xf]  ;;  %v3150_v7 = vld [vmem:[%s3658_s13 + $0x26c] sm:$0xf] }
 0x1aa   : > { %2142 = vmatpush.bf16.msrb.mxu1 %v2837_v0  ;;  %2155 = vmatpush.bf16.msrb.mxu2 %v2841_v1  ;;  %v3155_v0 = vld [vmem:[%s3658_s13 + $0x28c] sm:$0xf0]  ;;  %v3149_v1 = vld [vmem:[%s3658_s13 + $0x264] sm:$0xf]  ;;  %v2954_v8 = vld [vmem:[%s3658_s13 + $0x298] sm:$0xf0] }
 0x1ab   : > { %2168 = vmatpush.bf16.msrb.mxu3 %v2845_v6  ;;  %v3156_v6 = vld [vmem:[%s3658_s13 + $0x294] sm:$0xf0]  ;;  %v2945_v9 = vor.u32 %v3155_v0, %v2944_v63  ;;  %v2949_v10 = vor.u32 %v3149_v1, %v2946_v3  ;;  %v2957_v15 = vor.u32 %v3150_v7, %v2954_v8  ;;  %v2898_v16 = vld [vmem:[%s3658_s13 + $0x230] sm:$0xf0]  ;;  %v2904_v17 = vld [vmem:[%s3658_s13 + $0x208] sm:$0xf] }
 0x1ac   : > { %v2953_v11 = vor.u32 %v3156_v6, %v2952_v4  ;;  %v3138_v19 = vld [vmem:[%s3658_s13 + $0x20c] sm:$0xf]  ;;  %v2906_v20 = vld [vmem:[%s3658_s13 + $0x238] sm:$0xf0]  ;;  %v2850_v28 = vld [vmem:[%s3658_s13 + $0x1d0] sm:$0xf0] }
 0x1ad   : > { %2130 = vmatpush.bf16.msrb.mxu0 %v2785_v12  ;;  %v2896_v12 = vld [vmem:[%s3658_s13 + $0x200] sm:$0xf]  ;;  %v2909_v27 = vor.u32 %v3138_v19, %v2906_v20  ;;  %v2856_v29 = vld [vmem:[%s3658_s13 + $0x1a8] sm:$0xf]  ;;  %v3126_v31 = vld [vmem:[%s3658_s13 + $0x1ac] sm:$0xf] }
 0x1ae   : > { %2143 = vmatpush.bf16.msrb.mxu1 %v2789_v13  ;;  %2156 = vmatpush.bf16.msrb.mxu2 %v2793_v14  ;;  %v3143_v13 = vld [vmem:[%s3658_s13 + $0x22c] sm:$0xf0]  ;;  %v3137_v14 = vld [vmem:[%s3658_s13 + $0x204] sm:$0xf]  ;;  %v2858_v32 = vld [vmem:[%s3658_s13 + $0x1d8] sm:$0xf0] }
 0x1af   : > { %2169 = vmatpush.bf16.msrb.mxu3 %v2797_v18  ;;  %v3144_v18 = vld [vmem:[%s3658_s13 + $0x234] sm:$0xf0]  ;;  %v2897_v21 = vor.u32 %v3143_v13, %v2896_v12  ;;  %v2901_v22 = vor.u32 %v3137_v14, %v2898_v16  ;;  %v3119_v37 = vld [vmem:[%s3658_s13 + $0x16c] sm:$0xf0]  ;;  %v3113_v38 = vld [vmem:[%s3658_s13 + $0x144] sm:$0xf] }
 0x1b0   : > { %v2905_v23 = vor.u32 %v3144_v18, %v2904_v17  ;;  %v2808_v41 = vld [vmem:[%s3658_s13 + $0x148] sm:$0xf]  ;;  %v3120_v42 = vld [vmem:[%s3658_s13 + $0x174] sm:$0xf0]  ;;  %v3114_v43 = vld [vmem:[%s3658_s13 + $0x14c] sm:$0xf] }
 0x1b1   : > { %2131 = vmatpush.bf16.msrb.mxu0 %v2737_v24  ;;  %v2848_v24 = vld [vmem:[%s3658_s13 + $0x1a0] sm:$0xf]  ;;  %v2809_v47 = vor.u32 %v3120_v42, %v2808_v41  ;;  %v3107_v49 = vld [vmem:[%s3658_s13 + $0x10c] sm:$0xf0]  ;;  %v3101_v50 = vld [vmem:[%s3658_s13 + $0xe4] sm:$0xf] }
 0x1b2   : > { %2144 = vmatpush.bf16.msrb.mxu1 %v2741_v25  ;;  %2157 = vmatpush.bf16.msrb.mxu2 %v2745_v26  ;;  %v3131_v25 = vld [vmem:[%s3658_s13 + $0x1cc] sm:$0xf0]  ;;  %v3125_v26 = vld [vmem:[%s3658_s13 + $0x1a4] sm:$0xf]  ;;  %v2752_v48 = vld [vmem:[%s3658_s13 + $0xe0] sm:$0xf] }
 0x1b3   : > { %2170 = vmatpush.bf16.msrb.mxu3 %v2749_v30  ;;  %v3132_v30 = vld [vmem:[%s3658_s13 + $0x1d4] sm:$0xf0]  ;;  %v2849_v33 = vor.u32 %v3131_v25, %v2848_v24  ;;  %v2853_v34 = vor.u32 %v3125_v26, %v2850_v28  ;;  %v2754_v52 = vld [vmem:[%s3658_s13 + $0x110] sm:$0xf0]  ;;  %v2760_v53 = vld [vmem:[%s3658_s13 + $0xe8] sm:$0xf]  ;;  %v2753_v57 = vor.u32 %v3107_v49, %v2752_v48 }
 0x1b4   : > { %v2857_v35 = vor.u32 %v3132_v30, %v2856_v29  ;;  %v3108_v54 = vld [vmem:[%s3658_s13 + $0x114] sm:$0xf0]  ;;  %v2757_v58 = vor.u32 %v3101_v50, %v2754_v52  ;;  %v2706_v0 = vld [vmem:[%s3658_s13 + $0xb0] sm:$0xf0]  ;;  %v2712_v1 = vld [vmem:[%s3658_s13 + $0x88] sm:$0xf] }
 0x1b5   : > { %2132 = vmatpush.bf16.msrb.mxu0 %v2689_v36  ;;  %v2800_v36 = vld [vmem:[%s3658_s13 + $0x140] sm:$0xf]  ;;  %v3090_v3 = vld [vmem:[%s3658_s13 + $0x8c] sm:$0xf]  ;;  %v2714_v4 = vld [vmem:[%s3658_s13 + $0xb8] sm:$0xf0] }
 0x1b6   : > { %2145 = vmatpush.bf16.msrb.mxu1 %v2693_v39  ;;  %2158 = vmatpush.bf16.msrb.mxu2 %v2697_v40  ;;  %v2861_v39 = vor.u32 %v3126_v31, %v2858_v32  ;;  %v2802_v40 = vld [vmem:[%s3658_s13 + $0x170] sm:$0xf0]  ;;  %v2801_v45 = vor.u32 %v3119_v37, %v2800_v36  ;;  %v2717_v12 = vor.u32 %v3090_v3, %v2714_v4  ;;  %v2664_v14 = vld [vmem:[%s3658_s13 + $0x28] sm:$0xf]  ;;  %v3078_v16 = vld [vmem:[%s3658_s13 + $0x2c] sm:$0xf] }
 0x1b7   : > { %2171 = vmatpush.bf16.msrb.mxu3 %v2701_v44  ;;  %v2810_v44 = vld [vmem:[%s3658_s13 + $0x178] sm:$0xf0]  ;;  %v2805_v46 = vor.u32 %v3113_v38, %v2802_v40  ;;  %v2658_v13 = vld [vmem:[%s3658_s13 + $0x50] sm:$0xf0] }
 0x1b8   : > { %v2666_v17 = vld [vmem:[%s3658_s13 + $0x58] sm:$0xf0] }
 0x1b9   : > { %2133 = vmatpush.bf16.msrb.mxu0 %v2641_v51  ;;  %v2813_v51 = vor.u32 %v3114_v43, %v2810_v44 }
 0x1ba   : > { %2146 = vmatpush.bf16.msrb.mxu1 %v2645_v55  ;;  %2159 = vmatpush.bf16.msrb.mxu2 %v2649_v56  ;;  %v3102_v55 = vld [vmem:[%s3658_s13 + $0xec] sm:$0xf]  ;;  %v2762_v56 = vld [vmem:[%s3658_s13 + $0x118] sm:$0xf0] }
 0x1bb   : > { %2172 = vmatpush.bf16.msrb.mxu3 %v2653_v59  ;;  %v2761_v59 = vor.u32 %v3108_v54, %v2760_v53  ;;  %v2765_v63 = vor.u32 %v3102_v55, %v2762_v56 }
 0x1bc   : > { %2134 = vmatmul.bf16.vlgmr.msrb.gmra.mxu0 %v3836_v5 }
 0x1bd   : > { %2178 = vmatpush.bf16.msra.mxu0 %v2993_v60  ;;  %2160 = vmatmul.bf16.vlgmr.msrb.gmra.mxu2 %v3836_v5  ;;  %v2704_v60 = vld [vmem:[%s3658_s13 + $0x80] sm:$0xf] }
 0x1be   : > { %2191 = vmatpush.bf16.msra.mxu1 %v2997_v61  ;;  %2204 = vmatpush.bf16.msra.mxu2 %v3001_v62  ;;  %v3095_v61 = vld [vmem:[%s3658_s13 + $0xac] sm:$0xf0]  ;;  %v3089_v62 = vld [vmem:[%s3658_s13 + $0x84] sm:$0xf] }
 0x1bf   : > { %2217 = vmatpush.bf16.msra.mxu3 %v3005_v2  ;;  %2147 = vmatmul.bf16.vlgmr.msrb.gmra.mxu1 %v3836_v5  ;;  %v3096_v2 = vld [vmem:[%s3658_s13 + $0xb4] sm:$0xf0]  ;;  %v2705_v6 = vor.u32 %v3095_v61, %v2704_v60  ;;  %v2709_v7 = vor.u32 %v3089_v62, %v2706_v0 }
 0x1c0   : > { %2173 = vmatmul.bf16.vlgmr.msrb.gmra.mxu3 %v3836_v5  ;;  %v2713_v8 = vor.u32 %v3096_v2, %v2712_v1 }
 0x1c1   : > { %2179 = vmatpush.bf16.msra.mxu0 %v2945_v9  ;;  %v2656_v9 = vld [vmem:[%s3658_s13 + $0x20] sm:$0xf] }
 0x1c2   : > { %2192 = vmatpush.bf16.msra.mxu1 %v2949_v10  ;;  %2205 = vmatpush.bf16.msra.mxu2 %v2953_v11  ;;  %v3083_v10 = vld [vmem:[%s3658_s13 + $0x4c] sm:$0xf0]  ;;  %v3077_v11 = vld [vmem:[%s3658_s13 + $0x24] sm:$0xf] }
 0x1c3   : > { %2218 = vmatpush.bf16.msra.mxu3 %v2957_v15  ;;  %v3084_v15 = vld [vmem:[%s3658_s13 + $0x54] sm:$0xf0]  ;;  %v2657_v18 = vor.u32 %v3083_v10, %v2656_v9  ;;  %v2661_v19 = vor.u32 %v3077_v11, %v2658_v13 }
 0x1c4   : > { %v2665_v20 = vor.u32 %v3084_v15, %v2664_v14 }
 0x1c5   : > { %2180 = vmatpush.bf16.msra.mxu0 %v2897_v21  ;;  %v2669_v21 = vor.u32 %v3078_v16, %v2666_v17 }
 0x1c6   : > { %2193 = vmatpush.bf16.msra.mxu1 %v2901_v22  ;;  %2206 = vmatpush.bf16.msra.mxu2 %v2905_v23 }
 0x1c7   : > { %2219 = vmatpush.bf16.msra.mxu3 %v2909_v27 }
 0x1c9   : > { %2181 = vmatpush.bf16.msra.mxu0 %v2849_v33 }
 0x1ca   : > { %2194 = vmatpush.bf16.msra.mxu1 %v2853_v34  ;;  %2207 = vmatpush.bf16.msra.mxu2 %v2857_v35 }
 0x1cb   : > { %2220 = vmatpush.bf16.msra.mxu3 %v2861_v39 }
 0x1cd   : > { %2182 = vmatpush.bf16.msra.mxu0 %v2801_v45 }
 0x1ce   : > { %2195 = vmatpush.bf16.msra.mxu1 %v2805_v46  ;;  %2208 = vmatpush.bf16.msra.mxu2 %v2809_v47 }
 0x1cf   : > { %2221 = vmatpush.bf16.msra.mxu3 %v2813_v51 }
 0x1d1   : > { %2183 = vmatpush.bf16.msra.mxu0 %v2753_v57 }
 0x1d2   : > { %2196 = vmatpush.bf16.msra.mxu1 %v2757_v58  ;;  %2209 = vmatpush.bf16.msra.mxu2 %v2761_v59 }
 0x1d3   : > { %2222 = vmatpush.bf16.msra.mxu3 %v2765_v63 }
 0x1d5   : > { %2184 = vmatpush.bf16.msra.mxu0 %v2705_v6 }
 0x1d6   : > { %2197 = vmatpush.bf16.msra.mxu1 %v2709_v7  ;;  %2210 = vmatpush.bf16.msra.mxu2 %v2713_v8 }
 0x1d7   : > { %2223 = vmatpush.bf16.msra.mxu3 %v2717_v12 }
 0x1d9   : > { %2185 = vmatpush.bf16.msra.mxu0 %v2657_v18 }
 0x1da   : > { %2198 = vmatpush.bf16.msra.mxu1 %v2661_v19  ;;  %2211 = vmatpush.bf16.msra.mxu2 %v2665_v20 }
 0x1db   : > { %2224 = vmatpush.bf16.msra.mxu3 %v2669_v21 }
 0x1dc   : > { %2186 = vmatmul.bf16.vlgmr.msra.gmra.mxu0 %v3836_v5 }
 0x1dd   : > { %2199 = vmatmul.bf16.vlgmr.msra.gmra.mxu1 %v3836_v5  ;;  %2212 = vmatmul.bf16.vlgmr.msra.gmra.mxu2 %v3836_v5 }
 0x1de   : > { %2225 = vmatmul.bf16.vlgmr.msra.gmra.mxu3 %v3836_v5 }
 0x21d   : > { %v2096_v22 = vpop.f32.mrf.mxu1 }
 0x21e   : > { %2231 = vst [vmem:[%s3653_s10 + $0x8] sm:$0xff] %v2096_v22 }
 0x220   : > { %v2083_v23 = vpop.f32.mrf.mxu0 }
 0x221   : > { %2230 = vst [vmem:[%s3653_s10] sm:$0xff] %v2083_v23 }
 0x222   : > { %v2109_v24 = vpop.f32.mrf.mxu2 }
 0x223   : > { %v2122_v25 = vpop.f32.mrf.mxu3  ;;  %2232 = vst [vmem:[%s3653_s10 + $0x10] sm:$0xff] %v2109_v24 }
 0x224   : > { %2233 = vst [vmem:[%s3653_s10 + $0x18] sm:$0xff] %v2122_v25 }
 0x225   : > { %v2098_v26 = vpop.f32.mrf.mxu1 }
 0x228   : > { %v2085_v27 = vpop.f32.mrf.mxu0 }
 0x22a   : > { %v2111_v28 = vpop.f32.mrf.mxu2 }
 0x22b   : > { %v2124_v29 = vpop.f32.mrf.mxu3 }
 0x239   : > { %v2135_v30 = vpop.f32.mrf.mxu0 }
 0x23a   : > { %2234 = vst [vmem:[%s3653_s10 + $0x20] sm:$0xff] %v2135_v30 }
 0x23c   : > { %v2148_v5 = vpop.f32.mrf.mxu1 }
 0x23d   : > { %2235 = vst [vmem:[%s3653_s10 + $0x28] sm:$0xff] %v2148_v5 }
 0x240   : > { %v2161_v31 = vpop.f32.mrf.mxu2 }
 0x241   : > { %2236 = vst [vmem:[%s3653_s10 + $0x30] sm:$0xff] %v2161_v31  ;;  %v2137_v33 = vpop.f32.mrf.mxu0 }
 0x243   : > { %v2174_v32 = vpop.f32.mrf.mxu3 }
 0x244   : > { %2237 = vst [vmem:[%s3653_s10 + $0x38] sm:$0xff] %v2174_v32  ;;  %v2150_v34 = vpop.f32.mrf.mxu1 }
 0x248   : > { %v2163_v35 = vpop.f32.mrf.mxu2 }
 0x24b   : > { %v2176_v36 = vpop.f32.mrf.mxu3 }
 0x259   : > { %v2187_v37 = vpop.f32.mrf.mxu0 }
 0x25a   : > { %2238 = vst [vmem:[%s3653_s10 + $0x40] sm:$0xff] %v2187_v37  ;;  %v2200_v38 = vpop.f32.mrf.mxu1 }
 0x25b   : > { %2239 = vst [vmem:[%s3653_s10 + $0x48] sm:$0xff] %v2200_v38 }
 0x260   : > { %v2213_v39 = vpop.f32.mrf.mxu2 }
 0x261   : > { %2240 = vst [vmem:[%s3653_s10 + $0x50] sm:$0xff] %v2213_v39  ;;  %v2226_v40 = vpop.f32.mrf.mxu3  ;;  %v2189_v41 = vpop.f32.mrf.mxu0 }
 0x262   : > { %2241 = vst [vmem:[%s3653_s10 + $0x58] sm:$0xff] %v2226_v40  ;;  %v2202_v42 = vpop.f32.mrf.mxu1 }
 0x268   : > { %v2215_v43 = vpop.f32.mrf.mxu2 }
 0x269   : > { %v2228_v44 = vpop.f32.mrf.mxu3 }
 0x26a PF: > { %s14_s21 = sadd.s32 1, %s3283_s21   ;;  %s3981_s15 = smov %s3263_s16 }
 0x26b   : > { %p11_p1 = scmp.ge.s32.totalorder %s14_s21, 10   ;;  %s3982_s16 = smov %s3362_s28 }
 0x26c   : > { %s3983_s17 = smov %s3275_s19  ;;  %s3984_s18 = smov %s3279_s20 }
 0x26d   : > { %s3985_s19 = smov %s3988_s22  ;;  %s3986_s20 = smov %s3992_s23 }
 0x26e   :  { %13 = sbr.rel (!%p11_p1) target bundleno = 4 (0x4), region = 129 }

</bundles_post_ra>
